<compile_context>
chip_gen: v5e
topology: v5e:2x2
jax: 0.10.0
libtpu: 0.0.40
codegen_flags: <defaults>
</compile_context>

<pallas_src>
import functools
import math
from typing import NamedTuple

import numpy as np
import jax
import jax.numpy as jnp
from jax import lax
from jax.experimental import pallas as pl
from jax.experimental.pallas import tpu as pltpu


class CellConfig(NamedTuple):
    node_num: int
    dim_in: int
    hidden_dim: int
    cheb_k: int
    mem_num: int
    embed_dim: int


# =====================================================================
# in-kernel math helpers
# =====================================================================

def _erf(x):
    # Abramowitz & Stegun 7.1.26; only ops guaranteed to lower on Mosaic.
    a1, a2, a3, a4, a5 = (0.254829592, -0.284496736, 1.421413741,
                          -1.453152027, 1.061405429)
    p = 0.3275911
    s = jnp.where(x >= 0.0, 1.0, -1.0)
    ax = jnp.abs(x)
    t = pl.reciprocal(1.0 + p * ax, approx=True)      # EUP slot (feedback item)
    poly = ((((a5 * t + a4) * t + a3) * t + a2) * t + a1) * t
    return s * (1.0 - poly * jnp.exp(-ax * ax))


def _gelu_exact(x):
    # nn.GELU() (erf form)
    return 0.5 * x * (1.0 + _erf(x * 0.7071067811865476))


def _softmax_lastdim(s):
    s = s - jnp.max(s, axis=-1, keepdims=True)
    e = jnp.exp(s)
    return e * pl.reciprocal(jnp.sum(e, axis=-1, keepdims=True), approx=True)


# =====================================================================
# Kernel 1: stem  (DoubleConv + FFN)
# =====================================================================

def _stem_kernel(x_ref, w1_ref, b1_ref, w2_ref, b2_ref, wf1_ref, bf1_ref,
                 wf2_ref, bf2_ref, tm_ref, mm_ref, selh_ref, o_ref, *, H):
    """Packed HWC rows, all Bg images of the grid step stacked along rows."""
    x = x_ref[0]                                       # (Bg*H, W*cin)
    rows = x.shape[0]
    row_in_img = lax.broadcasted_iota(jnp.int32, (rows, 1), 0) % H

    def shift_down(v):      # value at r becomes v[r-1]; zero at each image's top row
        s = jnp.concatenate([jnp.zeros((1, v.shape[1]), v.dtype), v[:-1, :]], axis=0)
        return jnp.where(row_in_img == 0, 0.0, s)

    def shift_up(v):        # value at r becomes v[r+1]; zero at each image's bottom row
        s = jnp.concatenate([v[1:, :], jnp.zeros((1, v.shape[1]), v.dtype)], axis=0)
        return jnp.where(row_in_img == H - 1, 0.0, s)

    def conv3(v, w3):
        # 3x3 conv, pad 1: kx folded into block-tri-diagonal weights (no lane
        # slicing, W-boundary handled by the shift matrices); ky via row shifts.
        return (jnp.dot(shift_down(v), w3[0], preferred_element_type=jnp.float32)
                + jnp.dot(v, w3[1], preferred_element_type=jnp.float32)
                + jnp.dot(shift_up(v), w3[2], preferred_element_type=jnp.float32))

    # DoubleConv (BN folded, eval mode)
    y = jnp.maximum(conv3(x, w1_ref[...]) + b1_ref[...], 0.0)
    y = jnp.maximum(conv3(y, w2_ref[...]) + b2_ref[...], 0.0)

    # FFN: 1x1 -> BN -> GELU(erf) -> 1x1 -> BN   (1x1s as kron(I_W, w) matmuls)
    f = jnp.dot(y, wf1_ref[...], preferred_element_type=jnp.float32) + bf1_ref[...]
    f = _gelu_exact(f)
    f = jnp.dot(f, wf2_ref[...], preferred_element_type=jnp.float32) + bf2_ref[...]

    # packed rows (Bg*H, W*hid) -> per-image torch-raw NCHW/graph flat (Bg, N*hid)
    # via two lane-dense 0/1 matmuls (no transpose glue, lane-dense output store).
    g = jnp.dot(selh_ref[...],
                jnp.dot(f, tm_ref[...], preferred_element_type=jnp.float32)
                * mm_ref[...],
                preferred_element_type=jnp.float32)
    o_ref[0] = g


# =====================================================================
# Kernel 2: fused gate-DynAGCN + update-DynAGCN + GRU epilogue
# =====================================================================

_CC_NAMES = ("sel_n", "sel_b", "mask_c", "g_c", "mask_h", "rep_h")
_BLK_NAMES = ("ax", "as_", "bpe", "fc1_w", "fc1_b", "fc2_w", "fc2_b", "fc3_w",
              "fc3_b", "wq", "gfd_w", "gfd_b", "tdiag", "npack", "wpool",
              "ne_exp", "ssel", "bias")


def _flat_to_rows(x_flat, cc, Bg, N):
    """(Bg, N*C) flat -> (Bg*N, C) node-rows via mask/selection matmuls."""
    if Bg == 1:
        b = jnp.broadcast_to(x_flat, (N, x_flat.shape[-1]))
    else:
        b = jnp.dot(cc["sel_n"], x_flat, preferred_element_type=jnp.float32)
    return jnp.dot(b * cc["mask_c"], cc["g_c"], preferred_element_type=jnp.float32)


def _rows_to_flat(x_rows, cc, Bg):
    """(Bg*N, h) node-rows -> (Bg, N*h) flat via mask/selection matmuls."""
    m = jnp.dot(x_rows, cc["rep_h"], preferred_element_type=jnp.float32) * cc["mask_h"]
    if Bg == 1:
        return jnp.sum(m, axis=0, keepdims=True)
    return jnp.dot(cc["sel_b"], m, preferred_element_type=jnp.float32)


def _dyn_block(xg_flat, s_flat, p, mem, cc, *, N, E, O, cheb_k, Bg):
    """One DynAGCN (CPE + fc MLP + memory attention + gated fusion + Cheb gconv).

    xg_flat, s_flat: (Bg, N*hid) flat halves of the concatenated input (torch raw
    graph order).  Returns the raw graph-conv output as node-rows (Bg*N, O).
    """
    # --- ConditionalPositionalEncoding folded to dense lane-wide matmuls
    #     (x + depthwise5x5(x) under torch's raw reshape; cat([xg,s]) split).
    xpe_flat = (jnp.dot(xg_flat, p["ax"], preferred_element_type=jnp.float32)
                + jnp.dot(s_flat, p["as_"], preferred_element_type=jnp.float32)
                + p["bpe"])                                   # (Bg, N*Ct)
    xpe = _flat_to_rows(xpe_flat, cc, Bg, N)                  # (Bg*N, Ct)

    # --- fc MLP -> Wq -> memory attention (per-node ops stacked over the batch)
    t = jax.nn.sigmoid(jnp.dot(xpe, p["fc1_w"], preferred_element_type=jnp.float32)
                       + p["fc1_b"])
    t = jax.nn.sigmoid(jnp.dot(t, p["fc2_w"], preferred_element_type=jnp.float32)
                       + p["fc2_b"])
    x_e = jnp.dot(t, p["fc3_w"], preferred_element_type=jnp.float32) + p["fc3_b"]
    query = jnp.dot(x_e, p["wq"], preferred_element_type=jnp.float32)     # (BgN, E)
    scores = lax.dot_general(query, mem, (((1,), (1,)), ((), ())),
                             preferred_element_type=jnp.float32)          # (BgN, M)
    dyn = jnp.dot(_softmax_lastdim(scores), mem,
                  preferred_element_type=jnp.float32)                     # (BgN, E)

    # --- gated fusion (node-only terms precomputed: npack = [nne|node_res|urn|wun])
    npk = p["npack"]
    if Bg > 1:
        npk = jnp.concatenate([npk] * Bg, axis=0)
    nne = npk[:, 0:E]
    node_res = npk[:, E:2 * E]
    urn = npk[:, 2 * E:3 * E]
    wun = npk[:, 3 * E:4 * E]
    dyp = jnp.dot(dyn, p["gfd_w"], preferred_element_type=jnp.float32) + p["gfd_b"]
    z = jax.nn.sigmoid(node_res + dyn + dyn * p["tdiag"])   # einsum('bnd,dd') == diag
    r = jax.nn.sigmoid(dyp[:, :E] + urn)
    hcand = jnp.tanh(dyp[:, E:2 * E] + r * wun)
    comb = z * nne + (1.0 - z) * hcand                                    # (BgN, E)

    # --- adaptive supports + Chebyshev graph conv (per image; all MXU matmuls)
    ne_exp, ssel, wpool, bias = p["ne_exp"], p["ssel"], p["wpool"], p["bias"]
    outs = []
    for b in range(Bg):
        cb = comb[b * N:(b + 1) * N, :]
        xb = xpe[b * N:(b + 1) * N, :]
        S = lax.dot_general(cb, cb, (((1,), (1,)), ((), ())),
                            preferred_element_type=jnp.float32)
        S = _softmax_lastdim(jnp.maximum(S, 0.0))
        acc = bias                                            # ne @ bias_pool
        xk_prev2 = None
        xk_prev = None
        for k in range(cheb_k):
            if k == 0:
                xk = xb
            elif k == 1:
                xk = jnp.dot(S, xb, preferred_element_type=jnp.float32)
            else:
                xk = (2.0 * jnp.dot(S, xk_prev, preferred_element_type=jnp.float32)
                      - xk_prev2)
            bk = jnp.dot(xk, wpool[k], preferred_element_type=jnp.float32)  # (N,E*O)
            acc = acc + jnp.dot(ne_exp * bk, ssel,
                                preferred_element_type=jnp.float32)         # (N, O)
            xk_prev2, xk_prev = xk_prev, xk
        outs.append(acc)
    return outs[0] if Bg == 1 else jnp.concatenate(outs, axis=0)


def _gru_kernel(*refs, N, E, hid, cheb_k, Bg):
    xg_ref, st_ref, mem_ref = refs[0], refs[1], refs[2]
    pos = 3
    cc = {}
    for name in _CC_NAMES:
        cc[name] = refs[pos][...]
        pos += 1
    blocks = []
    for _ in range(2):
        blk = {}
        for name in _BLK_NAMES:
            blk[name] = refs[pos][...]
            pos += 1
        blocks.append(blk)
    gate_p, upd_p = blocks
    o_ref = refs[-1]

    xg = xg_ref[0]                       # (Bg, N*hid) flat (torch raw graph order)
    st = st_ref[0]                       # (Bg, N*hid)
    mem = mem_ref[...]

    # gate DynAGCN  -> z_r = sigmoid(.)
    gate_raw = _dyn_block(xg, st, gate_p, mem, cc,
                          N=N, E=E, O=2 * hid, cheb_k=cheb_k, Bg=Bg)
    zr = jax.nn.sigmoid(gate_raw)                              # (Bg*N, 2*hid)
    z_flat = _rows_to_flat(zr[:, :hid], cc, Bg)                # (Bg, N*hid)
    r_flat = _rows_to_flat(zr[:, hid:2 * hid], cc, Bg)

    # update DynAGCN on cat([xg, z*state]) (concat removed via A_x / A_s split)
    upd_raw = _dyn_block(xg, z_flat * st, upd_p, mem, cc,
                         N=N, E=E, O=hid, cheb_k=cheb_k, Bg=Bg)
    hc_flat = _rows_to_flat(jnp.tanh(upd_raw), cc, Bg)

    # GRU combine, lane-dense (Bg, N*hid) output store
    o_ref[0] = r_flat * st + (1.0 - r_flat) * hc_flat


# =====================================================================
# Layout constants (0/1 matrices; built from static shapes, folded by XLA)
# =====================================================================

def _layout_constants(Bg, H, W, N, hid, Ct):
    f32 = np.float32
    # stem packed-row -> torch-raw NCHW/graph flat order
    g = np.arange(N * hid)
    c, rem = g // N, g % N
    y, x = rem // W, rem % W
    tm = (np.arange(W * hid)[:, None] == (x * hid + c)[None, :]).astype(f32)
    mm = (np.arange(H)[:, None] == y[None, :]).astype(f32)
    mm_t = np.tile(mm, (Bg, 1))
    selh = np.kron(np.eye(Bg, dtype=f32), np.ones((1, H), f32))

    # flat <-> node-row conversion matrices for the GRU kernel
    bn = np.arange(Bg * N)
    qc = np.arange(N * Ct)
    mask_c = ((qc[None, :] // Ct) == (bn[:, None] % N)).astype(f32)
    g_c = ((qc[:, None] % Ct) == np.arange(Ct)[None, :]).astype(f32)
    jh = np.arange(N * hid)
    mask_h = ((jh[None, :] // hid) == (bn[:, None] % N)).astype(f32)
    rep_h = ((jh[None, :] % hid) == np.arange(hid)[:, None]).astype(f32)
    sel_n = ((bn[:, None] // N) == np.arange(Bg)[None, :]).astype(f32)
    sel_b = np.ascontiguousarray(sel_n.T)

    to_j = lambda a: jnp.asarray(a, jnp.float32)
    stem_c = (to_j(tm), to_j(mm_t), to_j(selh))
    cc = dict(sel_n=to_j(sel_n), sel_b=to_j(sel_b), mask_c=to_j(mask_c),
              g_c=to_j(g_c), mask_h=to_j(mask_h), rep_h=to_j(rep_h))
    return stem_c, cc


def _bcast_spec(arr):
    nd = arr.ndim
    return pl.BlockSpec(arr.shape, lambda *_, _nd=nd: (0,) * _nd)


# =====================================================================
# Forward wrapper
# =====================================================================

def dygcrn_cell_forward(cfg, params, x, state):
    """DyGCRNCell.forward — x, state are NCHW float32, like the PyTorch module."""
    B, cin, H, W = x.shape
    N = H * W
    hid = cfg.hidden_dim
    Ct = cfg.dim_in + hid
    assert N == cfg.node_num and cin == cfg.dim_in
    assert state.shape == (B, hid, H, W)
    G = 2 if (B >= 2 and B % 2 == 0) else 1     # >=2 parallel steps (v7x megacore)
    Bg = B // G

    stem_c, cc = _layout_constants(Bg, H, W, N, hid, Ct)
    tm, mm_t, selh = stem_c

    # ----- stem: DoubleConv + FFN (one fused kernel, batch folded into rows) -----
    sp = params["stem"]
    xin = jnp.transpose(x, (0, 2, 3, 1)).reshape(G, Bg * H, W * cin)
    stem_args = [xin, sp["w1"], sp["b1"], sp["w2"], sp["b2"],
                 sp["wf1"], sp["bf1"], sp["wf2"], sp["bf2"], tm, mm_t, selh]
    xg_flat = pl.pallas_call(
        functools.partial(_stem_kernel, H=H),
        grid=(G,),
        out_shape=jax.ShapeDtypeStruct((G, Bg, N * hid), jnp.float32),
        in_specs=[pl.BlockSpec((1, Bg * H, W * cin), lambda g: (g, 0, 0))]
                 + [_bcast_spec(a) for a in stem_args[1:]],
        out_specs=pl.BlockSpec((1, Bg, N * hid), lambda g: (g, 0, 0)),
        compiler_params=pltpu.CompilerParams(dimension_semantics=("parallel",)),
    )(*stem_args)

    # torch raw reshape of the NCHW state to (B, N, hid) == flat (B, N*hid)
    st_flat = state.reshape(G, Bg, N * hid)

    # ----- fused gate-DynAGCN + update-DynAGCN + GRU epilogue (one kernel) -----
    cc_args = [cc[k] for k in _CC_NAMES]
    gate_args = [params["gate"][k] for k in _BLK_NAMES]
    upd_args = [params["update"][k] for k in _BLK_NAMES]
    gru_args = [xg_flat, st_flat, params["Mem"]] + cc_args + gate_args + upd_args
    dspec = pl.BlockSpec((1, Bg, N * hid), lambda g: (g, 0, 0))
    h_flat = pl.pallas_call(
        functools.partial(_gru_kernel, N=N, E=cfg.embed_dim, hid=hid,
                          cheb_k=cfg.cheb_k, Bg=Bg),
        grid=(G,),
        out_shape=jax.ShapeDtypeStruct((G, Bg, N * hid), jnp.float32),
        in_specs=[dspec, dspec] + [_bcast_spec(a) for a in gru_args[2:]],
        out_specs=dspec,
        compiler_params=pltpu.CompilerParams(dimension_semantics=("parallel",)),
    )(*gru_args)

    h = h_flat.reshape(B, N * hid)
    # torch: h.reshape(batch_size, -1, width, height)  (raw row-major, W/H order)
    return h.reshape(B, -1, W, H)


# =====================================================================
# Deterministic parameter initialisation (synthetic; kernel-ready layouts)
# =====================================================================

_BN_SCALE = float(1.0 / math.sqrt(1.0 + 1e-5))   # eval-mode BN with fresh stats


def _normal(key, shape, scale=0.1):
    return (scale * jax.random.normal(key, shape)).astype(jnp.float32)


def _kron_blockdiag(w, reps):
    eye = jnp.eye(reps, dtype=w.dtype)
    return jnp.einsum("uv,io->uivo", eye, w).reshape(reps * w.shape[0],
                                                     reps * w.shape[1])


def _merge_conv3(taps, W):
    """taps (3,3,cin,cout) -> 3 merged (W*cin, W*cout) block-tri-diagonal matrices
    (kx shift + W-boundary zeros folded into the weight)."""
    cin, cout = taps.shape[2], taps.shape[3]
    mats = []
    for a in range(3):
        m = jnp.zeros((W * cin, W * cout), jnp.float32)
        for b in range(3):
            s = jnp.eye(W, k=1 - b, dtype=jnp.float32)   # wi == wo + b - 1
            m = m + jnp.einsum("uv,io->uivo", s, taps[a, b]).reshape(W * cin, W * cout)
        mats.append(m)
    return jnp.stack(mats, axis=0)


def _cpe_matrices(dw, bias, N, Ct, hid):
    """ConditionalPositionalEncoding (x + depthwise5x5(x) under torch's raw
    reshape) as a dense linear map on the flat per-image vector; split into the
    xg-half and state-half input matrices so the torch cat() disappears."""
    w0 = int(round(math.sqrt(N)))
    L = N * Ct
    q = np.arange(L)
    ch, sp = q // N, q % N
    yy, xx = sp // w0, sp % w0
    M = jnp.eye(L, dtype=jnp.float32)        # identity: x + pe(x)
    for a in range(5):
        for b5 in range(5):
            y2 = yy + a - 2
            x2 = xx + b5 - 2
            valid = (y2 >= 0) & (y2 < w0) & (x2 >= 0) & (x2 < w0)
            qv = q[valid]
            pv = ch[valid] * N + y2[valid] * w0 + x2[valid]
            M = M.at[pv, qv].add(dw[ch[valid], a, b5])
    b_pe = jnp.repeat(bias, N).reshape(1, L)
    node = np.arange(N)[:, None]
    idx_x = (node * Ct + np.arange(hid)[None, :]).reshape(-1)
    idx_s = (node * Ct + hid + np.arange(Ct - hid)[None, :]).reshape(-1)
    return M[idx_x, :], M[idx_s, :], b_pe


def _init_dyn_block(key, N, Ct, O, cheb_k, E, node_emb, hid):
    ks = jax.random.split(key, 17)
    half = Ct // 2
    # ConditionalPositionalEncoding (depthwise 5x5, bias=True)
    dw = _normal(ks[0], (Ct, 5, 5))
    pe_b = _normal(ks[1], (Ct,), 0.02)
    ax, as_, bpe = _cpe_matrices(dw, pe_b, N, Ct, hid)
    # fc MLP + query projection
    fc1_w, fc1_b = _normal(ks[2], (Ct, half)), jnp.zeros((1, half), jnp.float32)
    fc2_w, fc2_b = _normal(ks[3], (half, half)), jnp.zeros((1, half), jnp.float32)
    fc3_w, fc3_b = _normal(ks[4], (half, Ct)), jnp.zeros((1, Ct), jnp.float32)
    wq = _normal(ks[5], (Ct, E))
    # GatedFusion (LayerNorm fresh gamma=1/beta=0); node-only terms precomputed
    w_w, w_b = _normal(ks[6], (E, E)), _normal(ks[7], (E,), 0.02)
    wr_w, wr_b = _normal(ks[8], (E, E)), _normal(ks[9], (E,), 0.02)
    ur_w, ur_b = _normal(ks[10], (E, E)), _normal(ks[11], (E,), 0.02)
    wh_w, wh_b = _normal(ks[12], (E, E)), _normal(ks[13], (E,), 0.02)
    wu_w, wu_b = _normal(ks[14], (E, E)), jnp.zeros((E,), jnp.float32)
    trans = _normal(ks[15], (E, E), 0.3)
    mu = jnp.mean(node_emb, axis=-1, keepdims=True)
    var = jnp.mean((node_emb - mu) ** 2, axis=-1, keepdims=True)
    nne = (node_emb - mu) * lax.rsqrt(var + 1e-5)
    node_res = jnp.dot(nne, w_w) + w_b + nne
    urn = jnp.dot(nne, ur_w) + ur_b
    wun = jnp.dot(nne, wu_w) + wu_b
    npack = jnp.concatenate([nne, node_res, urn, wun], axis=1)       # (N, 4E)
    gfd_w = jnp.concatenate([wr_w, wh_w], axis=1)                    # [w_r | w_h]
    gfd_b = jnp.concatenate([wr_b, wh_b]).reshape(1, 2 * E)
    tdiag = jnp.diagonal(trans).reshape(1, E)
    # graph-conv pools (weights_pool (E,K,C,O) -> (K, C, E*O); ne_exp/Ssel trick)
    wpool = _normal(ks[16], (E, cheb_k, Ct, O))
    bpool = jnp.zeros((E, O), jnp.float32)                # nn.init.constant_(0)
    wpool_k = jnp.transpose(wpool, (1, 2, 0, 3)).reshape(cheb_k, Ct, E * O)
    ne_exp = jnp.repeat(node_emb, O, axis=1)              # (N, E*O)
    ssel = jnp.asarray(np.tile(np.eye(O, dtype=np.float32), (E, 1)))  # (E*O, O)
    bias = jnp.dot(node_emb, bpool)                       # (N, O)
    return dict(ax=ax, as_=as_, bpe=bpe, fc1_w=fc1_w, fc1_b=fc1_b, fc2_w=fc2_w,
                fc2_b=fc2_b, fc3_w=fc3_w, fc3_b=fc3_b, wq=wq, gfd_w=gfd_w,
                gfd_b=gfd_b, tdiag=tdiag, npack=npack, wpool=wpool_k,
                ne_exp=ne_exp, ssel=ssel, bias=bias)


def init_dygcrn_cell(key, cfg, H, W):
    # The reference module is only shape-consistent when dim_in == hidden_dim.
    assert cfg.dim_in == cfg.hidden_dim
    assert H * W == cfg.node_num
    d, hid = cfg.dim_in, cfg.hidden_dim
    ks = jax.random.split(key, 10)

    def conv3(k):
        taps = _normal(k, (3, 3, d, d)) * _BN_SCALE     # BN folded, bias=False
        return _merge_conv3(taps, W)

    def conv1x1(kw, kb, cin, cout):
        w = _normal(kw, (cin, cout)) * _BN_SCALE        # BN folded
        b = _normal(kb, (cout,), 0.02) * _BN_SCALE
        return _kron_blockdiag(w, W), jnp.tile(b, (W,)).reshape(1, W * cout)

    wf1, bf1 = conv1x1(ks[2], ks[3], d, 4 * d)
    wf2, bf2 = conv1x1(ks[4], ks[5], 4 * d, hid)
    stem = dict(w1=conv3(ks[0]), b1=jnp.zeros((1, W * d), jnp.float32),
                w2=conv3(ks[1]), b2=jnp.zeros((1, W * d), jnp.float32),
                wf1=wf1, bf1=bf1, wf2=wf2, bf2=bf2)

    node_emb = _normal(ks[6], (cfg.node_num, cfg.embed_dim), 0.5)
    Mem = _normal(ks[7], (cfg.mem_num, cfg.embed_dim), 0.5)
    Ct = d + hid
    gate = _init_dyn_block(ks[8], cfg.node_num, Ct, 2 * hid, cfg.cheb_k,
                           cfg.embed_dim, node_emb, hid)
    update = _init_dyn_block(ks[9], cfg.node_num, Ct, hid, cfg.cheb_k,
                             cfg.embed_dim, node_emb, hid)
    return dict(stem=stem, Mem=Mem, node_emb=node_emb, gate=gate, update=update)


# =====================================================================
# Demo
# =====================================================================

if __name__ == "__main__":
    cfg = CellConfig(node_num=16, dim_in=8, hidden_dim=8, cheb_k=3,
                     mem_num=8, embed_dim=8)
    B, H, W = 2, 4, 4

    key = jax.random.PRNGKey(0)
    kp, kx, ks = jax.random.split(key, 3)
    params = init_dygcrn_cell(kp, cfg, H, W)
    x = jax.random.normal(kx, (B, cfg.dim_in, H, W), jnp.float32)          # NCHW
    state = jax.random.normal(ks, (B, cfg.hidden_dim, H, W), jnp.float32)  # NCHW

    fwd = jax.jit(dygcrn_cell_forward, static_argnums=0)
    h = fwd(cfg, params, x, state)
    jax.block_until_ready(h)
    assert h.shape == (B, cfg.hidden_dim, W, H)
    assert bool(jnp.all(jnp.isfinite(h)))
    print("KERNEL_OK")
</pallas_src>

<mosaic_0001>
module attributes {stable_mosaic.version = 11 : i64} {
  func.func @_stem_kernel(%arg0: i32, %arg1: memref<1x4x32xf32, #tpu.memory_space<vmem>>, %arg2: memref<3x32x32xf32, #tpu.memory_space<vmem>>, %arg3: memref<1x32xf32, #tpu.memory_space<vmem>>, %arg4: memref<3x32x32xf32, #tpu.memory_space<vmem>>, %arg5: memref<1x32xf32, #tpu.memory_space<vmem>>, %arg6: memref<32x128xf32, #tpu.memory_space<vmem>>, %arg7: memref<1x128xf32, #tpu.memory_space<vmem>>, %arg8: memref<128x32xf32, #tpu.memory_space<vmem>>, %arg9: memref<1x32xf32, #tpu.memory_space<vmem>>, %arg10: memref<32x128xf32, #tpu.memory_space<vmem>>, %arg11: memref<4x128xf32, #tpu.memory_space<vmem>>, %arg12: memref<1x4xf32, #tpu.memory_space<vmem>>, %arg13: memref<1x1x128xf32, #tpu.memory_space<vmem>>) attributes {dimension_semantics = [#tpu.dimension_semantics<parallel>], iteration_bounds = array<i64: 2>, scalar_prefetch = 0 : i64, scratch_operands = 0 : i64, tpu.core_type = #tpu.core_type<tc>, window_params = [{transform_indices = @transform_0, window_bounds = array<i64: 1, 4, 32>}, {pipeline_mode = #tpu.pipeline_mode<synchronous>, transform_indices = @transform_1, window_bounds = array<i64: 3, 32, 32>}, {pipeline_mode = #tpu.pipeline_mode<synchronous>, transform_indices = @transform_2, window_bounds = array<i64: 1, 32>}, {pipeline_mode = #tpu.pipeline_mode<synchronous>, transform_indices = @transform_3, window_bounds = array<i64: 3, 32, 32>}, {pipeline_mode = #tpu.pipeline_mode<synchronous>, transform_indices = @transform_4, window_bounds = array<i64: 1, 32>}, {pipeline_mode = #tpu.pipeline_mode<synchronous>, transform_indices = @transform_5, window_bounds = array<i64: 32, 128>}, {pipeline_mode = #tpu.pipeline_mode<synchronous>, transform_indices = @transform_6, window_bounds = array<i64: 1, 128>}, {pipeline_mode = #tpu.pipeline_mode<synchronous>, transform_indices = @transform_7, window_bounds = array<i64: 128, 32>}, {pipeline_mode = #tpu.pipeline_mode<synchronous>, transform_indices = @transform_8, window_bounds = array<i64: 1, 32>}, {pipeline_mode = #tpu.pipeline_mode<synchronous>, transform_indices = @transform_9, window_bounds = array<i64: 32, 128>}, {pipeline_mode = #tpu.pipeline_mode<synchronous>, transform_indices = @transform_10, window_bounds = array<i64: 4, 128>}, {pipeline_mode = #tpu.pipeline_mode<synchronous>, transform_indices = @transform_11, window_bounds = array<i64: 1, 4>}, {transform_indices = @transform_12, window_bounds = array<i64: 1, 1, 128>}]} {
    %c0 = arith.constant 0 : index
    %c0_0 = arith.constant 0 : index
    %c0_1 = arith.constant 0 : index
    %0 = vector.load %arg1[%c0, %c0_0, %c0_1] : memref<1x4x32xf32, #tpu.memory_space<vmem>>, vector<1x4x32xf32>
    %1 = vector.shape_cast %0 : vector<1x4x32xf32> to vector<4x32xf32>
    %2 = tpu.iota {dimensions = array<i32: 0>} : vector<4x1xi32>
    %c4_i32 = arith.constant 4 : i32
    %c0_i32 = arith.constant 0 : i32
    %3 = arith.cmpi eq, %c4_i32, %c0_i32 : i32
    %c1_i32 = arith.constant 1 : i32
    %4 = arith.select %3, %c1_i32, %c4_i32 : i32
    %5 = vector.broadcast %4 : i32 to vector<4x1xi32>
    %6 = arith.remsi %2, %5 : vector<4x1xi32>
    %c0_i32_2 = arith.constant 0 : i32
    %7 = vector.broadcast %c0_i32_2 : i32 to vector<4x1xi32>
    %8 = arith.cmpi ne, %6, %7 : vector<4x1xi32>
    %c0_i32_3 = arith.constant 0 : i32
    %9 = vector.broadcast %c0_i32_3 : i32 to vector<4x1xi32>
    %10 = arith.cmpi slt, %6, %9 : vector<4x1xi32>
    %c0_i32_4 = arith.constant 0 : i32
    %11 = arith.cmpi slt, %4, %c0_i32_4 : i32
    %12 = vector.broadcast %11 : i1 to vector<4x1xi1>
    %13 = vector.broadcast %12 : vector<4x1xi1> to vector<4x1xi1>
    %14 = arith.xori %10, %13 : vector<4x1xi1>
    %15 = arith.andi %14, %8 : vector<4x1xi1>
    %16 = vector.broadcast %4 : i32 to vector<4x1xi32>
    %17 = arith.addi %6, %16 : vector<4x1xi32>
    %18 = arith.select %15, %17, %6 : vector<4x1xi1>, vector<4x1xi32>
    %c0_5 = arith.constant 0 : index
    %c0_6 = arith.constant 0 : index
    %c0_7 = arith.constant 0 : index
    %19 = vector.load %arg2[%c0_5, %c0_6, %c0_7] : memref<3x32x32xf32, #tpu.memory_space<vmem>>, vector<3x32x32xf32>
    %cst = arith.constant 0.000000e+00 : f32
    %20 = vector.broadcast %cst : f32 to vector<1x32xf32>
    %21 = vector.extract_strided_slice %1 {offsets = [0, 0], sizes = [3, 32], strides = [1, 1]} : vector<4x32xf32> to vector<3x32xf32>
    %22 = tpu.concatenate %20, %21 in 0 : vector<1x32xf32>, vector<3x32xf32> -> vector<4x32xf32>
    %c0_i32_8 = arith.constant 0 : i32
    %23 = vector.broadcast %c0_i32_8 : i32 to vector<4x1xi32>
    %24 = arith.cmpi eq, %18, %23 : vector<4x1xi32>
    %cst_9 = arith.constant 0.000000e+00 : f32
    %25 = vector.shape_cast %24 : vector<4x1xi1> to vector<4x1xi1>
    %26 = vector.broadcast %25 : vector<4x1xi1> to vector<4x32xi1>
    %27 = vector.broadcast %cst_9 : f32 to vector<4x32xf32>
    %28 = arith.select %26, %27, %22 : vector<4x32xi1>, vector<4x32xf32>
    %29 = vector.extract_strided_slice %19 {offsets = [0, 0, 0], sizes = [1, 32, 32], strides = [1, 1, 1]} : vector<3x32x32xf32> to vector<1x32x32xf32>
    %30 = vector.shape_cast %29 : vector<1x32x32xf32> to vector<32x32xf32>
    %cst_10 = arith.constant dense<0.000000e+00> : vector<4x32xf32>
    %31 = tpu.matmul %28, %30, %cst_10 {dimension_numbers = #tpu.dot_dimension_numbers<[1], [0], [0], [1], [0, 0, 1, 1], [], []>} : vector<4x32xf32>, vector<32x32xf32>, vector<4x32xf32> -> vector<4x32xf32>
    %32 = vector.extract_strided_slice %19 {offsets = [1, 0, 0], sizes = [1, 32, 32], strides = [1, 1, 1]} : vector<3x32x32xf32> to vector<1x32x32xf32>
    %33 = vector.shape_cast %32 : vector<1x32x32xf32> to vector<32x32xf32>
    %cst_11 = arith.constant dense<0.000000e+00> : vector<4x32xf32>
    %34 = tpu.matmul %1, %33, %cst_11 {dimension_numbers = #tpu.dot_dimension_numbers<[1], [0], [0], [1], [0, 0, 1, 1], [], []>} : vector<4x32xf32>, vector<32x32xf32>, vector<4x32xf32> -> vector<4x32xf32>
    %35 = arith.addf %31, %34 : vector<4x32xf32>
    %36 = vector.extract_strided_slice %1 {offsets = [1, 0], sizes = [3, 32], strides = [1, 1]} : vector<4x32xf32> to vector<3x32xf32>
    %cst_12 = arith.constant 0.000000e+00 : f32
    %37 = vector.broadcast %cst_12 : f32 to vector<1x32xf32>
    %38 = tpu.concatenate %36, %37 in 0 : vector<3x32xf32>, vector<1x32xf32> -> vector<4x32xf32>
    %c3_i32 = arith.constant 3 : i32
    %39 = vector.broadcast %c3_i32 : i32 to vector<4x1xi32>
    %40 = arith.cmpi eq, %18, %39 : vector<4x1xi32>
    %cst_13 = arith.constant 0.000000e+00 : f32
    %41 = vector.shape_cast %40 : vector<4x1xi1> to vector<4x1xi1>
    %42 = vector.broadcast %41 : vector<4x1xi1> to vector<4x32xi1>
    %43 = vector.broadcast %cst_13 : f32 to vector<4x32xf32>
    %44 = arith.select %42, %43, %38 : vector<4x32xi1>, vector<4x32xf32>
    %45 = vector.extract_strided_slice %19 {offsets = [2, 0, 0], sizes = [1, 32, 32], strides = [1, 1, 1]} : vector<3x32x32xf32> to vector<1x32x32xf32>
    %46 = vector.shape_cast %45 : vector<1x32x32xf32> to vector<32x32xf32>
    %cst_14 = arith.constant dense<0.000000e+00> : vector<4x32xf32>
    %47 = tpu.matmul %44, %46, %cst_14 {dimension_numbers = #tpu.dot_dimension_numbers<[1], [0], [0], [1], [0, 0, 1, 1], [], []>} : vector<4x32xf32>, vector<32x32xf32>, vector<4x32xf32> -> vector<4x32xf32>
    %48 = arith.addf %35, %47 : vector<4x32xf32>
    %c0_15 = arith.constant 0 : index
    %c0_16 = arith.constant 0 : index
    %49 = vector.load %arg3[%c0_15, %c0_16] : memref<1x32xf32, #tpu.memory_space<vmem>>, vector<1x32xf32>
    %50 = vector.broadcast %49 : vector<1x32xf32> to vector<4x32xf32>
    %51 = arith.addf %48, %50 : vector<4x32xf32>
    %cst_17 = arith.constant 0.000000e+00 : f32
    %52 = vector.broadcast %cst_17 : f32 to vector<4x32xf32>
    %53 = arith.maximumf %51, %52 : vector<4x32xf32>
    %c0_18 = arith.constant 0 : index
    %c0_19 = arith.constant 0 : index
    %c0_20 = arith.constant 0 : index
    %54 = vector.load %arg4[%c0_18, %c0_19, %c0_20] : memref<3x32x32xf32, #tpu.memory_space<vmem>>, vector<3x32x32xf32>
    %cst_21 = arith.constant 0.000000e+00 : f32
    %55 = vector.broadcast %cst_21 : f32 to vector<1x32xf32>
    %56 = vector.extract_strided_slice %53 {offsets = [0, 0], sizes = [3, 32], strides = [1, 1]} : vector<4x32xf32> to vector<3x32xf32>
    %57 = tpu.concatenate %55, %56 in 0 : vector<1x32xf32>, vector<3x32xf32> -> vector<4x32xf32>
    %c0_i32_22 = arith.constant 0 : i32
    %58 = vector.broadcast %c0_i32_22 : i32 to vector<4x1xi32>
    %59 = arith.cmpi eq, %18, %58 : vector<4x1xi32>
    %cst_23 = arith.constant 0.000000e+00 : f32
    %60 = vector.shape_cast %59 : vector<4x1xi1> to vector<4x1xi1>
    %61 = vector.broadcast %60 : vector<4x1xi1> to vector<4x32xi1>
    %62 = vector.broadcast %cst_23 : f32 to vector<4x32xf32>
    %63 = arith.select %61, %62, %57 : vector<4x32xi1>, vector<4x32xf32>
    %64 = vector.extract_strided_slice %54 {offsets = [0, 0, 0], sizes = [1, 32, 32], strides = [1, 1, 1]} : vector<3x32x32xf32> to vector<1x32x32xf32>
    %65 = vector.shape_cast %64 : vector<1x32x32xf32> to vector<32x32xf32>
    %cst_24 = arith.constant dense<0.000000e+00> : vector<4x32xf32>
    %66 = tpu.matmul %63, %65, %cst_24 {dimension_numbers = #tpu.dot_dimension_numbers<[1], [0], [0], [1], [0, 0, 1, 1], [], []>} : vector<4x32xf32>, vector<32x32xf32>, vector<4x32xf32> -> vector<4x32xf32>
    %67 = vector.extract_strided_slice %54 {offsets = [1, 0, 0], sizes = [1, 32, 32], strides = [1, 1, 1]} : vector<3x32x32xf32> to vector<1x32x32xf32>
    %68 = vector.shape_cast %67 : vector<1x32x32xf32> to vector<32x32xf32>
    %cst_25 = arith.constant dense<0.000000e+00> : vector<4x32xf32>
    %69 = tpu.matmul %53, %68, %cst_25 {dimension_numbers = #tpu.dot_dimension_numbers<[1], [0], [0], [1], [0, 0, 1, 1], [], []>} : vector<4x32xf32>, vector<32x32xf32>, vector<4x32xf32> -> vector<4x32xf32>
    %70 = arith.addf %66, %69 : vector<4x32xf32>
    %71 = vector.extract_strided_slice %53 {offsets = [1, 0], sizes = [3, 32], strides = [1, 1]} : vector<4x32xf32> to vector<3x32xf32>
    %cst_26 = arith.constant 0.000000e+00 : f32
    %72 = vector.broadcast %cst_26 : f32 to vector<1x32xf32>
    %73 = tpu.concatenate %71, %72 in 0 : vector<3x32xf32>, vector<1x32xf32> -> vector<4x32xf32>
    %c3_i32_27 = arith.constant 3 : i32
    %74 = vector.broadcast %c3_i32_27 : i32 to vector<4x1xi32>
    %75 = arith.cmpi eq, %18, %74 : vector<4x1xi32>
    %cst_28 = arith.constant 0.000000e+00 : f32
    %76 = vector.shape_cast %75 : vector<4x1xi1> to vector<4x1xi1>
    %77 = vector.broadcast %76 : vector<4x1xi1> to vector<4x32xi1>
    %78 = vector.broadcast %cst_28 : f32 to vector<4x32xf32>
    %79 = arith.select %77, %78, %73 : vector<4x32xi1>, vector<4x32xf32>
    %80 = vector.extract_strided_slice %54 {offsets = [2, 0, 0], sizes = [1, 32, 32], strides = [1, 1, 1]} : vector<3x32x32xf32> to vector<1x32x32xf32>
    %81 = vector.shape_cast %80 : vector<1x32x32xf32> to vector<32x32xf32>
    %cst_29 = arith.constant dense<0.000000e+00> : vector<4x32xf32>
    %82 = tpu.matmul %79, %81, %cst_29 {dimension_numbers = #tpu.dot_dimension_numbers<[1], [0], [0], [1], [0, 0, 1, 1], [], []>} : vector<4x32xf32>, vector<32x32xf32>, vector<4x32xf32> -> vector<4x32xf32>
    %83 = arith.addf %70, %82 : vector<4x32xf32>
    %c0_30 = arith.constant 0 : index
    %c0_31 = arith.constant 0 : index
    %84 = vector.load %arg5[%c0_30, %c0_31] : memref<1x32xf32, #tpu.memory_space<vmem>>, vector<1x32xf32>
    %85 = vector.broadcast %84 : vector<1x32xf32> to vector<4x32xf32>
    %86 = arith.addf %83, %85 : vector<4x32xf32>
    %cst_32 = arith.constant 0.000000e+00 : f32
    %87 = vector.broadcast %cst_32 : f32 to vector<4x32xf32>
    %88 = arith.maximumf %86, %87 : vector<4x32xf32>
    %c0_33 = arith.constant 0 : index
    %c0_34 = arith.constant 0 : index
    %89 = vector.load %arg6[%c0_33, %c0_34] : memref<32x128xf32, #tpu.memory_space<vmem>>, vector<32x128xf32>
    %cst_35 = arith.constant dense<0.000000e+00> : vector<4x128xf32>
    %90 = tpu.matmul %88, %89, %cst_35 {dimension_numbers = #tpu.dot_dimension_numbers<[1], [0], [0], [1], [0, 0, 1, 1], [], []>} : vector<4x32xf32>, vector<32x128xf32>, vector<4x128xf32> -> vector<4x128xf32>
    %c0_36 = arith.constant 0 : index
    %c0_37 = arith.constant 0 : index
    %91 = vector.load %arg7[%c0_36, %c0_37] : memref<1x128xf32, #tpu.memory_space<vmem>>, vector<1x128xf32>
    %92 = vector.broadcast %91 : vector<1x128xf32> to vector<4x128xf32>
    %93 = arith.addf %90, %92 : vector<4x128xf32>
    %cst_38 = arith.constant 5.000000e-01 : f32
    %94 = vector.broadcast %cst_38 : f32 to vector<4x128xf32>
    %95 = arith.mulf %94, %93 : vector<4x128xf32>
    %cst_39 = arith.constant 0.707106769 : f32
    %96 = vector.broadcast %cst_39 : f32 to vector<4x128xf32>
    %97 = arith.mulf %93, %96 : vector<4x128xf32>
    %cst_40 = arith.constant 0.000000e+00 : f32
    %98 = vector.broadcast %cst_40 : f32 to vector<4x128xf32>
    %99 = arith.cmpf oge, %97, %98 : vector<4x128xf32>
    %cst_41 = arith.constant 1.000000e+00 : f32
    %cst_42 = arith.constant -1.000000e+00 : f32
    %100 = vector.broadcast %cst_41 : f32 to vector<4x128xf32>
    %101 = vector.broadcast %cst_42 : f32 to vector<4x128xf32>
    %102 = arith.select %99, %100, %101 : vector<4x128xi1>, vector<4x128xf32>
    %103 = math.absf %97 : vector<4x128xf32>
    %cst_43 = arith.constant 0.327591091 : f32
    %104 = vector.broadcast %cst_43 : f32 to vector<4x128xf32>
    %105 = arith.mulf %104, %103 : vector<4x128xf32>
    %cst_44 = arith.constant 1.000000e+00 : f32
    %106 = vector.broadcast %cst_44 : f32 to vector<4x128xf32>
    %107 = arith.addf %106, %105 : vector<4x128xf32>
    %108 = tpu.reciprocal %107 {approx = true} : vector<4x128xf32> -> vector<4x128xf32>
    %cst_45 = arith.constant 1.06140542 : f32
    %109 = vector.broadcast %cst_45 : f32 to vector<4x128xf32>
    %110 = arith.mulf %109, %108 : vector<4x128xf32>
    %cst_46 = arith.constant -1.45315206 : f32
    %111 = vector.broadcast %cst_46 : f32 to vector<4x128xf32>
    %112 = arith.addf %110, %111 : vector<4x128xf32>
    %113 = arith.mulf %112, %108 : vector<4x128xf32>
    %cst_47 = arith.constant 1.42141378 : f32
    %114 = vector.broadcast %cst_47 : f32 to vector<4x128xf32>
    %115 = arith.addf %113, %114 : vector<4x128xf32>
    %116 = arith.mulf %115, %108 : vector<4x128xf32>
    %cst_48 = arith.constant -0.284496725 : f32
    %117 = vector.broadcast %cst_48 : f32 to vector<4x128xf32>
    %118 = arith.addf %116, %117 : vector<4x128xf32>
    %119 = arith.mulf %118, %108 : vector<4x128xf32>
    %cst_49 = arith.constant 0.254829586 : f32
    %120 = vector.broadcast %cst_49 : f32 to vector<4x128xf32>
    %121 = arith.addf %119, %120 : vector<4x128xf32>
    %122 = arith.mulf %121, %108 : vector<4x128xf32>
    %cst_50 = arith.constant 0.000000e+00 : f32
    %123 = vector.broadcast %cst_50 : f32 to vector<4x128xf32>
    %124 = arith.subf %123, %103 : vector<4x128xf32>
    %125 = arith.mulf %124, %103 : vector<4x128xf32>
    %126 = math.exp %125 : vector<4x128xf32>
    %127 = arith.mulf %122, %126 : vector<4x128xf32>
    %cst_51 = arith.constant 1.000000e+00 : f32
    %128 = vector.broadcast %cst_51 : f32 to vector<4x128xf32>
    %129 = arith.subf %128, %127 : vector<4x128xf32>
    %130 = arith.mulf %102, %129 : vector<4x128xf32>
    %cst_52 = arith.constant 1.000000e+00 : f32
    %131 = vector.broadcast %cst_52 : f32 to vector<4x128xf32>
    %132 = arith.addf %131, %130 : vector<4x128xf32>
    %133 = arith.mulf %95, %132 : vector<4x128xf32>
    %c0_53 = arith.constant 0 : index
    %c0_54 = arith.constant 0 : index
    %134 = vector.load %arg8[%c0_53, %c0_54] : memref<128x32xf32, #tpu.memory_space<vmem>>, vector<128x32xf32>
    %cst_55 = arith.constant dense<0.000000e+00> : vector<4x32xf32>
    %135 = tpu.matmul %133, %134, %cst_55 {dimension_numbers = #tpu.dot_dimension_numbers<[1], [0], [0], [1], [0, 0, 1, 1], [], []>} : vector<4x128xf32>, vector<128x32xf32>, vector<4x32xf32> -> vector<4x32xf32>
    %c0_56 = arith.constant 0 : index
    %c0_57 = arith.constant 0 : index
    %136 = vector.load %arg9[%c0_56, %c0_57] : memref<1x32xf32, #tpu.memory_space<vmem>>, vector<1x32xf32>
    %137 = vector.broadcast %136 : vector<1x32xf32> to vector<4x32xf32>
    %138 = arith.addf %135, %137 : vector<4x32xf32>
    %c0_58 = arith.constant 0 : index
    %c0_59 = arith.constant 0 : index
    %139 = vector.load %arg12[%c0_58, %c0_59] : memref<1x4xf32, #tpu.memory_space<vmem>>, vector<1x4xf32>
    %c0_60 = arith.constant 0 : index
    %c0_61 = arith.constant 0 : index
    %140 = vector.load %arg10[%c0_60, %c0_61] : memref<32x128xf32, #tpu.memory_space<vmem>>, vector<32x128xf32>
    %cst_62 = arith.constant dense<0.000000e+00> : vector<4x128xf32>
    %141 = tpu.matmul %138, %140, %cst_62 {dimension_numbers = #tpu.dot_dimension_numbers<[1], [0], [0], [1], [0, 0, 1, 1], [], []>} : vector<4x32xf32>, vector<32x128xf32>, vector<4x128xf32> -> vector<4x128xf32>
    %c0_63 = arith.constant 0 : index
    %c0_64 = arith.constant 0 : index
    %142 = vector.load %arg11[%c0_63, %c0_64] : memref<4x128xf32, #tpu.memory_space<vmem>>, vector<4x128xf32>
    %143 = arith.mulf %141, %142 : vector<4x128xf32>
    %cst_65 = arith.constant dense<0.000000e+00> : vector<1x128xf32>
    %144 = tpu.matmul %139, %143, %cst_65 {dimension_numbers = #tpu.dot_dimension_numbers<[1], [0], [0], [1], [0, 0, 1, 1], [], []>} : vector<1x4xf32>, vector<4x128xf32>, vector<1x128xf32> -> vector<1x128xf32>
    %c0_66 = arith.constant 0 : index
    %c0_67 = arith.constant 0 : index
    %c0_68 = arith.constant 0 : index
    %145 = vector.load %arg13[%c0_66, %c0_67, %c0_68] : memref<1x1x128xf32, #tpu.memory_space<vmem>>, vector<1x1x128xf32>
    %146 = vector.shape_cast %145 : vector<1x1x128xf32> to vector<1x128xf32>
    %147 = vector.shape_cast %144 : vector<1x128xf32> to vector<1x1x128xf32>
    tpu.vector_store %arg13[%c0_66, %c0_67, %c0_68], %147 {strides = array<i32>} : memref<1x1x128xf32, #tpu.memory_space<vmem>>, vector<1x1x128xf32>,
    return
  }
  func.func @transform_0(%arg0: i32) -> (i32, i32, i32) {
    %c0_i32 = arith.constant 0 : i32
    %c0_i32_0 = arith.constant 0 : i32
    %c0_i32_1 = arith.constant 0 : i32
    return %arg0, %c0_i32, %c0_i32_0 : i32, i32, i32
  }
  func.func @transform_1(%arg0: i32) -> (i32, i32, i32) {
    %c0_i32 = arith.constant 0 : i32
    %c0_i32_0 = arith.constant 0 : i32
    %c0_i32_1 = arith.constant 0 : i32
    %c0_i32_2 = arith.constant 0 : i32
    return %c0_i32, %c0_i32_0, %c0_i32_1 : i32, i32, i32
  }
  func.func @transform_2(%arg0: i32) -> (i32, i32) {
    %c0_i32 = arith.constant 0 : i32
    %c0_i32_0 = arith.constant 0 : i32
    %c0_i32_1 = arith.constant 0 : i32
    return %c0_i32, %c0_i32_0 : i32, i32
  }
  func.func @transform_3(%arg0: i32) -> (i32, i32, i32) {
    %c0_i32 = arith.constant 0 : i32
    %c0_i32_0 = arith.constant 0 : i32
    %c0_i32_1 = arith.constant 0 : i32
    %c0_i32_2 = arith.constant 0 : i32
    return %c0_i32, %c0_i32_0, %c0_i32_1 : i32, i32, i32
  }
  func.func @transform_4(%arg0: i32) -> (i32, i32) {
    %c0_i32 = arith.constant 0 : i32
    %c0_i32_0 = arith.constant 0 : i32
    %c0_i32_1 = arith.constant 0 : i32
    return %c0_i32, %c0_i32_0 : i32, i32
  }
  func.func @transform_5(%arg0: i32) -> (i32, i32) {
    %c0_i32 = arith.constant 0 : i32
    %c0_i32_0 = arith.constant 0 : i32
    %c0_i32_1 = arith.constant 0 : i32
    return %c0_i32, %c0_i32_0 : i32, i32
  }
  func.func @transform_6(%arg0: i32) -> (i32, i32) {
    %c0_i32 = arith.constant 0 : i32
    %c0_i32_0 = arith.constant 0 : i32
    %c0_i32_1 = arith.constant 0 : i32
    return %c0_i32, %c0_i32_0 : i32, i32
  }
  func.func @transform_7(%arg0: i32) -> (i32, i32) {
    %c0_i32 = arith.constant 0 : i32
    %c0_i32_0 = arith.constant 0 : i32
    %c0_i32_1 = arith.constant 0 : i32
    return %c0_i32, %c0_i32_0 : i32, i32
  }
  func.func @transform_8(%arg0: i32) -> (i32, i32) {
    %c0_i32 = arith.constant 0 : i32
    %c0_i32_0 = arith.constant 0 : i32
    %c0_i32_1 = arith.constant 0 : i32
    return %c0_i32, %c0_i32_0 : i32, i32
  }
  func.func @transform_9(%arg0: i32) -> (i32, i32) {
    %c0_i32 = arith.constant 0 : i32
    %c0_i32_0 = arith.constant 0 : i32
    %c0_i32_1 = arith.constant 0 : i32
    return %c0_i32, %c0_i32_0 : i32, i32
  }
  func.func @transform_10(%arg0: i32) -> (i32, i32) {
    %c0_i32 = arith.constant 0 : i32
    %c0_i32_0 = arith.constant 0 : i32
    %c0_i32_1 = arith.constant 0 : i32
    return %c0_i32, %c0_i32_0 : i32, i32
  }
  func.func @transform_11(%arg0: i32) -> (i32, i32) {
    %c0_i32 = arith.constant 0 : i32
    %c0_i32_0 = arith.constant 0 : i32
    %c0_i32_1 = arith.constant 0 : i32
    return %c0_i32, %c0_i32_0 : i32, i32
  }
  func.func @transform_12(%arg0: i32) -> (i32, i32, i32) {
    %c0_i32 = arith.constant 0 : i32
    %c0_i32_0 = arith.constant 0 : i32
    %c0_i32_1 = arith.constant 0 : i32
    return %arg0, %c0_i32, %c0_i32_0 : i32, i32, i32
  }
}

module attributes {stable_mosaic.version = 11 : i64} {
  func.func @_gru_kernel(%arg0: i32, %arg1: memref<1x1x128xf32, #tpu.memory_space<vmem>>, %arg2: memref<1x1x128xf32, #tpu.memory_space<vmem>>, %arg3: memref<8x8xf32, #tpu.memory_space<vmem>>, %arg4: memref<16x1xf32, #tpu.memory_space<vmem>>, %arg5: memref<1x16xf32, #tpu.memory_space<vmem>>, %arg6: memref<16x256xf32, #tpu.memory_space<vmem>>, %arg7: memref<256x16xf32, #tpu.memory_space<vmem>>, %arg8: memref<16x128xf32, #tpu.memory_space<vmem>>, %arg9: memref<8x128xf32, #tpu.memory_space<vmem>>, %arg10: memref<128x256xf32, #tpu.memory_space<vmem>>, %arg11: memref<128x256xf32, #tpu.memory_space<vmem>>, %arg12: memref<1x256xf32, #tpu.memory_space<vmem>>, %arg13: memref<16x8xf32, #tpu.memory_space<vmem>>, %arg14: memref<1x8xf32, #tpu.memory_space<vmem>>, %arg15: memref<8x8xf32, #tpu.memory_space<vmem>>, %arg16: memref<1x8xf32, #tpu.memory_space<vmem>>, %arg17: memref<8x16xf32, #tpu.memory_space<vmem>>, %arg18: memref<1x16xf32, #tpu.memory_space<vmem>>, %arg19: memref<16x8xf32, #tpu.memory_space<vmem>>, %arg20: memref<8x16xf32, #tpu.memory_space<vmem>>, %arg21: memref<1x16xf32, #tpu.memory_space<vmem>>, %arg22: memref<1x8xf32, #tpu.memory_space<vmem>>, %arg23: memref<16x32xf32, #tpu.memory_space<vmem>>, %arg24: memref<3x16x128xf32, #tpu.memory_space<vmem>>, %arg25: memref<16x128xf32, #tpu.memory_space<vmem>>, %arg26: memref<128x16xf32, #tpu.memory_space<vmem>>, %arg27: memref<16x16xf32, #tpu.memory_space<vmem>>, %arg28: memref<128x256xf32, #tpu.memory_space<vmem>>, %arg29: memref<128x256xf32, #tpu.memory_space<vmem>>, %arg30: memref<1x256xf32, #tpu.memory_space<vmem>>, %arg31: memref<16x8xf32, #tpu.memory_space<vmem>>, %arg32: memref<1x8xf32, #tpu.memory_space<vmem>>, %arg33: memref<8x8xf32, #tpu.memory_space<vmem>>, %arg34: memref<1x8xf32, #tpu.memory_space<vmem>>, %arg35: memref<8x16xf32, #tpu.memory_space<vmem>>, %arg36: memref<1x16xf32, #tpu.memory_space<vmem>>, %arg37: memref<16x8xf32, #tpu.memory_space<vmem>>, %arg38: memref<8x16xf32, #tpu.memory_space<vmem>>, %arg39: memref<1x16xf32, #tpu.memory_space<vmem>>, %arg40: memref<1x8xf32, #tpu.memory_space<vmem>>, %arg41: memref<16x32xf32, #tpu.memory_space<vmem>>, %arg42: memref<3x16x64xf32, #tpu.memory_space<vmem>>, %arg43: memref<16x64xf32, #tpu.memory_space<vmem>>, %arg44: memref<64x8xf32, #tpu.memory_space<vmem>>, %arg45: memref<16x8xf32, #tpu.memory_space<vmem>>, %arg46: memref<1x1x128xf32, #tpu.memory_space<vmem>>) attributes {dimension_semantics = [#tpu.dimension_semantics<parallel>], iteration_bounds = array<i64: 2>, scalar_prefetch = 0 : i64, scratch_operands = 0 : i64, tpu.core_type = #tpu.core_type<tc>, window_params = [{transform_indices = @transform_0, window_bounds = array<i64: 1, 1, 128>}, {transform_indices = @transform_1, window_bounds = array<i64: 1, 1, 128>}, {pipeline_mode = #tpu.pipeline_mode<synchronous>, transform_indices = @transform_2, window_bounds = array<i64: 8, 8>}, {pipeline_mode = #tpu.pipeline_mode<synchronous>, transform_indices = @transform_3, window_bounds = array<i64: 16, 1>}, {pipeline_mode = #tpu.pipeline_mode<synchronous>, transform_indices = @transform_4, window_bounds = array<i64: 1, 16>}, {pipeline_mode = #tpu.pipeline_mode<synchronous>, transform_indices = @transform_5, window_bounds = array<i64: 16, 256>}, {pipeline_mode = #tpu.pipeline_mode<synchronous>, transform_indices = @transform_6, window_bounds = array<i64: 256, 16>}, {pipeline_mode = #tpu.pipeline_mode<synchronous>, transform_indices = @transform_7, window_bounds = array<i64: 16, 128>}, {pipeline_mode = #tpu.pipeline_mode<synchronous>, transform_indices = @transform_8, window_bounds = array<i64: 8, 128>}, {pipeline_mode = #tpu.pipeline_mode<synchronous>, transform_indices = @transform_9, window_bounds = array<i64: 128, 256>}, {pipeline_mode = #tpu.pipeline_mode<synchronous>, transform_indices = @transform_10, window_bounds = array<i64: 128, 256>}, {pipeline_mode = #tpu.pipeline_mode<synchronous>, transform_indices = @transform_11, window_bounds = array<i64: 1, 256>}, {pipeline_mode = #tpu.pipeline_mode<synchronous>, transform_indices = @transform_12, window_bounds = array<i64: 16, 8>}, {pipeline_mode = #tpu.pipeline_mode<synchronous>, transform_indices = @transform_13, window_bounds = array<i64: 1, 8>}, {pipeline_mode = #tpu.pipeline_mode<synchronous>, transform_indices = @transform_14, window_bounds = array<i64: 8, 8>}, {pipeline_mode = #tpu.pipeline_mode<synchronous>, transform_indices = @transform_15, window_bounds = array<i64: 1, 8>}, {pipeline_mode = #tpu.pipeline_mode<synchronous>, transform_indices = @transform_16, window_bounds = array<i64: 8, 16>}, {pipeline_mode = #tpu.pipeline_mode<synchronous>, transform_indices = @transform_17, window_bounds = array<i64: 1, 16>}, {pipeline_mode = #tpu.pipeline_mode<synchronous>, transform_indices = @transform_18, window_bounds = array<i64: 16, 8>}, {pipeline_mode = #tpu.pipeline_mode<synchronous>, transform_indices = @transform_19, window_bounds = array<i64: 8, 16>}, {pipeline_mode = #tpu.pipeline_mode<synchronous>, transform_indices = @transform_20, window_bounds = array<i64: 1, 16>}, {pipeline_mode = #tpu.pipeline_mode<synchronous>, transform_indices = @transform_21, window_bounds = array<i64: 1, 8>}, {pipeline_mode = #tpu.pipeline_mode<synchronous>, transform_indices = @transform_22, window_bounds = array<i64: 16, 32>}, {pipeline_mode = #tpu.pipeline_mode<synchronous>, transform_indices = @transform_23, window_bounds = array<i64: 3, 16, 128>}, {pipeline_mode = #tpu.pipeline_mode<synchronous>, transform_indices = @transform_24, window_bounds = array<i64: 16, 128>}, {pipeline_mode = #tpu.pipeline_mode<synchronous>, transform_indices = @transform_25, window_bounds = array<i64: 128, 16>}, {pipeline_mode = #tpu.pipeline_mode<synchronous>, transform_indices = @transform_26, window_bounds = array<i64: 16, 16>}, {pipeline_mode = #tpu.pipeline_mode<synchronous>, transform_indices = @transform_27, window_bounds = array<i64: 128, 256>}, {pipeline_mode = #tpu.pipeline_mode<synchronous>, transform_indices = @transform_28, window_bounds = array<i64: 128, 256>}, {pipeline_mode = #tpu.pipeline_mode<synchronous>, transform_indices = @transform_29, window_bounds = array<i64: 1, 256>}, {pipeline_mode = #tpu.pipeline_mode<synchronous>, transform_indices = @transform_30, window_bounds = array<i64: 16, 8>}, {pipeline_mode = #tpu.pipeline_mode<synchronous>, transform_indices = @transform_31, window_bounds = array<i64: 1, 8>}, {pipeline_mode = #tpu.pipeline_mode<synchronous>, transform_indices = @transform_32, window_bounds = array<i64: 8, 8>}, {pipeline_mode = #tpu.pipeline_mode<synchronous>, transform_indices = @transform_33, window_bounds = array<i64: 1, 8>}, {pipeline_mode = #tpu.pipeline_mode<synchronous>, transform_indices = @transform_34, window_bounds = array<i64: 8, 16>}, {pipeline_mode = #tpu.pipeline_mode<synchronous>, transform_indices = @transform_35, window_bounds = array<i64: 1, 16>}, {pipeline_mode = #tpu.pipeline_mode<synchronous>, transform_indices = @transform_36, window_bounds = array<i64: 16, 8>}, {pipeline_mode = #tpu.pipeline_mode<synchronous>, transform_indices = @transform_37, window_bounds = array<i64: 8, 16>}, {pipeline_mode = #tpu.pipeline_mode<synchronous>, transform_indices = @transform_38, window_bounds = array<i64: 1, 16>}, {pipeline_mode = #tpu.pipeline_mode<synchronous>, transform_indices = @transform_39, window_bounds = array<i64: 1, 8>}, {pipeline_mode = #tpu.pipeline_mode<synchronous>, transform_indices = @transform_40, window_bounds = array<i64: 16, 32>}, {pipeline_mode = #tpu.pipeline_mode<synchronous>, transform_indices = @transform_41, window_bounds = array<i64: 3, 16, 64>}, {pipeline_mode = #tpu.pipeline_mode<synchronous>, transform_indices = @transform_42, window_bounds = array<i64: 16, 64>}, {pipeline_mode = #tpu.pipeline_mode<synchronous>, transform_indices = @transform_43, window_bounds = array<i64: 64, 8>}, {pipeline_mode = #tpu.pipeline_mode<synchronous>, transform_indices = @transform_44, window_bounds = array<i64: 16, 8>}, {transform_indices = @transform_45, window_bounds = array<i64: 1, 1, 128>}]} {
    %c0 = arith.constant 0 : index
    %c0_0 = arith.constant 0 : index
    %0 = vector.load %arg6[%c0, %c0_0] : memref<16x256xf32, #tpu.memory_space<vmem>>, vector<16x256xf32>
    %c0_1 = arith.constant 0 : index
    %c0_2 = arith.constant 0 : index
    %1 = vector.load %arg7[%c0_1, %c0_2] : memref<256x16xf32, #tpu.memory_space<vmem>>, vector<256x16xf32>
    %c0_3 = arith.constant 0 : index
    %c0_4 = arith.constant 0 : index
    %2 = vector.load %arg8[%c0_3, %c0_4] : memref<16x128xf32, #tpu.memory_space<vmem>>, vector<16x128xf32>
    %c0_5 = arith.constant 0 : index
    %c0_6 = arith.constant 0 : index
    %3 = vector.load %arg9[%c0_5, %c0_6] : memref<8x128xf32, #tpu.memory_space<vmem>>, vector<8x128xf32>
    %c0_7 = arith.constant 0 : index
    %c0_8 = arith.constant 0 : index
    %4 = vector.load %arg10[%c0_7, %c0_8] : memref<128x256xf32, #tpu.memory_space<vmem>>, vector<128x256xf32>
    %c0_9 = arith.constant 0 : index
    %c0_10 = arith.constant 0 : index
    %5 = vector.load %arg11[%c0_9, %c0_10] : memref<128x256xf32, #tpu.memory_space<vmem>>, vector<128x256xf32>
    %c0_11 = arith.constant 0 : index
    %c0_12 = arith.constant 0 : index
    %6 = vector.load %arg12[%c0_11, %c0_12] : memref<1x256xf32, #tpu.memory_space<vmem>>, vector<1x256xf32>
    %c0_13 = arith.constant 0 : index
    %c0_14 = arith.constant 0 : index
    %7 = vector.load %arg13[%c0_13, %c0_14] : memref<16x8xf32, #tpu.memory_space<vmem>>, vector<16x8xf32>
    %c0_15 = arith.constant 0 : index
    %c0_16 = arith.constant 0 : index
    %8 = vector.load %arg14[%c0_15, %c0_16] : memref<1x8xf32, #tpu.memory_space<vmem>>, vector<1x8xf32>
    %c0_17 = arith.constant 0 : index
    %c0_18 = arith.constant 0 : index
    %9 = vector.load %arg15[%c0_17, %c0_18] : memref<8x8xf32, #tpu.memory_space<vmem>>, vector<8x8xf32>
    %c0_19 = arith.constant 0 : index
    %c0_20 = arith.constant 0 : index
    %10 = vector.load %arg16[%c0_19, %c0_20] : memref<1x8xf32, #tpu.memory_space<vmem>>, vector<1x8xf32>
    %c0_21 = arith.constant 0 : index
    %c0_22 = arith.constant 0 : index
    %11 = vector.load %arg17[%c0_21, %c0_22] : memref<8x16xf32, #tpu.memory_space<vmem>>, vector<8x16xf32>
    %c0_23 = arith.constant 0 : index
    %c0_24 = arith.constant 0 : index
    %12 = vector.load %arg18[%c0_23, %c0_24] : memref<1x16xf32, #tpu.memory_space<vmem>>, vector<1x16xf32>
    %c0_25 = arith.constant 0 : index
    %c0_26 = arith.constant 0 : index
    %13 = vector.load %arg19[%c0_25, %c0_26] : memref<16x8xf32, #tpu.memory_space<vmem>>, vector<16x8xf32>
    %c0_27 = arith.constant 0 : index
    %c0_28 = arith.constant 0 : index
    %14 = vector.load %arg20[%c0_27, %c0_28] : memref<8x16xf32, #tpu.memory_space<vmem>>, vector<8x16xf32>
    %c0_29 = arith.constant 0 : index
    %c0_30 = arith.constant 0 : index
    %15 = vector.load %arg21[%c0_29, %c0_30] : memref<1x16xf32, #tpu.memory_space<vmem>>, vector<1x16xf32>
    %c0_31 = arith.constant 0 : index
    %c0_32 = arith.constant 0 : index
    %16 = vector.load %arg22[%c0_31, %c0_32] : memref<1x8xf32, #tpu.memory_space<vmem>>, vector<1x8xf32>
    %c0_33 = arith.constant 0 : index
    %c0_34 = arith.constant 0 : index
    %17 = vector.load %arg23[%c0_33, %c0_34] : memref<16x32xf32, #tpu.memory_space<vmem>>, vector<16x32xf32>
    %c0_35 = arith.constant 0 : index
    %c0_36 = arith.constant 0 : index
    %c0_37 = arith.constant 0 : index
    %18 = vector.load %arg24[%c0_35, %c0_36, %c0_37] : memref<3x16x128xf32, #tpu.memory_space<vmem>>, vector<3x16x128xf32>
    %c0_38 = arith.constant 0 : index
    %c0_39 = arith.constant 0 : index
    %19 = vector.load %arg25[%c0_38, %c0_39] : memref<16x128xf32, #tpu.memory_space<vmem>>, vector<16x128xf32>
    %c0_40 = arith.constant 0 : index
    %c0_41 = arith.constant 0 : index
    %20 = vector.load %arg26[%c0_40, %c0_41] : memref<128x16xf32, #tpu.memory_space<vmem>>, vector<128x16xf32>
    %c0_42 = arith.constant 0 : index
    %c0_43 = arith.constant 0 : index
    %21 = vector.load %arg27[%c0_42, %c0_43] : memref<16x16xf32, #tpu.memory_space<vmem>>, vector<16x16xf32>
    %c0_44 = arith.constant 0 : index
    %c0_45 = arith.constant 0 : index
    %22 = vector.load %arg28[%c0_44, %c0_45] : memref<128x256xf32, #tpu.memory_space<vmem>>, vector<128x256xf32>
    %c0_46 = arith.constant 0 : index
    %c0_47 = arith.constant 0 : index
    %23 = vector.load %arg29[%c0_46, %c0_47] : memref<128x256xf32, #tpu.memory_space<vmem>>, vector<128x256xf32>
    %c0_48 = arith.constant 0 : index
    %c0_49 = arith.constant 0 : index
    %24 = vector.load %arg30[%c0_48, %c0_49] : memref<1x256xf32, #tpu.memory_space<vmem>>, vector<1x256xf32>
    %c0_50 = arith.constant 0 : index
    %c0_51 = arith.constant 0 : index
    %25 = vector.load %arg31[%c0_50, %c0_51] : memref<16x8xf32, #tpu.memory_space<vmem>>, vector<16x8xf32>
    %c0_52 = arith.constant 0 : index
    %c0_53 = arith.constant 0 : index
    %26 = vector.load %arg32[%c0_52, %c0_53] : memref<1x8xf32, #tpu.memory_space<vmem>>, vector<1x8xf32>
    %c0_54 = arith.constant 0 : index
    %c0_55 = arith.constant 0 : index
    %27 = vector.load %arg33[%c0_54, %c0_55] : memref<8x8xf32, #tpu.memory_space<vmem>>, vector<8x8xf32>
    %c0_56 = arith.constant 0 : index
    %c0_57 = arith.constant 0 : index
    %28 = vector.load %arg34[%c0_56, %c0_57] : memref<1x8xf32, #tpu.memory_space<vmem>>, vector<1x8xf32>
    %c0_58 = arith.constant 0 : index
    %c0_59 = arith.constant 0 : index
    %29 = vector.load %arg35[%c0_58, %c0_59] : memref<8x16xf32, #tpu.memory_space<vmem>>, vector<8x16xf32>
    %c0_60 = arith.constant 0 : index
    %c0_61 = arith.constant 0 : index
    %30 = vector.load %arg36[%c0_60, %c0_61] : memref<1x16xf32, #tpu.memory_space<vmem>>, vector<1x16xf32>
    %c0_62 = arith.constant 0 : index
    %c0_63 = arith.constant 0 : index
    %31 = vector.load %arg37[%c0_62, %c0_63] : memref<16x8xf32, #tpu.memory_space<vmem>>, vector<16x8xf32>
    %c0_64 = arith.constant 0 : index
    %c0_65 = arith.constant 0 : index
    %32 = vector.load %arg38[%c0_64, %c0_65] : memref<8x16xf32, #tpu.memory_space<vmem>>, vector<8x16xf32>
    %c0_66 = arith.constant 0 : index
    %c0_67 = arith.constant 0 : index
    %33 = vector.load %arg39[%c0_66, %c0_67] : memref<1x16xf32, #tpu.memory_space<vmem>>, vector<1x16xf32>
    %c0_68 = arith.constant 0 : index
    %c0_69 = arith.constant 0 : index
    %34 = vector.load %arg40[%c0_68, %c0_69] : memref<1x8xf32, #tpu.memory_space<vmem>>, vector<1x8xf32>
    %c0_70 = arith.constant 0 : index
    %c0_71 = arith.constant 0 : index
    %35 = vector.load %arg41[%c0_70, %c0_71] : memref<16x32xf32, #tpu.memory_space<vmem>>, vector<16x32xf32>
    %c0_72 = arith.constant 0 : index
    %c0_73 = arith.constant 0 : index
    %c0_74 = arith.constant 0 : index
    %36 = vector.load %arg42[%c0_72, %c0_73, %c0_74] : memref<3x16x64xf32, #tpu.memory_space<vmem>>, vector<3x16x64xf32>
    %c0_75 = arith.constant 0 : index
    %c0_76 = arith.constant 0 : index
    %37 = vector.load %arg43[%c0_75, %c0_76] : memref<16x64xf32, #tpu.memory_space<vmem>>, vector<16x64xf32>
    %c0_77 = arith.constant 0 : index
    %c0_78 = arith.constant 0 : index
    %38 = vector.load %arg44[%c0_77, %c0_78] : memref<64x8xf32, #tpu.memory_space<vmem>>, vector<64x8xf32>
    %c0_79 = arith.constant 0 : index
    %c0_80 = arith.constant 0 : index
    %39 = vector.load %arg45[%c0_79, %c0_80] : memref<16x8xf32, #tpu.memory_space<vmem>>, vector<16x8xf32>
    %c0_81 = arith.constant 0 : index
    %c0_82 = arith.constant 0 : index
    %c0_83 = arith.constant 0 : index
    %40 = vector.load %arg1[%c0_81, %c0_82, %c0_83] : memref<1x1x128xf32, #tpu.memory_space<vmem>>, vector<1x1x128xf32>
    %41 = vector.shape_cast %40 : vector<1x1x128xf32> to vector<1x128xf32>
    %c0_84 = arith.constant 0 : index
    %c0_85 = arith.constant 0 : index
    %c0_86 = arith.constant 0 : index
    %42 = vector.load %arg2[%c0_84, %c0_85, %c0_86] : memref<1x1x128xf32, #tpu.memory_space<vmem>>, vector<1x1x128xf32>
    %43 = vector.shape_cast %42 : vector<1x1x128xf32> to vector<1x128xf32>
    %c0_87 = arith.constant 0 : index
    %c0_88 = arith.constant 0 : index
    %44 = vector.load %arg3[%c0_87, %c0_88] : memref<8x8xf32, #tpu.memory_space<vmem>>, vector<8x8xf32>
    %cst = arith.constant dense<0.000000e+00> : vector<1x256xf32>
    %45 = tpu.matmul %41, %4, %cst {dimension_numbers = #tpu.dot_dimension_numbers<[1], [0], [0], [1], [0, 0, 1, 1], [], []>} : vector<1x128xf32>, vector<128x256xf32>, vector<1x256xf32> -> vector<1x256xf32>
    %cst_89 = arith.constant dense<0.000000e+00> : vector<1x256xf32>
    %46 = tpu.matmul %43, %5, %cst_89 {dimension_numbers = #tpu.dot_dimension_numbers<[1], [0], [0], [1], [0, 0, 1, 1], [], []>} : vector<1x128xf32>, vector<128x256xf32>, vector<1x256xf32> -> vector<1x256xf32>
    %47 = arith.addf %45, %46 : vector<1x256xf32>
    %48 = arith.addf %47, %6 : vector<1x256xf32>
    %49 = vector.shape_cast %48 : vector<1x256xf32> to vector<1x256xf32>
    %50 = vector.broadcast %49 : vector<1x256xf32> to vector<16x256xf32>
    %51 = arith.mulf %50, %0 : vector<16x256xf32>
    %cst_90 = arith.constant dense<0.000000e+00> : vector<16x16xf32>
    %52 = tpu.matmul %51, %1, %cst_90 {dimension_numbers = #tpu.dot_dimension_numbers<[1], [0], [0], [1], [0, 0, 1, 1], [], []>} : vector<16x256xf32>, vector<256x16xf32>, vector<16x16xf32> -> vector<16x16xf32>
    %cst_91 = arith.constant dense<0.000000e+00> : vector<16x8xf32>
    %53 = tpu.matmul %52, %7, %cst_91 {dimension_numbers = #tpu.dot_dimension_numbers<[1], [0], [0], [1], [0, 0, 1, 1], [], []>} : vector<16x16xf32>, vector<16x8xf32>, vector<16x8xf32> -> vector<16x8xf32>
    %54 = vector.broadcast %8 : vector<1x8xf32> to vector<16x8xf32>
    %55 = arith.addf %53, %54 : vector<16x8xf32>
    %56 = arith.negf %55 : vector<16x8xf32>
    %57 = math.exp %56 : vector<16x8xf32>
    %cst_92 = arith.constant 1.000000e+00 : f32
    %58 = vector.broadcast %cst_92 : f32 to vector<16x8xf32>
    %59 = arith.addf %58, %57 : vector<16x8xf32>
    %60 = arith.divf %58, %59 : vector<16x8xf32>
    %cst_93 = arith.constant dense<0.000000e+00> : vector<16x8xf32>
    %61 = tpu.matmul %60, %9, %cst_93 {dimension_numbers = #tpu.dot_dimension_numbers<[1], [0], [0], [1], [0, 0, 1, 1], [], []>} : vector<16x8xf32>, vector<8x8xf32>, vector<16x8xf32> -> vector<16x8xf32>
    %62 = vector.broadcast %10 : vector<1x8xf32> to vector<16x8xf32>
    %63 = arith.addf %61, %62 : vector<16x8xf32>
    %64 = arith.negf %63 : vector<16x8xf32>
    %65 = math.exp %64 : vector<16x8xf32>
    %cst_94 = arith.constant 1.000000e+00 : f32
    %66 = vector.broadcast %cst_94 : f32 to vector<16x8xf32>
    %67 = arith.addf %66, %65 : vector<16x8xf32>
    %68 = arith.divf %66, %67 : vector<16x8xf32>
    %cst_95 = arith.constant dense<0.000000e+00> : vector<16x16xf32>
    %69 = tpu.matmul %68, %11, %cst_95 {dimension_numbers = #tpu.dot_dimension_numbers<[1], [0], [0], [1], [0, 0, 1, 1], [], []>} : vector<16x8xf32>, vector<8x16xf32>, vector<16x16xf32> -> vector<16x16xf32>
    %70 = vector.broadcast %12 : vector<1x16xf32> to vector<16x16xf32>
    %71 = arith.addf %69, %70 : vector<16x16xf32>
    %cst_96 = arith.constant dense<0.000000e+00> : vector<16x8xf32>
    %72 = tpu.matmul %71, %13, %cst_96 {dimension_numbers = #tpu.dot_dimension_numbers<[1], [0], [0], [1], [0, 0, 1, 1], [], []>} : vector<16x16xf32>, vector<16x8xf32>, vector<16x8xf32> -> vector<16x8xf32>
    %cst_97 = arith.constant dense<0.000000e+00> : vector<16x8xf32>
    %73 = tpu.matmul %72, %44, %cst_97 {dimension_numbers = #tpu.dot_dimension_numbers<[1], [1], [0], [0], [0, 0, 1, 0], [], []>} : vector<16x8xf32>, vector<8x8xf32>, vector<16x8xf32> -> vector<16x8xf32>
    %cst_98 = arith.constant dense<0xFF800000> : vector<16xf32>
    %74 = vector.multi_reduction <maximumf>, %73, %cst_98 [1] : vector<16x8xf32> to vector<16xf32>
    %75 = vector.shape_cast %74 : vector<16xf32> to vector<16x1xf32>
    %76 = vector.broadcast %75 : vector<16x1xf32> to vector<16x8xf32>
    %77 = arith.subf %73, %76 : vector<16x8xf32>
    %78 = math.exp %77 : vector<16x8xf32>
    %cst_99 = arith.constant dense<0.000000e+00> : vector<16xf32>
    %79 = vector.multi_reduction <add>, %78, %cst_99 [1] : vector<16x8xf32> to vector<16xf32>
    %80 = vector.shape_cast %79 : vector<16xf32> to vector<16x1xf32>
    %81 = tpu.reciprocal %80 {approx = true} : vector<16x1xf32> -> vector<16x1xf32>
    %82 = vector.broadcast %81 : vector<16x1xf32> to vector<16x8xf32>
    %83 = arith.mulf %78, %82 : vector<16x8xf32>
    %cst_100 = arith.constant dense<0.000000e+00> : vector<16x8xf32>
    %84 = tpu.matmul %83, %44, %cst_100 {dimension_numbers = #tpu.dot_dimension_numbers<[1], [0], [0], [1], [0, 0, 1, 1], [], []>} : vector<16x8xf32>, vector<8x8xf32>, vector<16x8xf32> -> vector<16x8xf32>
    %85 = vector.extract_strided_slice %17 {offsets = [0, 0], sizes = [16, 8], strides = [1, 1]} : vector<16x32xf32> to vector<16x8xf32>
    %86 = vector.extract_strided_slice %17 {offsets = [0, 8], sizes = [16, 8], strides = [1, 1]} : vector<16x32xf32> to vector<16x8xf32>
    %87 = vector.extract_strided_slice %17 {offsets = [0, 16], sizes = [16, 8], strides = [1, 1]} : vector<16x32xf32> to vector<16x8xf32>
    %88 = vector.extract_strided_slice %17 {offsets = [0, 24], sizes = [16, 8], strides = [1, 1]} : vector<16x32xf32> to vector<16x8xf32>
    %cst_101 = arith.constant dense<0.000000e+00> : vector<16x16xf32>
    %89 = tpu.matmul %84, %14, %cst_101 {dimension_numbers = #tpu.dot_dimension_numbers<[1], [0], [0], [1], [0, 0, 1, 1], [], []>} : vector<16x8xf32>, vector<8x16xf32>, vector<16x16xf32> -> vector<16x16xf32>
    %90 = vector.broadcast %15 : vector<1x16xf32> to vector<16x16xf32>
    %91 = arith.addf %89, %90 : vector<16x16xf32>
    %92 = arith.addf %86, %84 : vector<16x8xf32>
    %93 = vector.broadcast %16 : vector<1x8xf32> to vector<16x8xf32>
    %94 = arith.mulf %84, %93 : vector<16x8xf32>
    %95 = arith.addf %92, %94 : vector<16x8xf32>
    %96 = arith.negf %95 : vector<16x8xf32>
    %97 = math.exp %96 : vector<16x8xf32>
    %cst_102 = arith.constant 1.000000e+00 : f32
    %98 = vector.broadcast %cst_102 : f32 to vector<16x8xf32>
    %99 = arith.addf %98, %97 : vector<16x8xf32>
    %100 = arith.divf %98, %99 : vector<16x8xf32>
    %101 = vector.extract_strided_slice %91 {offsets = [0, 0], sizes = [16, 8], strides = [1, 1]} : vector<16x16xf32> to vector<16x8xf32>
    %102 = arith.addf %101, %87 : vector<16x8xf32>
    %103 = arith.negf %102 : vector<16x8xf32>
    %104 = math.exp %103 : vector<16x8xf32>
    %cst_103 = arith.constant 1.000000e+00 : f32
    %105 = vector.broadcast %cst_103 : f32 to vector<16x8xf32>
    %106 = arith.addf %105, %104 : vector<16x8xf32>
    %107 = arith.divf %105, %106 : vector<16x8xf32>
    %108 = vector.extract_strided_slice %91 {offsets = [0, 8], sizes = [16, 8], strides = [1, 1]} : vector<16x16xf32> to vector<16x8xf32>
    %109 = arith.mulf %107, %88 : vector<16x8xf32>
    %110 = arith.addf %108, %109 : vector<16x8xf32>
    %111 = math.tanh %110 : vector<16x8xf32>
    %112 = arith.mulf %100, %85 : vector<16x8xf32>
    %cst_104 = arith.constant 1.000000e+00 : f32
    %113 = vector.broadcast %cst_104 : f32 to vector<16x8xf32>
    %114 = arith.subf %113, %100 : vector<16x8xf32>
    %115 = arith.mulf %114, %111 : vector<16x8xf32>
    %116 = arith.addf %112, %115 : vector<16x8xf32>
    %cst_105 = arith.constant dense<0.000000e+00> : vector<16x16xf32>
    %117 = tpu.matmul %116, %116, %cst_105 {dimension_numbers = #tpu.dot_dimension_numbers<[1], [1], [0], [0], [0, 0, 1, 0], [], []>} : vector<16x8xf32>, vector<16x8xf32>, vector<16x16xf32> -> vector<16x16xf32>
    %cst_106 = arith.constant 0.000000e+00 : f32
    %118 = vector.broadcast %cst_106 : f32 to vector<16x16xf32>
    %119 = arith.maximumf %117, %118 : vector<16x16xf32>
    %cst_107 = arith.constant dense<0xFF800000> : vector<16xf32>
    %120 = vector.multi_reduction <maximumf>, %119, %cst_107 [1] : vector<16x16xf32> to vector<16xf32>
    %121 = vector.shape_cast %120 : vector<16xf32> to vector<16x1xf32>
    %122 = vector.broadcast %121 : vector<16x1xf32> to vector<16x16xf32>
    %123 = arith.subf %119, %122 : vector<16x16xf32>
    %124 = math.exp %123 : vector<16x16xf32>
    %cst_108 = arith.constant dense<0.000000e+00> : vector<16xf32>
    %125 = vector.multi_reduction <add>, %124, %cst_108 [1] : vector<16x16xf32> to vector<16xf32>
    %126 = vector.shape_cast %125 : vector<16xf32> to vector<16x1xf32>
    %127 = tpu.reciprocal %126 {approx = true} : vector<16x1xf32> -> vector<16x1xf32>
    %128 = vector.broadcast %127 : vector<16x1xf32> to vector<16x16xf32>
    %129 = arith.mulf %124, %128 : vector<16x16xf32>
    %130 = vector.extract_strided_slice %18 {offsets = [0, 0, 0], sizes = [1, 16, 128], strides = [1, 1, 1]} : vector<3x16x128xf32> to vector<1x16x128xf32>
    %131 = vector.shape_cast %130 : vector<1x16x128xf32> to vector<16x128xf32>
    %cst_109 = arith.constant dense<0.000000e+00> : vector<16x128xf32>
    %132 = tpu.matmul %52, %131, %cst_109 {dimension_numbers = #tpu.dot_dimension_numbers<[1], [0], [0], [1], [0, 0, 1, 1], [], []>} : vector<16x16xf32>, vector<16x128xf32>, vector<16x128xf32> -> vector<16x128xf32>
    %133 = arith.mulf %19, %132 : vector<16x128xf32>
    %cst_110 = arith.constant dense<0.000000e+00> : vector<16x16xf32>
    %134 = tpu.matmul %133, %20, %cst_110 {dimension_numbers = #tpu.dot_dimension_numbers<[1], [0], [0], [1], [0, 0, 1, 1], [], []>} : vector<16x128xf32>, vector<128x16xf32>, vector<16x16xf32> -> vector<16x16xf32>
    %135 = arith.addf %21, %134 : vector<16x16xf32>
    %cst_111 = arith.constant dense<0.000000e+00> : vector<16x16xf32>
    %136 = tpu.matmul %129, %52, %cst_111 {dimension_numbers = #tpu.dot_dimension_numbers<[1], [0], [0], [1], [0, 0, 1, 1], [], []>} : vector<16x16xf32>, vector<16x16xf32>, vector<16x16xf32> -> vector<16x16xf32>
    %137 = vector.extract_strided_slice %18 {offsets = [1, 0, 0], sizes = [1, 16, 128], strides = [1, 1, 1]} : vector<3x16x128xf32> to vector<1x16x128xf32>
    %138 = vector.shape_cast %137 : vector<1x16x128xf32> to vector<16x128xf32>
    %cst_112 = arith.constant dense<0.000000e+00> : vector<16x128xf32>
    %139 = tpu.matmul %136, %138, %cst_112 {dimension_numbers = #tpu.dot_dimension_numbers<[1], [0], [0], [1], [0, 0, 1, 1], [], []>} : vector<16x16xf32>, vector<16x128xf32>, vector<16x128xf32> -> vector<16x128xf32>
    %140 = arith.mulf %19, %139 : vector<16x128xf32>
    %cst_113 = arith.constant dense<0.000000e+00> : vector<16x16xf32>
    %141 = tpu.matmul %140, %20, %cst_113 {dimension_numbers = #tpu.dot_dimension_numbers<[1], [0], [0], [1], [0, 0, 1, 1], [], []>} : vector<16x128xf32>, vector<128x16xf32>, vector<16x16xf32> -> vector<16x16xf32>
    %142 = arith.addf %135, %141 : vector<16x16xf32>
    %cst_114 = arith.constant dense<0.000000e+00> : vector<16x16xf32>
    %143 = tpu.matmul %129, %136, %cst_114 {dimension_numbers = #tpu.dot_dimension_numbers<[1], [0], [0], [1], [0, 0, 1, 1], [], []>} : vector<16x16xf32>, vector<16x16xf32>, vector<16x16xf32> -> vector<16x16xf32>
    %cst_115 = arith.constant 2.000000e+00 : f32
    %144 = vector.broadcast %cst_115 : f32 to vector<16x16xf32>
    %145 = arith.mulf %144, %143 : vector<16x16xf32>
    %146 = arith.subf %145, %52 : vector<16x16xf32>
    %147 = vector.extract_strided_slice %18 {offsets = [2, 0, 0], sizes = [1, 16, 128], strides = [1, 1, 1]} : vector<3x16x128xf32> to vector<1x16x128xf32>
    %148 = vector.shape_cast %147 : vector<1x16x128xf32> to vector<16x128xf32>
    %cst_116 = arith.constant dense<0.000000e+00> : vector<16x128xf32>
    %149 = tpu.matmul %146, %148, %cst_116 {dimension_numbers = #tpu.dot_dimension_numbers<[1], [0], [0], [1], [0, 0, 1, 1], [], []>} : vector<16x16xf32>, vector<16x128xf32>, vector<16x128xf32> -> vector<16x128xf32>
    %150 = arith.mulf %19, %149 : vector<16x128xf32>
    %cst_117 = arith.constant dense<0.000000e+00> : vector<16x16xf32>
    %151 = tpu.matmul %150, %20, %cst_117 {dimension_numbers = #tpu.dot_dimension_numbers<[1], [0], [0], [1], [0, 0, 1, 1], [], []>} : vector<16x128xf32>, vector<128x16xf32>, vector<16x16xf32> -> vector<16x16xf32>
    %152 = arith.addf %142, %151 : vector<16x16xf32>
    %153 = arith.negf %152 : vector<16x16xf32>
    %154 = math.exp %153 : vector<16x16xf32>
    %cst_118 = arith.constant 1.000000e+00 : f32
    %155 = vector.broadcast %cst_118 : f32 to vector<16x16xf32>
    %156 = arith.addf %155, %154 : vector<16x16xf32>
    %157 = arith.divf %155, %156 : vector<16x16xf32>
    %158 = vector.extract_strided_slice %157 {offsets = [0, 0], sizes = [16, 8], strides = [1, 1]} : vector<16x16xf32> to vector<16x8xf32>
    %cst_119 = arith.constant dense<0.000000e+00> : vector<16x128xf32>
    %159 = tpu.matmul %158, %3, %cst_119 {dimension_numbers = #tpu.dot_dimension_numbers<[1], [0], [0], [1], [0, 0, 1, 1], [], []>} : vector<16x8xf32>, vector<8x128xf32>, vector<16x128xf32> -> vector<16x128xf32>
    %160 = arith.mulf %159, %2 : vector<16x128xf32>
    %cst_120 = arith.constant dense<0.000000e+00> : vector<128xf32>
    %161 = vector.multi_reduction <add>, %160, %cst_120 [0] : vector<16x128xf32> to vector<128xf32>
    %162 = vector.shape_cast %161 : vector<128xf32> to vector<1x128xf32>
    %163 = vector.extract_strided_slice %157 {offsets = [0, 8], sizes = [16, 8], strides = [1, 1]} : vector<16x16xf32> to vector<16x8xf32>
    %cst_121 = arith.constant dense<0.000000e+00> : vector<16x128xf32>
    %164 = tpu.matmul %163, %3, %cst_121 {dimension_numbers = #tpu.dot_dimension_numbers<[1], [0], [0], [1], [0, 0, 1, 1], [], []>} : vector<16x8xf32>, vector<8x128xf32>, vector<16x128xf32> -> vector<16x128xf32>
    %165 = arith.mulf %164, %2 : vector<16x128xf32>
    %cst_122 = arith.constant dense<0.000000e+00> : vector<128xf32>
    %166 = vector.multi_reduction <add>, %165, %cst_122 [0] : vector<16x128xf32> to vector<128xf32>
    %167 = vector.shape_cast %166 : vector<128xf32> to vector<1x128xf32>
    %168 = arith.mulf %162, %43 : vector<1x128xf32>
    %cst_123 = arith.constant dense<0.000000e+00> : vector<1x256xf32>
    %169 = tpu.matmul %41, %22, %cst_123 {dimension_numbers = #tpu.dot_dimension_numbers<[1], [0], [0], [1], [0, 0, 1, 1], [], []>} : vector<1x128xf32>, vector<128x256xf32>, vector<1x256xf32> -> vector<1x256xf32>
    %cst_124 = arith.constant dense<0.000000e+00> : vector<1x256xf32>
    %170 = tpu.matmul %168, %23, %cst_124 {dimension_numbers = #tpu.dot_dimension_numbers<[1], [0], [0], [1], [0, 0, 1, 1], [], []>} : vector<1x128xf32>, vector<128x256xf32>, vector<1x256xf32> -> vector<1x256xf32>
    %171 = arith.addf %169, %170 : vector<1x256xf32>
    %172 = arith.addf %171, %24 : vector<1x256xf32>
    %173 = vector.shape_cast %172 : vector<1x256xf32> to vector<1x256xf32>
    %174 = vector.broadcast %173 : vector<1x256xf32> to vector<16x256xf32>
    %175 = arith.mulf %174, %0 : vector<16x256xf32>
    %cst_125 = arith.constant dense<0.000000e+00> : vector<16x16xf32>
    %176 = tpu.matmul %175, %1, %cst_125 {dimension_numbers = #tpu.dot_dimension_numbers<[1], [0], [0], [1], [0, 0, 1, 1], [], []>} : vector<16x256xf32>, vector<256x16xf32>, vector<16x16xf32> -> vector<16x16xf32>
    %cst_126 = arith.constant dense<0.000000e+00> : vector<16x8xf32>
    %177 = tpu.matmul %176, %25, %cst_126 {dimension_numbers = #tpu.dot_dimension_numbers<[1], [0], [0], [1], [0, 0, 1, 1], [], []>} : vector<16x16xf32>, vector<16x8xf32>, vector<16x8xf32> -> vector<16x8xf32>
    %178 = vector.broadcast %26 : vector<1x8xf32> to vector<16x8xf32>
    %179 = arith.addf %177, %178 : vector<16x8xf32>
    %180 = arith.negf %179 : vector<16x8xf32>
    %181 = math.exp %180 : vector<16x8xf32>
    %cst_127 = arith.constant 1.000000e+00 : f32
    %182 = vector.broadcast %cst_127 : f32 to vector<16x8xf32>
    %183 = arith.addf %182, %181 : vector<16x8xf32>
    %184 = arith.divf %182, %183 : vector<16x8xf32>
    %cst_128 = arith.constant dense<0.000000e+00> : vector<16x8xf32>
    %185 = tpu.matmul %184, %27, %cst_128 {dimension_numbers = #tpu.dot_dimension_numbers<[1], [0], [0], [1], [0, 0, 1, 1], [], []>} : vector<16x8xf32>, vector<8x8xf32>, vector<16x8xf32> -> vector<16x8xf32>
    %186 = vector.broadcast %28 : vector<1x8xf32> to vector<16x8xf32>
    %187 = arith.addf %185, %186 : vector<16x8xf32>
    %188 = arith.negf %187 : vector<16x8xf32>
    %189 = math.exp %188 : vector<16x8xf32>
    %cst_129 = arith.constant 1.000000e+00 : f32
    %190 = vector.broadcast %cst_129 : f32 to vector<16x8xf32>
    %191 = arith.addf %190, %189 : vector<16x8xf32>
    %192 = arith.divf %190, %191 : vector<16x8xf32>
    %cst_130 = arith.constant dense<0.000000e+00> : vector<16x16xf32>
    %193 = tpu.matmul %192, %29, %cst_130 {dimension_numbers = #tpu.dot_dimension_numbers<[1], [0], [0], [1], [0, 0, 1, 1], [], []>} : vector<16x8xf32>, vector<8x16xf32>, vector<16x16xf32> -> vector<16x16xf32>
    %194 = vector.broadcast %30 : vector<1x16xf32> to vector<16x16xf32>
    %195 = arith.addf %193, %194 : vector<16x16xf32>
    %cst_131 = arith.constant dense<0.000000e+00> : vector<16x8xf32>
    %196 = tpu.matmul %195, %31, %cst_131 {dimension_numbers = #tpu.dot_dimension_numbers<[1], [0], [0], [1], [0, 0, 1, 1], [], []>} : vector<16x16xf32>, vector<16x8xf32>, vector<16x8xf32> -> vector<16x8xf32>
    %cst_132 = arith.constant dense<0.000000e+00> : vector<16x8xf32>
    %197 = tpu.matmul %196, %44, %cst_132 {dimension_numbers = #tpu.dot_dimension_numbers<[1], [1], [0], [0], [0, 0, 1, 0], [], []>} : vector<16x8xf32>, vector<8x8xf32>, vector<16x8xf32> -> vector<16x8xf32>
    %cst_133 = arith.constant dense<0xFF800000> : vector<16xf32>
    %198 = vector.multi_reduction <maximumf>, %197, %cst_133 [1] : vector<16x8xf32> to vector<16xf32>
    %199 = vector.shape_cast %198 : vector<16xf32> to vector<16x1xf32>
    %200 = vector.broadcast %199 : vector<16x1xf32> to vector<16x8xf32>
    %201 = arith.subf %197, %200 : vector<16x8xf32>
    %202 = math.exp %201 : vector<16x8xf32>
    %cst_134 = arith.constant dense<0.000000e+00> : vector<16xf32>
    %203 = vector.multi_reduction <add>, %202, %cst_134 [1] : vector<16x8xf32> to vector<16xf32>
    %204 = vector.shape_cast %203 : vector<16xf32> to vector<16x1xf32>
    %205 = tpu.reciprocal %204 {approx = true} : vector<16x1xf32> -> vector<16x1xf32>
    %206 = vector.broadcast %205 : vector<16x1xf32> to vector<16x8xf32>
    %207 = arith.mulf %202, %206 : vector<16x8xf32>
    %cst_135 = arith.constant dense<0.000000e+00> : vector<16x8xf32>
    %208 = tpu.matmul %207, %44, %cst_135 {dimension_numbers = #tpu.dot_dimension_numbers<[1], [0], [0], [1], [0, 0, 1, 1], [], []>} : vector<16x8xf32>, vector<8x8xf32>, vector<16x8xf32> -> vector<16x8xf32>
    %209 = vector.extract_strided_slice %35 {offsets = [0, 0], sizes = [16, 8], strides = [1, 1]} : vector<16x32xf32> to vector<16x8xf32>
    %210 = vector.extract_strided_slice %35 {offsets = [0, 8], sizes = [16, 8], strides = [1, 1]} : vector<16x32xf32> to vector<16x8xf32>
    %211 = vector.extract_strided_slice %35 {offsets = [0, 16], sizes = [16, 8], strides = [1, 1]} : vector<16x32xf32> to vector<16x8xf32>
    %212 = vector.extract_strided_slice %35 {offsets = [0, 24], sizes = [16, 8], strides = [1, 1]} : vector<16x32xf32> to vector<16x8xf32>
    %cst_136 = arith.constant dense<0.000000e+00> : vector<16x16xf32>
    %213 = tpu.matmul %208, %32, %cst_136 {dimension_numbers = #tpu.dot_dimension_numbers<[1], [0], [0], [1], [0, 0, 1, 1], [], []>} : vector<16x8xf32>, vector<8x16xf32>, vector<16x16xf32> -> vector<16x16xf32>
    %214 = vector.broadcast %33 : vector<1x16xf32> to vector<16x16xf32>
    %215 = arith.addf %213, %214 : vector<16x16xf32>
    %216 = arith.addf %210, %208 : vector<16x8xf32>
    %217 = vector.broadcast %34 : vector<1x8xf32> to vector<16x8xf32>
    %218 = arith.mulf %208, %217 : vector<16x8xf32>
    %219 = arith.addf %216, %218 : vector<16x8xf32>
    %220 = arith.negf %219 : vector<16x8xf32>
    %221 = math.exp %220 : vector<16x8xf32>
    %cst_137 = arith.constant 1.000000e+00 : f32
    %222 = vector.broadcast %cst_137 : f32 to vector<16x8xf32>
    %223 = arith.addf %222, %221 : vector<16x8xf32>
    %224 = arith.divf %222, %223 : vector<16x8xf32>
    %225 = vector.extract_strided_slice %215 {offsets = [0, 0], sizes = [16, 8], strides = [1, 1]} : vector<16x16xf32> to vector<16x8xf32>
    %226 = arith.addf %225, %211 : vector<16x8xf32>
    %227 = arith.negf %226 : vector<16x8xf32>
    %228 = math.exp %227 : vector<16x8xf32>
    %cst_138 = arith.constant 1.000000e+00 : f32
    %229 = vector.broadcast %cst_138 : f32 to vector<16x8xf32>
    %230 = arith.addf %229, %228 : vector<16x8xf32>
    %231 = arith.divf %229, %230 : vector<16x8xf32>
    %232 = vector.extract_strided_slice %215 {offsets = [0, 8], sizes = [16, 8], strides = [1, 1]} : vector<16x16xf32> to vector<16x8xf32>
    %233 = arith.mulf %231, %212 : vector<16x8xf32>
    %234 = arith.addf %232, %233 : vector<16x8xf32>
    %235 = math.tanh %234 : vector<16x8xf32>
    %236 = arith.mulf %224, %209 : vector<16x8xf32>
    %cst_139 = arith.constant 1.000000e+00 : f32
    %237 = vector.broadcast %cst_139 : f32 to vector<16x8xf32>
    %238 = arith.subf %237, %224 : vector<16x8xf32>
    %239 = arith.mulf %238, %235 : vector<16x8xf32>
    %240 = arith.addf %236, %239 : vector<16x8xf32>
    %cst_140 = arith.constant dense<0.000000e+00> : vector<16x16xf32>
    %241 = tpu.matmul %240, %240, %cst_140 {dimension_numbers = #tpu.dot_dimension_numbers<[1], [1], [0], [0], [0, 0, 1, 0], [], []>} : vector<16x8xf32>, vector<16x8xf32>, vector<16x16xf32> -> vector<16x16xf32>
    %cst_141 = arith.constant 0.000000e+00 : f32
    %242 = vector.broadcast %cst_141 : f32 to vector<16x16xf32>
    %243 = arith.maximumf %241, %242 : vector<16x16xf32>
    %cst_142 = arith.constant dense<0xFF800000> : vector<16xf32>
    %244 = vector.multi_reduction <maximumf>, %243, %cst_142 [1] : vector<16x16xf32> to vector<16xf32>
    %245 = vector.shape_cast %244 : vector<16xf32> to vector<16x1xf32>
    %246 = vector.broadcast %245 : vector<16x1xf32> to vector<16x16xf32>
    %247 = arith.subf %243, %246 : vector<16x16xf32>
    %248 = math.exp %247 : vector<16x16xf32>
    %cst_143 = arith.constant dense<0.000000e+00> : vector<16xf32>
    %249 = vector.multi_reduction <add>, %248, %cst_143 [1] : vector<16x16xf32> to vector<16xf32>
    %250 = vector.shape_cast %249 : vector<16xf32> to vector<16x1xf32>
    %251 = tpu.reciprocal %250 {approx = true} : vector<16x1xf32> -> vector<16x1xf32>
    %252 = vector.broadcast %251 : vector<16x1xf32> to vector<16x16xf32>
    %253 = arith.mulf %248, %252 : vector<16x16xf32>
    %254 = vector.extract_strided_slice %36 {offsets = [0, 0, 0], sizes = [1, 16, 64], strides = [1, 1, 1]} : vector<3x16x64xf32> to vector<1x16x64xf32>
    %255 = vector.shape_cast %254 : vector<1x16x64xf32> to vector<16x64xf32>
    %cst_144 = arith.constant dense<0.000000e+00> : vector<16x64xf32>
    %256 = tpu.matmul %176, %255, %cst_144 {dimension_numbers = #tpu.dot_dimension_numbers<[1], [0], [0], [1], [0, 0, 1, 1], [], []>} : vector<16x16xf32>, vector<16x64xf32>, vector<16x64xf32> -> vector<16x64xf32>
    %257 = arith.mulf %37, %256 : vector<16x64xf32>
    %cst_145 = arith.constant dense<0.000000e+00> : vector<16x8xf32>
    %258 = tpu.matmul %257, %38, %cst_145 {dimension_numbers = #tpu.dot_dimension_numbers<[1], [0], [0], [1], [0, 0, 1, 1], [], []>} : vector<16x64xf32>, vector<64x8xf32>, vector<16x8xf32> -> vector<16x8xf32>
    %259 = arith.addf %39, %258 : vector<16x8xf32>
    %cst_146 = arith.constant dense<0.000000e+00> : vector<16x16xf32>
    %260 = tpu.matmul %253, %176, %cst_146 {dimension_numbers = #tpu.dot_dimension_numbers<[1], [0], [0], [1], [0, 0, 1, 1], [], []>} : vector<16x16xf32>, vector<16x16xf32>, vector<16x16xf32> -> vector<16x16xf32>
    %261 = vector.extract_strided_slice %36 {offsets = [1, 0, 0], sizes = [1, 16, 64], strides = [1, 1, 1]} : vector<3x16x64xf32> to vector<1x16x64xf32>
    %262 = vector.shape_cast %261 : vector<1x16x64xf32> to vector<16x64xf32>
    %cst_147 = arith.constant dense<0.000000e+00> : vector<16x64xf32>
    %263 = tpu.matmul %260, %262, %cst_147 {dimension_numbers = #tpu.dot_dimension_numbers<[1], [0], [0], [1], [0, 0, 1, 1], [], []>} : vector<16x16xf32>, vector<16x64xf32>, vector<16x64xf32> -> vector<16x64xf32>
    %264 = arith.mulf %37, %263 : vector<16x64xf32>
    %cst_148 = arith.constant dense<0.000000e+00> : vector<16x8xf32>
    %265 = tpu.matmul %264, %38, %cst_148 {dimension_numbers = #tpu.dot_dimension_numbers<[1], [0], [0], [1], [0, 0, 1, 1], [], []>} : vector<16x64xf32>, vector<64x8xf32>, vector<16x8xf32> -> vector<16x8xf32>
    %266 = arith.addf %259, %265 : vector<16x8xf32>
    %cst_149 = arith.constant dense<0.000000e+00> : vector<16x16xf32>
    %267 = tpu.matmul %253, %260, %cst_149 {dimension_numbers = #tpu.dot_dimension_numbers<[1], [0], [0], [1], [0, 0, 1, 1], [], []>} : vector<16x16xf32>, vector<16x16xf32>, vector<16x16xf32> -> vector<16x16xf32>
    %cst_150 = arith.constant 2.000000e+00 : f32
    %268 = vector.broadcast %cst_150 : f32 to vector<16x16xf32>
    %269 = arith.mulf %268, %267 : vector<16x16xf32>
    %270 = arith.subf %269, %176 : vector<16x16xf32>
    %271 = vector.extract_strided_slice %36 {offsets = [2, 0, 0], sizes = [1, 16, 64], strides = [1, 1, 1]} : vector<3x16x64xf32> to vector<1x16x64xf32>
    %272 = vector.shape_cast %271 : vector<1x16x64xf32> to vector<16x64xf32>
    %cst_151 = arith.constant dense<0.000000e+00> : vector<16x64xf32>
    %273 = tpu.matmul %270, %272, %cst_151 {dimension_numbers = #tpu.dot_dimension_numbers<[1], [0], [0], [1], [0, 0, 1, 1], [], []>} : vector<16x16xf32>, vector<16x64xf32>, vector<16x64xf32> -> vector<16x64xf32>
    %274 = arith.mulf %37, %273 : vector<16x64xf32>
    %cst_152 = arith.constant dense<0.000000e+00> : vector<16x8xf32>
    %275 = tpu.matmul %274, %38, %cst_152 {dimension_numbers = #tpu.dot_dimension_numbers<[1], [0], [0], [1], [0, 0, 1, 1], [], []>} : vector<16x64xf32>, vector<64x8xf32>, vector<16x8xf32> -> vector<16x8xf32>
    %276 = arith.addf %266, %275 : vector<16x8xf32>
    %277 = math.tanh %276 : vector<16x8xf32>
    %cst_153 = arith.constant dense<0.000000e+00> : vector<16x128xf32>
    %278 = tpu.matmul %277, %3, %cst_153 {dimension_numbers = #tpu.dot_dimension_numbers<[1], [0], [0], [1], [0, 0, 1, 1], [], []>} : vector<16x8xf32>, vector<8x128xf32>, vector<16x128xf32> -> vector<16x128xf32>
    %279 = arith.mulf %278, %2 : vector<16x128xf32>
    %cst_154 = arith.constant dense<0.000000e+00> : vector<128xf32>
    %280 = vector.multi_reduction <add>, %279, %cst_154 [0] : vector<16x128xf32> to vector<128xf32>
    %281 = vector.shape_cast %280 : vector<128xf32> to vector<1x128xf32>
    %282 = arith.mulf %167, %43 : vector<1x128xf32>
    %cst_155 = arith.constant 1.000000e+00 : f32
    %283 = vector.broadcast %cst_155 : f32 to vector<1x128xf32>
    %284 = arith.subf %283, %167 : vector<1x128xf32>
    %285 = arith.mulf %284, %281 : vector<1x128xf32>
    %286 = arith.addf %282, %285 : vector<1x128xf32>
    %c0_156 = arith.constant 0 : index
    %c0_157 = arith.constant 0 : index
    %c0_158 = arith.constant 0 : index
    %287 = vector.load %arg46[%c0_156, %c0_157, %c0_158] : memref<1x1x128xf32, #tpu.memory_space<vmem>>, vector<1x1x128xf32>
    %288 = vector.shape_cast %287 : vector<1x1x128xf32> to vector<1x128xf32>
    %289 = vector.shape_cast %286 : vector<1x128xf32> to vector<1x1x128xf32>
    tpu.vector_store %arg46[%c0_156, %c0_157, %c0_158], %289 {strides = array<i32>} : memref<1x1x128xf32, #tpu.memory_space<vmem>>, vector<1x1x128xf32>,
    return
  }
  func.func @transform_0(%arg0: i32) -> (i32, i32, i32) {
    %c0_i32 = arith.constant 0 : i32
    %c0_i32_0 = arith.constant 0 : i32
    %c0_i32_1 = arith.constant 0 : i32
    return %arg0, %c0_i32, %c0_i32_0 : i32, i32, i32
  }
  func.func @transform_1(%arg0: i32) -> (i32, i32, i32) {
    %c0_i32 = arith.constant 0 : i32
    %c0_i32_0 = arith.constant 0 : i32
    %c0_i32_1 = arith.constant 0 : i32
    return %arg0, %c0_i32, %c0_i32_0 : i32, i32, i32
  }
  func.func @transform_2(%arg0: i32) -> (i32, i32) {
    %c0_i32 = arith.constant 0 : i32
    %c0_i32_0 = arith.constant 0 : i32
    %c0_i32_1 = arith.constant 0 : i32
    return %c0_i32, %c0_i32_0 : i32, i32
  }
  func.func @transform_3(%arg0: i32) -> (i32, i32) {
    %c0_i32 = arith.constant 0 : i32
    %c0_i32_0 = arith.constant 0 : i32
    %c0_i32_1 = arith.constant 0 : i32
    return %c0_i32, %c0_i32_0 : i32, i32
  }
  func.func @transform_4(%arg0: i32) -> (i32, i32) {
    %c0_i32 = arith.constant 0 : i32
    %c0_i32_0 = arith.constant 0 : i32
    %c0_i32_1 = arith.constant 0 : i32
    return %c0_i32, %c0_i32_0 : i32, i32
  }
  func.func @transform_5(%arg0: i32) -> (i32, i32) {
    %c0_i32 = arith.constant 0 : i32
    %c0_i32_0 = arith.constant 0 : i32
    %c0_i32_1 = arith.constant 0 : i32
    return %c0_i32, %c0_i32_0 : i32, i32
  }
  func.func @transform_6(%arg0: i32) -> (i32, i32) {
    %c0_i32 = arith.constant 0 : i32
    %c0_i32_0 = arith.constant 0 : i32
    %c0_i32_1 = arith.constant 0 : i32
    return %c0_i32, %c0_i32_0 : i32, i32
  }
  func.func @transform_7(%arg0: i32) -> (i32, i32) {
    %c0_i32 = arith.constant 0 : i32
    %c0_i32_0 = arith.constant 0 : i32
    %c0_i32_1 = arith.constant 0 : i32
    return %c0_i32, %c0_i32_0 : i32, i32
  }
  func.func @transform_8(%arg0: i32) -> (i32, i32) {
    %c0_i32 = arith.constant 0 : i32
    %c0_i32_0 = arith.constant 0 : i32
    %c0_i32_1 = arith.constant 0 : i32
    return %c0_i32, %c0_i32_0 : i32, i32
  }
  func.func @transform_9(%arg0: i32) -> (i32, i32) {
    %c0_i32 = arith.constant 0 : i32
    %c0_i32_0 = arith.constant 0 : i32
    %c0_i32_1 = arith.constant 0 : i32
    return %c0_i32, %c0_i32_0 : i32, i32
  }
  func.func @transform_10(%arg0: i32) -> (i32, i32) {
    %c0_i32 = arith.constant 0 : i32
    %c0_i32_0 = arith.constant 0 : i32
    %c0_i32_1 = arith.constant 0 : i32
    return %c0_i32, %c0_i32_0 : i32, i32
  }
  func.func @transform_11(%arg0: i32) -> (i32, i32) {
    %c0_i32 = arith.constant 0 : i32
    %c0_i32_0 = arith.constant 0 : i32
    %c0_i32_1 = arith.constant 0 : i32
    return %c0_i32, %c0_i32_0 : i32, i32
  }
  func.func @transform_12(%arg0: i32) -> (i32, i32) {
    %c0_i32 = arith.constant 0 : i32
    %c0_i32_0 = arith.constant 0 : i32
    %c0_i32_1 = arith.constant 0 : i32
    return %c0_i32, %c0_i32_0 : i32, i32
  }
  func.func @transform_13(%arg0: i32) -> (i32, i32) {
    %c0_i32 = arith.constant 0 : i32
    %c0_i32_0 = arith.constant 0 : i32
    %c0_i32_1 = arith.constant 0 : i32
    return %c0_i32, %c0_i32_0 : i32, i32
  }
  func.func @transform_14(%arg0: i32) -> (i32, i32) {
    %c0_i32 = arith.constant 0 : i32
    %c0_i32_0 = arith.constant 0 : i32
    %c0_i32_1 = arith.constant 0 : i32
    return %c0_i32, %c0_i32_0 : i32, i32
  }
  func.func @transform_15(%arg0: i32) -> (i32, i32) {
    %c0_i32 = arith.constant 0 : i32
    %c0_i32_0 = arith.constant 0 : i32
    %c0_i32_1 = arith.constant 0 : i32
    return %c0_i32, %c0_i32_0 : i32, i32
  }
  func.func @transform_16(%arg0: i32) -> (i32, i32) {
    %c0_i32 = arith.constant 0 : i32
    %c0_i32_0 = arith.constant 0 : i32
    %c0_i32_1 = arith.constant 0 : i32
    return %c0_i32, %c0_i32_0 : i32, i32
  }
  func.func @transform_17(%arg0: i32) -> (i32, i32) {
    %c0_i32 = arith.constant 0 : i32
    %c0_i32_0 = arith.constant 0 : i32
    %c0_i32_1 = arith.constant 0 : i32
    return %c0_i32, %c0_i32_0 : i32, i32
  }
  func.func @transform_18(%arg0: i32) -> (i32, i32) {
    %c0_i32 = arith.constant 0 : i32
    %c0_i32_0 = arith.constant 0 : i32
    %c0_i32_1 = arith.constant 0 : i32
    return %c0_i32, %c0_i32_0 : i32, i32
  }
  func.func @transform_19(%arg0: i32) -> (i32, i32) {
    %c0_i32 = arith.constant 0 : i32
    %c0_i32_0 = arith.constant 0 : i32
    %c0_i32_1 = arith.constant 0 : i32
    return %c0_i32, %c0_i32_0 : i32, i32
  }
  func.func @transform_20(%arg0: i32) -> (i32, i32) {
    %c0_i32 = arith.constant 0 : i32
    %c0_i32_0 = arith.constant 0 : i32
    %c0_i32_1 = arith.constant 0 : i32
    return %c0_i32, %c0_i32_0 : i32, i32
  }
  func.func @transform_21(%arg0: i32) -> (i32, i32) {
    %c0_i32 = arith.constant 0 : i32
    %c0_i32_0 = arith.constant 0 : i32
    %c0_i32_1 = arith.constant 0 : i32
    return %c0_i32, %c0_i32_0 : i32, i32
  }
  func.func @transform_22(%arg0: i32) -> (i32, i32) {
    %c0_i32 = arith.constant 0 : i32
    %c0_i32_0 = arith.constant 0 : i32
    %c0_i32_1 = arith.constant 0 : i32
    return %c0_i32, %c0_i32_0 : i32, i32
  }
  func.func @transform_23(%arg0: i32) -> (i32, i32, i32) {
    %c0_i32 = arith.constant 0 : i32
    %c0_i32_0 = arith.constant 0 : i32
    %c0_i32_1 = arith.constant 0 : i32
    %c0_i32_2 = arith.constant 0 : i32
    return %c0_i32, %c0_i32_0, %c0_i32_1 : i32, i32, i32
  }
  func.func @transform_24(%arg0: i32) -> (i32, i32) {
    %c0_i32 = arith.constant 0 : i32
    %c0_i32_0 = arith.constant 0 : i32
    %c0_i32_1 = arith.constant 0 : i32
    return %c0_i32, %c0_i32_0 : i32, i32
  }
  func.func @transform_25(%arg0: i32) -> (i32, i32) {
    %c0_i32 = arith.constant 0 : i32
    %c0_i32_0 = arith.constant 0 : i32
    %c0_i32_1 = arith.constant 0 : i32
    return %c0_i32, %c0_i32_0 : i32, i32
  }
  func.func @transform_26(%arg0: i32) -> (i32, i32) {
    %c0_i32 = arith.constant 0 : i32
    %c0_i32_0 = arith.constant 0 : i32
    %c0_i32_1 = arith.constant 0 : i32
    return %c0_i32, %c0_i32_0 : i32, i32
  }
  func.func @transform_27(%arg0: i32) -> (i32, i32) {
    %c0_i32 = arith.constant 0 : i32
    %c0_i32_0 = arith.constant 0 : i32
    %c0_i32_1 = arith.constant 0 : i32
    return %c0_i32, %c0_i32_0 : i32, i32
  }
  func.func @transform_28(%arg0: i32) -> (i32, i32) {
    %c0_i32 = arith.constant 0 : i32
    %c0_i32_0 = arith.constant 0 : i32
    %c0_i32_1 = arith.constant 0 : i32
    return %c0_i32, %c0_i32_0 : i32, i32
  }
  func.func @transform_29(%arg0: i32) -> (i32, i32) {
    %c0_i32 = arith.constant 0 : i32
    %c0_i32_0 = arith.constant 0 : i32
    %c0_i32_1 = arith.constant 0 : i32
    return %c0_i32, %c0_i32_0 : i32, i32
  }
  func.func @transform_30(%arg0: i32) -> (i32, i32) {
    %c0_i32 = arith.constant 0 : i32
    %c0_i32_0 = arith.constant 0 : i32
    %c0_i32_1 = arith.constant 0 : i32
    return %c0_i32, %c0_i32_0 : i32, i32
  }
  func.func @transform_31(%arg0: i32) -> (i32, i32) {
    %c0_i32 = arith.constant 0 : i32
    %c0_i32_0 = arith.constant 0 : i32
    %c0_i32_1 = arith.constant 0 : i32
    return %c0_i32, %c0_i32_0 : i32, i32
  }
  func.func @transform_32(%arg0: i32) -> (i32, i32) {
    %c0_i32 = arith.constant 0 : i32
    %c0_i32_0 = arith.constant 0 : i32
    %c0_i32_1 = arith.constant 0 : i32
    return %c0_i32, %c0_i32_0 : i32, i32
  }
  func.func @transform_33(%arg0: i32) -> (i32, i32) {
    %c0_i32 = arith.constant 0 : i32
    %c0_i32_0 = arith.constant 0 : i32
    %c0_i32_1 = arith.constant 0 : i32
    return %c0_i32, %c0_i32_0 : i32, i32
  }
  func.func @transform_34(%arg0: i32) -> (i32, i32) {
    %c0_i32 = arith.constant 0 : i32
    %c0_i32_0 = arith.constant 0 : i32
    %c0_i32_1 = arith.constant 0 : i32
    return %c0_i32, %c0_i32_0 : i32, i32
  }
  func.func @transform_35(%arg0: i32) -> (i32, i32) {
    %c0_i32 = arith.constant 0 : i32
    %c0_i32_0 = arith.constant 0 : i32
    %c0_i32_1 = arith.constant 0 : i32
    return %c0_i32, %c0_i32_0 : i32, i32
  }
  func.func @transform_36(%arg0: i32) -> (i32, i32) {
    %c0_i32 = arith.constant 0 : i32
    %c0_i32_0 = arith.constant 0 : i32
    %c0_i32_1 = arith.constant 0 : i32
    return %c0_i32, %c0_i32_0 : i32, i32
  }
  func.func @transform_37(%arg0: i32) -> (i32, i32) {
    %c0_i32 = arith.constant 0 : i32
    %c0_i32_0 = arith.constant 0 : i32
    %c0_i32_1 = arith.constant 0 : i32
    return %c0_i32, %c0_i32_0 : i32, i32
  }
  func.func @transform_38(%arg0: i32) -> (i32, i32) {
    %c0_i32 = arith.constant 0 : i32
    %c0_i32_0 = arith.constant 0 : i32
    %c0_i32_1 = arith.constant 0 : i32
    return %c0_i32, %c0_i32_0 : i32, i32
  }
  func.func @transform_39(%arg0: i32) -> (i32, i32) {
    %c0_i32 = arith.constant 0 : i32
    %c0_i32_0 = arith.constant 0 : i32
    %c0_i32_1 = arith.constant 0 : i32
    return %c0_i32, %c0_i32_0 : i32, i32
  }
  func.func @transform_40(%arg0: i32) -> (i32, i32) {
    %c0_i32 = arith.constant 0 : i32
    %c0_i32_0 = arith.constant 0 : i32
    %c0_i32_1 = arith.constant 0 : i32
    return %c0_i32, %c0_i32_0 : i32, i32
  }
  func.func @transform_41(%arg0: i32) -> (i32, i32, i32) {
    %c0_i32 = arith.constant 0 : i32
    %c0_i32_0 = arith.constant 0 : i32
    %c0_i32_1 = arith.constant 0 : i32
    %c0_i32_2 = arith.constant 0 : i32
    return %c0_i32, %c0_i32_0, %c0_i32_1 : i32, i32, i32
  }
  func.func @transform_42(%arg0: i32) -> (i32, i32) {
    %c0_i32 = arith.constant 0 : i32
    %c0_i32_0 = arith.constant 0 : i32
    %c0_i32_1 = arith.constant 0 : i32
    return %c0_i32, %c0_i32_0 : i32, i32
  }
  func.func @transform_43(%arg0: i32) -> (i32, i32) {
    %c0_i32 = arith.constant 0 : i32
    %c0_i32_0 = arith.constant 0 : i32
    %c0_i32_1 = arith.constant 0 : i32
    return %c0_i32, %c0_i32_0 : i32, i32
  }
  func.func @transform_44(%arg0: i32) -> (i32, i32) {
    %c0_i32 = arith.constant 0 : i32
    %c0_i32_0 = arith.constant 0 : i32
    %c0_i32_1 = arith.constant 0 : i32
    return %c0_i32, %c0_i32_0 : i32, i32
  }
  func.func @transform_45(%arg0: i32) -> (i32, i32, i32) {
    %c0_i32 = arith.constant 0 : i32
    %c0_i32_0 = arith.constant 0 : i32
    %c0_i32_1 = arith.constant 0 : i32
    return %arg0, %c0_i32, %c0_i32_0 : i32, i32, i32
  }
}

</mosaic_0001>

<bundles_post_ra>
// kernel: dygcrn_cell_forward.2
= control target key start
LH: loop header
LB: loop body
LE: loop exit
PB: predicated region body
PF: predicated region fallthrough
CT: control target
= control target key end

     0   :  { %s1511_s0 = inlined_call_operand.vmem [shape: f32[2,4,32], index: 0, kind: input, shape index: {}]   ;;  %s1512_s1 = inlined_call_operand.vmem [shape: f32[3,32,32], index: 1, kind: input, shape index: {}]   ;;  %s1513_s2 = inlined_call_operand.hbm [shape: f32[1,32], index: 2, kind: input, shape index: {}]   ;;  %s1514_s3 = inlined_call_operand.hbm [shape: f32[3,32,32], index: 3, kind: input, shape index: {}]   ;;  %s1515_s4 = inlined_call_operand.hbm [shape: f32[1,32], index: 4, kind: input, shape index: {}]   ;;  %s1516_s5 = inlined_call_operand.vmem [shape: f32[32,128], index: 5, kind: input, shape index: {}]   ;;  %s1517_s6 = inlined_call_operand.hbm [shape: f32[1,128], index: 6, kind: input, shape index: {}]   ;;  %s1518_s7 = inlined_call_operand.vmem [shape: f32[128,32], index: 7, kind: input, shape index: {}]   ;;  %s1519_s8 = inlined_call_operand.hbm [shape: f32[1,32], index: 8, kind: input, shape index: {}]   ;;  %s1520_s9 = inlined_call_operand.vmem [shape: f32[32,128], index: 9, kind: input, shape index: {}]   ;;  %s1521_s10 = inlined_call_operand.vmem [shape: f32[4,128], index: 10, kind: input, shape index: {}]   ;;  %s1522_s11 = inlined_call_operand.vmem [shape: f32[1,4], index: 11, kind: input, shape index: {}]   ;;  %s1523_s12 = inlined_call_operand.vmem [shape: f32[2,1,128], index: 12, kind: output, shape index: {}]  }
   0x1   :  { %1524 = sst [smem:[#allocation13_spill]] %s1513_s2 }
   0x2   :  { %1525 = sst [smem:[#allocation14_spill]] %s1514_s3 }
   0x3   :  { %17 = vsyncpa [#allocation3], 0 }
   0x4   :  { %18 = vsyncpa [#allocation5], 0 }
   0x5   :  { %19 = vsyncpa [#allocation8], 0  ;;  %s1292_s21 = smov 0  }
   0x6 LB: > { %s1526_s3 = sld [smem:[#allocation14_spill]]  ;;  %s1301_s25 = sadd.s32 4294967295, %s1217_s21   ;;  %s1217_s21 = sphi %s1292_s21, %s25_s21  }
   0x7   : > { %p953_p0 = scmp.ge.s32.totalorder %s1217_s21, 1  ;;  %p313_p1 = scmp.lt.s32.totalorder %s1217_s21, 3 }
   0x8   : > { %p1015_p2 = scmp.eq.s32.totalorder %s1301_s25, 0  ;;  %s1219_s27 = smov [#allocation4]  }
   0x9   : > { %p1306_p3 = pnand %p953_p0, %p313_p1  ;;  %s341_s28 = sshll.u32 %s1219_s27, 4  ;;  %s342_s28 = int_to_ptr.vmem [resolvable:$true] %s341_s28 }
   0xa   : > { %s369_s13 = sshll.u32 %s1517_s6, 4  ;;  %s1220_s15 = smov [#allocation7]   ;;  %s370_s13 = int_to_ptr.hbm [resolvable:$true] %s369_s13 }
   0xb   : > { %p999_p4 = pneg %p1306_p3  ;;  %s371_s16 = sshll.u32 %s1220_s15, 4  ;;  %s372_s16 = int_to_ptr.vmem [resolvable:$true] %s371_s16 }
   0xc   : > { %s339_s24 = sshll.u32 %s1526_s3, 4  ;;  %s1529_s2 = sld [smem:[#allocation13_spill]]  ;;  %s340_s24 = int_to_ptr.hbm [resolvable:$true] %s339_s24 }
   0xd   : > { %p1317_p5 = pnand %p1015_p2, %p999_p4  ;;  %s1221_s20 = smov 128  }
   0xe   : > { %s1222_s22 = smov 8   ;;  %s1223_s23 = smov [#allocation2]  }
   0xf   : > { %1005 = dma.hbm_to_vmem [thread:$0]  (!%p1317_p5), %s340_s24, 1536, %s342_s28, [#allocation5], %s1221_s20, %s1221_s20, %s1222_s22  }
  0x10   : > { %1011 = dma.hbm_to_vmem [thread:$0]  (!%p1317_p5), %s370_s13, 16, %s372_s16, [#allocation8]  }
  0x11   : > { %s330_s27 = sshll.u32 %s1223_s23, 4  ;;  %s354_s15 = sshll.u32 %s1515_s4, 4  ;;  %s331_s27 = int_to_ptr.vmem [resolvable:$true] %s330_s27  ;;  %s355_s15 = int_to_ptr.hbm [resolvable:$true] %s354_s15 }
  0x12   : > { %s328_s19 = sshll.u32 %s1529_s2, 4  ;;  %s384_s2 = sshll.u32 %s1519_s8, 4  ;;  %s329_s19 = int_to_ptr.hbm [resolvable:$true] %s328_s19  ;;  %s385_s2 = int_to_ptr.hbm [resolvable:$true] %s384_s2 }
  0x13   : > { %1002 = dma.hbm_to_vmem [thread:$0]  (!%p1317_p5), %s329_s19, 16, %s331_s27, [#allocation3]  }
  0x14   : > { %s1224_s3 = smov [#allocation6]   ;;  %s1225_s28 = smov [#allocation9]  }
  0x15   : > { %s356_s24 = sshll.u32 %s1224_s3, 4  ;;  %s386_s13 = sshll.u32 %s1225_s28, 4  ;;  %s357_s24 = int_to_ptr.vmem [resolvable:$true] %s356_s24  ;;  %s387_s13 = int_to_ptr.vmem [resolvable:$true] %s386_s13 }
  0x16   : > { %1008 = dma.hbm_to_vmem [thread:$0]  (!%p1317_p5), %s355_s15, 16, %s357_s24, [#allocation5]  }
  0x17   : > { %1014 = dma.hbm_to_vmem [thread:$0]  (!%p1317_p5), %s385_s2, 16, %s387_s13, [#allocation8]  }
  0x18   : > { %415 = sbr.rel (%p1306_p3) target bundleno = 889 (0x379), region = 68 }
  0x1d   : > { %1204 = dma.done.wait (%p1015_p2), [#allocation3], 16  }
  0x1e   : > { %1206 = vsyncadd (%p1015_p2), [#allocation3], 4294967280 }
  0x1f   : > { %1208 = dma.done.wait (%p1015_p2), [#allocation5], 1552  }
  0x20   : > { %1210 = vsyncadd (%p1015_p2), [#allocation5], 4294965744 }
  0x21   : > { %1212 = dma.done.wait (%p1015_p2), [#allocation8], 32  }
  0x22   : > { %1214 = vsyncadd (%p1015_p2), [#allocation8], 4294967264  ;;  %p475_p6 = scmp.lt.s32.totalorder %s1301_s25, 1  ;;  %v483_v0 = vlaneseq  ;;  %v508_v3 = vld [vmem:[%s1512_s1 + $0x58] sm:$0xff]  ;;  %v507_v4 = vld [vmem:[%s1512_s1 + $0x50] sm:$0xff]  ;;  %vm566_vm0 = vcmask 1042432  }
  0x23   : > { %v504_v5 = vld [vmem:[%s1512_s1 + $0x38] sm:$0xff]  ;;  %587 = vmatpush.msra.mxu2 %v508_v3  ;;  %v506_v7 = vld [vmem:[%s1512_s1 + $0x48] sm:$0xff]  ;;  %v503_v8 = vld [vmem:[%s1512_s1 + $0x30] sm:$0xff]  ;;  %vm512_vm2 = vcmask 1040384   ;;  %vm518_vm4 = vcmask 261120   ;;  %vm829_vm6 = vcmask 1043456  }
  0x24   : > { %s1535_s25 = smov (!%p475_p6, %s1301_s25), 1  ;;  %v484_v1 = vshrl.u32 %v483_v0, 7  ;;  %533 = vmatpush.msra.mxu0 %v504_v5  ;;  %v500_v6 = vld [vmem:[%s1512_s1 + $0x18] sm:$0xff]  ;;  %v499_v9 = vld [vmem:[%s1512_s1 + $0x10] sm:$0xff]  ;;  %v505_v10 = vld [vmem:[%s1512_s1 + $0x40] sm:$0xff]  ;;  %vm825_vm7 = vcmask 31744  }
  0x25   : > { %s966_s2 = sshll.u32 %s1535_s25, 2  ;;  %556 = vmatpush.msra.mxu1 %v500_v6  ;;  %588 = vmatpush.msra.mxu2 %v507_v4  ;;  %v502_v14 = vld [vmem:[%s1512_s1 + $0x28] sm:$0xff]  ;;  %v501_v16 = vld [vmem:[%s1512_s1 + $0x20] sm:$0xff]  ;;  %v608_v25 = vld [vmem:[#allocation4 + $0x30] sm:$0xff]  ;;  %s481_s29 = scalar_lea.vmem %s1523_s12, %s1535_s25 }
  0x26   : > { %v489_v2 = vand.u32 3, %v484_v1  ;;  %s478_s14 = scalar_lea.vmem %s1511_s0, %s966_s2  ;;  %534 = vmatpush.msra.mxu0 %v503_v8  ;;  %v498_v15 = vld [vmem:[%s1512_s1 + $0x8] sm:$0xff]  ;;  %v497_v19 = vld [vmem:[%s1512_s1] sm:$0xff]  ;;  %v604_v30 = vld [vmem:[#allocation4 + $0x10] sm:$0xff] }
  0x27   : > { %v482_v11 = vld [vmem:[%s478_s14] sm:$0xf]  ;;  %557 = vmatpush.msra.mxu1 %v499_v9  ;;  %589 = vmatpush.msra.mxu2 %v506_v7  ;;  %v607_v26 = vld [vmem:[#allocation4 + $0x28] sm:$0xff]  ;;  %v612_v31 = vld [vmem:[#allocation4 + $0x50] sm:$0xff] }
  0x28   : > { %vm1386_vm1 = vcmp.eq.s32.totalorder %v489_v2, 3  ;;  %v564_v13 = vrot.slane %v482_v11, 1  ;;  %v510_v17 = vrot.slane %v482_v11, 7  ;;  %vm1399_vm3 = vcmp.eq.s32.totalorder %v489_v2, 0  ;;  %535 = vmatpush.msra.mxu0 %v502_v14  ;;  %v609_v24 = vld [vmem:[#allocation4 + $0x38] sm:$0xff]  ;;  %v606_v29 = vld [vmem:[#allocation4 + $0x20] sm:$0xff] }
  0x29   : > { %558 = vmatpush.msra.mxu1 %v498_v15  ;;  %590 = vmatpush.msra.mxu2 %v505_v10  ;;  %v605_v27 = vld [vmem:[#allocation4 + $0x18] sm:$0xff]  ;;  %v603_v32 = vld [vmem:[#allocation4 + $0x8] sm:$0xff]  ;;  %v602_v34 = vld [vmem:[#allocation4] sm:$0xff] }
  0x2a   : > { %v567_v20 = vsel %vm566_vm0, %v564_v13, 0.0  ;;  %v513_v21 = vsel %vm512_vm2, 0.0, %v510_v17  ;;  %536 = vmatpush.msra.mxu0 %v501_v16  ;;  %v613_v28 = vld [vmem:[#allocation4 + $0x58] sm:$0xff]  ;;  %v611_v33 = vld [vmem:[#allocation4 + $0x48] sm:$0xff]  ;;  %v610_v35 = vld [vmem:[#allocation4 + $0x40] sm:$0xff] }
  0x2b   : > { %v571_v22 = vsel %vm1386_vm1, 0.0, %v567_v20  ;;  %v517_v23 = vsel %vm1399_vm3, 0.0, %v513_v21  ;;  %559 = vmatpush.msra.mxu1 %v497_v19  ;;  %967 = vmatmul.msk.f32.vlgmr.msra.gmra.mxu0 %vm518_vm4, %v482_v11  ;;  %v1041_v39 = vld [vmem:[#allocation2] ss:$0 sm:$0xff]  ;;  %v701_v50 = vld [vmem:[%s1516_s5 + $0x18] sm:$0xff]  ;;  %v700_v51 = vld [vmem:[%s1516_s5 + $0x10] sm:$0xff] }
  0x2c   : > { %969 = vmatmul.msk.f32.vlgmr.msra.gmra.mxu2 %vm518_vm4, %v571_v22  ;;  %968 = vmatmul.msk.f32.vlgmr.msra.gmra.mxu1 %vm518_vm4, %v517_v23  ;;  %v699_v52 = vld [vmem:[%s1516_s5 + $0x8] sm:$0xff]  ;;  %v698_v53 = vld [vmem:[%s1516_s5] sm:$0xff]  ;;  %v770_v62 = vld [vmem:[%s1518_s7 + $0x78] sm:$0xff] }
  0x2d   : > { %633 = vmatpush.msrb.mxu2 %v609_v24  ;;  %656 = vmatpush.msrb.mxu0 %v605_v27  ;;  %v1042_v57 = vld [vmem:[#allocation6] ss:$0 sm:$0xff]  ;;  %v769_v63 = vld [vmem:[%s1518_s7 + $0x70] sm:$0xff]  ;;  %v768_v0 = vld [vmem:[%s1518_s7 + $0x68] sm:$0xff] }
  0x2e   : > { %683 = vmatpush.msrb.mxu1 %v613_v28  ;;  %775 = vmatpush.msra.mxu3 %v770_v62  ;;  %v767_v1 = vld [vmem:[%s1518_s7 + $0x60] sm:$0xff]  ;;  %v766_v2 = vld [vmem:[%s1518_s7 + $0x58] sm:$0xff]  ;;  %v765_v3 = vld [vmem:[%s1518_s7 + $0x50] sm:$0xff] }
  0x2f   : > { %634 = vmatpush.msrb.mxu2 %v608_v25  ;;  %657 = vmatpush.msrb.mxu0 %v604_v30  ;;  %v764_v4 = vld [vmem:[%s1518_s7 + $0x48] sm:$0xff]  ;;  %v763_v5 = vld [vmem:[%s1518_s7 + $0x40] sm:$0xff]  ;;  %v762_v6 = vld [vmem:[%s1518_s7 + $0x38] sm:$0xff] }
  0x30   : > { %684 = vmatpush.msrb.mxu1 %v612_v31  ;;  %776 = vmatpush.msra.mxu3 %v769_v63  ;;  %v1043_v7 = vld [vmem:[#allocation7] ss:$0 sm:$0xff]  ;;  %v761_v8 = vld [vmem:[%s1518_s7 + $0x30] sm:$0xff]  ;;  %v760_v9 = vld [vmem:[%s1518_s7 + $0x28] sm:$0xff] }
  0x31   : > { %635 = vmatpush.msrb.mxu2 %v607_v26  ;;  %658 = vmatpush.msrb.mxu0 %v603_v32  ;;  %v759_v12 = vld [vmem:[%s1518_s7 + $0x20] sm:$0xff]  ;;  %v758_v14 = vld [vmem:[%s1518_s7 + $0x18] sm:$0xff]  ;;  %v757_v16 = vld [vmem:[%s1518_s7 + $0x10] sm:$0xff] }
  0x32   : > { %685 = vmatpush.msrb.mxu1 %v611_v33  ;;  %777 = vmatpush.msra.mxu3 %v768_v0  ;;  %v756_v18 = vld [vmem:[%s1518_s7 + $0x8] sm:$0xff]  ;;  %v755_v20 = vld [vmem:[%s1518_s7] sm:$0xff]  ;;  %v799_v21 = vld [vmem:[%s1520_s9 + $0x18] sm:$0xff] }
  0x33   : > { %636 = vmatpush.msrb.mxu2 %v606_v29  ;;  %659 = vmatpush.msrb.mxu0 %v602_v34  ;;  %v798_v22 = vld [vmem:[%s1520_s9 + $0x10] sm:$0xff] }
  0x34   : > { %686 = vmatpush.msrb.mxu1 %v610_v35  ;;  %778 = vmatpush.msra.mxu3 %v767_v1 }
  0x35   : > { %721 = vmatpush.msra.mxu2 %v701_v50  ;;  %815 = vmatpush.msra.mxu0 %v799_v21  ;;  %v823_v50 = vld [vmem:[%s1521_s10] sm:$0xf] }
  0x36   : > { %779 = vmatpush.msra.mxu3 %v766_v2 }
  0x37   : > { %722 = vmatpush.msra.mxu2 %v700_v51  ;;  %816 = vmatpush.msra.mxu0 %v798_v22 }
  0x38   : > { %780 = vmatpush.msra.mxu3 %v765_v3 }
  0x39   : > { %723 = vmatpush.msra.mxu2 %v699_v52 }
  0x3a   : > { %781 = vmatpush.msra.mxu3 %v764_v4 }
  0x3b   : > { %724 = vmatpush.msra.mxu2 %v698_v53  ;;  %v795_v53 = vld [vmem:[%s1522_s11] sm:$0x1] }
  0x3c   : > { %782 = vmatpush.msra.mxu3 %v763_v5 }
  0x3e   : > { %783 = vmatpush.msra.mxu3 %v762_v6 }
  0x40   : > { %784 = vmatpush.msra.mxu3 %v761_v8 }
  0x42   : > { %785 = vmatpush.msra.mxu3 %v760_v9 }
  0x44   : > { %786 = vmatpush.msra.mxu3 %v759_v12 }
  0x46   : > { %787 = vmatpush.msra.mxu3 %v758_v14 }
  0x48   : > { %788 = vmatpush.msra.mxu3 %v757_v16 }
  0x4a   : > { %789 = vmatpush.msra.mxu3 %v756_v18 }
  0x4c   : > { %790 = vmatpush.msra.mxu3 %v755_v20 }
  0xa8   : > { %v538_v36 = vpop.f32.mrf.mxu0 }
  0xa9   : > { %v561_v37 = vpop.f32.mrf.mxu1 }
  0xaa   : > { %v562_v38 = vadd.f32 %v561_v37, %v538_v36 }
  0xaf   : > { %v592_v40 = vpop.f32.mrf.mxu2 }
  0xb0   : > { %v595_v41 = vadd.f32 %v592_v40, %v562_v38 }
  0xb2   : > { %v600_v42 = vadd.f32 %v1041_v39, %v595_v41  ;;  %v1226_v39 = vmov -1.0  }
  0xb4   : > { %v601_v43 = vmax.f32 %v600_v42, 0.0 }
  0xb6   : > { %970 = vmatmul.msk.f32.vlgmr.msrb.gmra.mxu2 %vm518_vm4, %v601_v43  ;;  %v615_v44 = vrot.slane %v601_v43, 7  ;;  %v664_v45 = vrot.slane %v601_v43, 1 }
  0xb8   : > { %v617_v46 = vsel %vm512_vm2, 0.0, %v615_v44  ;;  %v666_v47 = vsel %vm566_vm0, %v664_v45, 0.0  ;;  %v797_v45 = vld [vmem:[%s1520_s9 + $0x8] sm:$0xff] }
  0xb9   : > { %v618_v48 = vsel %vm1399_vm3, 0.0, %v617_v46  ;;  %v667_v49 = vsel %vm1386_vm1, 0.0, %v666_v47  ;;  %817 = vmatpush.msra.mxu0 %v797_v45  ;;  %v796_v46 = vld [vmem:[%s1520_s9] sm:$0xff] }
  0xba   : > { %971 = vmatmul.msk.f32.vlgmr.msrb.gmra.mxu0 %vm518_vm4, %v618_v48  ;;  %972 = vmatmul.msk.f32.vlgmr.msrb.gmra.mxu1 %vm518_vm4, %v667_v49  ;;  %v1044_v47 = vld [vmem:[#allocation9] ss:$0 sm:$0xff] }
  0xbb   : > { %818 = vmatpush.msra.mxu0 %v796_v46 }
 0x137   : > { %v661_v54 = vpop.f32.mrf.mxu0  ;;  %v688_v58 = vpop.f32.mrf.mxu1 }
 0x139   : > { %v638_v55 = vpop.f32.mrf.mxu2 }
 0x13a   : > { %v662_v56 = vadd.f32 %v661_v54, %v638_v55 }
 0x13c   : > { %v691_v59 = vadd.f32 %v688_v58, %v662_v56 }
 0x13e   : > { %v696_v60 = vadd.f32 %v1042_v57, %v691_v59 }
 0x140   : > { %v697_v61 = vmax.f32 %v696_v60, 0.0 }
 0x142   : > { %973 = vmatmul.msk.f32.vlgmr.msra.gmra.mxu2 %vm518_vm4, %v697_v61 }
 0x1c5   : > { %v726_v10 = vpop.f32.mrf.mxu2 }
 0x1c6   : > { %v727_v11 = vadd.f32 %v1043_v7, %v726_v10 }
 0x1c8   : > { %v730_v13 = vmul.f32 0.70710677, %v727_v11  ;;  %v729_v42 = vmul.f32 0.5, %v727_v11 }
 0x1ca   : > { %v733_v15 = vand.u32 2147483647, %v730_v13  ;;  %vm731_vm5 = vcmp.ge.f32.partialorder %v730_v13, 0.0 }
 0x1cb   : > { %v732_v40 = vsel %vm731_vm5, 1.0, %v1226_v39 }
 0x1cc   : > { %v734_v17 = vmul.f32 0.3275911, %v733_v15  ;;  %v746_v24 = vsub.f32 0.0, %v733_v15 }
 0x1ce   : > { %v735_v19 = vadd.f32 1.0, %v734_v17  ;;  %v747_v27 = vmul.f32 %v746_v24, %v733_v15 }
 0x1d0   : > { %1045 = vrcp.f32 %v735_v19  ;;  %v748_v30 = vmul.f32 1.442695, %v747_v27 }
 0x1d2   : > { %1047 = vpow2.f32 %v748_v30 }
 0x1d6   : > { %v1046_v23 = vpop.eup %1045 }
 0x1d7   : > { %v737_v25 = vmul.f32 1.0614054, %v1046_v23 }
 0x1d8   : > { %v1048_v36 = vpop.eup %1047 }
 0x1d9   : > { %v738_v26 = vadd.f32 -1.4531521, %v737_v25 }
 0x1db   : > { %v739_v28 = vmul.f32 %v1046_v23, %v738_v26 }
 0x1dd   : > { %v740_v29 = vadd.f32 1.4214138, %v739_v28 }
 0x1df   : > { %v741_v31 = vmul.f32 %v1046_v23, %v740_v29 }
 0x1e1   : > { %v742_v32 = vadd.f32 -0.28449672, %v741_v31 }
 0x1e3   : > { %v743_v33 = vmul.f32 %v1046_v23, %v742_v32 }
 0x1e5   : > { %v744_v34 = vadd.f32 0.2548296, %v743_v33 }
 0x1e7   : > { %v745_v35 = vmul.f32 %v1046_v23, %v744_v34 }
 0x1e9   : > { %v750_v37 = vmul.f32 %v1048_v36, %v745_v35 }
 0x1eb   : > { %v751_v38 = vsub.f32 1.0, %v750_v37 }
 0x1ed   : > { %v752_v41 = vmul.f32 %v751_v38, %v732_v40 }
 0x1ef   : > { %v753_v43 = vadd.f32 1.0, %v752_v41 }
 0x1f1   : > { %v754_v44 = vmul.f32 %v753_v43, %v729_v42 }
 0x1f3   : > { %791 = vmatmul.f32.vlgmr.msra.gmra.mxu3 %v754_v44 }
 0x276   : > { %v792_v48 = vpop.f32.mrf.mxu3 }
 0x277   : > { %v793_v49 = vadd.f32 %v1044_v47, %v792_v48 }
 0x279   : > { %974 = vmatmul.msk.f32.vlgmr.msra.gmra.mxu0 %vm518_vm4, %v793_v49 }
 0x2f6   : > { %v820_v51 = vpop.f32.mrf.mxu0 }
 0x2f7   : > { %v824_v52 = vmul.f32 %v823_v50, %v820_v51 }
 0x2f9   : > { %975 = vmatpush.msk.msra.mxu1 %vm829_vm6, %v824_v52 }
 0x2fa   : > { %976 = vmatmul.msk.f32.vlgmr.msra.gmra.mxu1 %vm825_vm7, %v795_v53 }
 0x377   : > { %v850_v54 = vpop.f32.mrf.mxu1 }
 0x378   : > { %853 = vst [vmem:[%s481_s29] sm:$0x1] %v850_v54 }
 0x379 PF: > { %s25_s21 = sadd.s32 1, %s1217_s21  }
 0x37a   : > { %p22_p7 = scmp.ge.s32.totalorder %s25_s21, 4  }
 0x37c   :  { %24 = sbr.rel (!%p22_p7) target bundleno = 6 (0x6), region = 119 }
 0x381   :  { %871 = vsyncpa [#allocation3], 1 }
 0x382   :  { %873 = vsyncpa [#allocation3 + $0x1], 1 }
 0x383   :  { %874 = vsyncpa [#allocation5], 1 }
 0x384   :  { %875 = vsyncpa [#allocation8], 1 }

// kernel: dygcrn_cell_forward.3
= control target key start
LH: loop header
LB: loop body
LE: loop exit
PB: predicated region body
PF: predicated region fallthrough
CT: control target
= control target key end

     0   :  { %s5360_s6 = smov 1   ;;  %s5361_s10 = smov 2   ;;  %s6368_s0 = inlined_call_operand.smem [shape: u32[46], index: -1, kind: input, shape index: {}] }
   0x1   :  { %s5441_s5 = sld [smem:[%s6368_s0]]   ;;  %s5362_s14 = smov 5  }
   0x2   :  { %s5446_s9 = sld [smem:[%s6368_s0 + %s5360_s6]]   ;;  %s5363_s18 = smov 6  }
   0x3   :  { %s5451_s13 = sld [smem:[%s6368_s0 + %s5361_s10]]   ;;  %s5364_s22 = smov 7  }
   0x4   :  { %s5456_s17 = sld [smem:[%s6368_s0 + %s5362_s14]]   ;;  %s5365_s26 = smov 8  }
   0x5   :  { %s5461_s21 = sld [smem:[%s6368_s0 + %s5363_s18]]   ;;  %s5366_s30 = smov 9  }
   0x6   :  { %s5466_s25 = sld [smem:[%s6368_s0 + %s5364_s22]]   ;;  %s5367_s4 = smov 10  }
   0x7   :  { %6414 = sst [smem:[#allocation48_spill]] %s5441_s5  ;;  %s5368_s10 = smov 11  }
   0x8   :  { %6415 = sst [smem:[#allocation49_spill]] %s5446_s9  ;;  %s5369_s15 = smov 12  }
   0x9   :  { %6416 = sst [smem:[#allocation50_spill]] %s5451_s13  ;;  %s5370_s20 = smov 13  }
   0xa   :  { %6417 = sst [smem:[#allocation51_spill]] %s5456_s17  ;;  %s5372_s1 = smov 15  }
   0xb   :  { %s5471_s29 = sld [smem:[%s6368_s0 + %s5365_s26]]   ;;  %s5371_s26 = smov 14  }
   0xc   :  { %6418 = sst [smem:[#allocation52_spill]] %s5466_s25  ;;  %s5373_s7 = smov 16  }
   0xd   :  { %s5476_s3 = sld [smem:[%s6368_s0 + %s5366_s30]]   ;;  %s5375_s22 = smov 18  }
   0xe   :  { %s5481_s8 = sld [smem:[%s6368_s0 + %s5367_s4]]   ;;  %s5376_s28 = smov 19  }
   0xf   :  { %s5486_s14 = sld [smem:[%s6368_s0 + %s5368_s10]]  }
  0x10   :  { %s5491_s19 = sld [smem:[%s6368_s0 + %s5369_s15]]   ;;  %s5374_s15 = smov 17  }
  0x11   :  { %s5496_s24 = sld [smem:[%s6368_s0 + %s5370_s20]]  }
  0x12   :  { %s5501_s30 = sld [smem:[%s6368_s0 + %s5371_s26]]  }
  0x13   :  { %6419 = sst [smem:[#allocation53_spill]] %s5476_s3 }
  0x14   :  { %6420 = sst [smem:[#allocation54_spill]] %s5481_s8 }
  0x15   :  { %6421 = sst [smem:[#allocation55_spill]] %s5486_s14 }
  0x16   :  { %6422 = sst [smem:[#allocation56_spill]] %s5491_s19 }
  0x17   :  { %6423 = sst [smem:[#allocation57_spill]] %s5496_s24 }
  0x18   :  { %6424 = sst [smem:[#allocation58_spill]] %s5501_s30 }
  0x19   :  { %s5506_s6 = sld [smem:[%s6368_s0 + %s5372_s1]]  }
  0x1a   :  { %s5511_s12 = sld [smem:[%s6368_s0 + %s5373_s7]]   ;;  %s5377_s7 = smov 20  }
  0x1b   :  { %s5516_s20 = sld [smem:[%s6368_s0 + %s5374_s15]]   ;;  %s5378_s15 = smov 21  }
  0x1c   :  { %s5521_s27 = sld [smem:[%s6368_s0 + %s5375_s22]]   ;;  %s5379_s22 = smov 22  }
  0x1d   :  { %s5526_s4 = sld [smem:[%s6368_s0 + %s5376_s28]]   ;;  %s5380_s28 = smov 23  }
  0x1e   :  { %s5531_s13 = sld [smem:[%s6368_s0 + %s5377_s7]]   ;;  %s5381_s7 = smov 24  }
  0x1f   :  { %6425 = sst [smem:[#allocation59_spill]] %s5506_s6 }
  0x20   :  { %6426 = sst [smem:[#allocation60_spill]] %s5511_s12 }
  0x21   :  { %s5536_s12 = sld [smem:[%s6368_s0 + %s5378_s15]]   ;;  %s5382_s15 = smov 25  }
  0x22   :  { %6427 = sst [smem:[#allocation61_spill]] %s5521_s27 }
  0x23   :  { %6428 = sst [smem:[#allocation62_spill]] %s5526_s4 }
  0x24   :  { %s5541_s27 = sld [smem:[%s6368_s0 + %s5379_s22]]   ;;  %s5383_s22 = smov 26  }
  0x25   :  { %s5546_s24 = sld [smem:[%s6368_s0 + %s5380_s28]]   ;;  %s5384_s28 = smov 27  }
  0x26   :  { %s5551_s30 = sld [smem:[%s6368_s0 + %s5381_s7]]   ;;  %s5385_s7 = smov 28  }
  0x27   :  { %6429 = sst [smem:[#allocation63_spill]] %s5536_s12 }
  0x28   :  { %s5556_s19 = sld [smem:[%s6368_s0 + %s5382_s15]]   ;;  %s5386_s15 = smov 29  }
  0x2a   :  { %6430 = sst [smem:[#allocation64_spill]] %s5541_s27 }
  0x2b   :  { %6431 = sst [smem:[#allocation65_spill]] %s5546_s24 }
  0x2c   :  { %6432 = sst [smem:[#allocation66_spill]] %s5551_s30 }
  0x2d   :  { %s5561_s27 = sld [smem:[%s6368_s0 + %s5383_s22]]   ;;  %s5387_s22 = smov 30  }
  0x2e   :  { %6433 = sst [smem:[#allocation67_spill]] %s5556_s19 }
  0x2f   :  { %s5566_s24 = sld [smem:[%s6368_s0 + %s5384_s28]]   ;;  %s5388_s28 = smov 31  }
  0x30   :  { %s5571_s30 = sld [smem:[%s6368_s0 + %s5385_s7]]   ;;  %s5389_s7 = smov 32  }
  0x31   :  { %s5576_s19 = sld [smem:[%s6368_s0 + %s5386_s15]]   ;;  %s5390_s15 = smov 33  }
  0x32   :  { %s5581_s17 = sld [smem:[%s6368_s0 + %s5387_s22]]   ;;  %s5391_s22 = smov 34  }
  0x33   :  { %s5586_s14 = sld [smem:[%s6368_s0 + %s5388_s28]]   ;;  %s5392_s28 = smov 35  }
  0x34   :  { %s5591_s9 = sld [smem:[%s6368_s0 + %s5389_s7]]   ;;  %s5393_s7 = smov 36  }
  0x35   :  { %6434 = sst [smem:[#allocation68_spill]] %s5566_s24 }
  0x36   :  { %s5606_s5 = sld [smem:[%s6368_s0 + %s5392_s28]]   ;;  %s5396_s28 = smov 39  }
  0x37   :  { %6435 = sst [smem:[#allocation69_spill]] %s5576_s19 }
  0x38   :  { %6436 = sst [smem:[#allocation70_spill]] %s5581_s17 }
  0x39   :  { %6437 = sst [smem:[#allocation71_spill]] %s5586_s14 }
  0x3a   :  { %6438 = sst [smem:[#allocation72_spill]] %s5591_s9 }
  0x3b   :  { %s5596_s19 = sld [smem:[%s6368_s0 + %s5390_s15]]   ;;  %s5394_s15 = smov 37  }
  0x3c   :  { %s5601_s17 = sld [smem:[%s6368_s0 + %s5391_s22]]   ;;  %s5395_s22 = smov 38  }
  0x3d   :  { %6440 = sst [smem:[#allocation74_spill]] %s5606_s5 }
  0x3e   :  { %s5611_s3 = sld [smem:[%s6368_s0 + %s5393_s7]]   ;;  %s5397_s7 = smov 40  }
  0x3f   :  { %s5621_s14 = sld [smem:[%s6368_s0 + %s5395_s22]]   ;;  %s5399_s22 = smov 42  }
  0x40   :  { %s5626_s5 = sld [smem:[%s6368_s0 + %s5396_s28]]   ;;  %s5400_s28 = smov 43  }
  0x41   :  { %6439 = sst [smem:[#allocation73_spill]] %s5596_s19 }
  0x42   :  { %s5616_s19 = sld [smem:[%s6368_s0 + %s5394_s15]]   ;;  %s5398_s15 = smov 41  }
  0x43   :  { %s5636_s24 = sld [smem:[%s6368_s0 + %s5398_s15]]   ;;  %s5402_s15 = smov 45  }
  0x44   :  { %6441 = sst [smem:[#allocation75_spill]] %s5611_s3 }
  0x45   :  { %6442 = sst [smem:[#allocation76_spill]] %s5621_s14 }
  0x46   :  { %6443 = sst [smem:[#allocation77_spill]] %s5626_s5 }
  0x47   :  { %s5631_s3 = sld [smem:[%s6368_s0 + %s5397_s7]]   ;;  %s5401_s7 = smov 44  }
  0x48   :  { %s5641_s14 = sld [smem:[%s6368_s0 + %s5399_s22]]  }
  0x49   :  { %6445 = sst [smem:[#allocation79_spill]] %s5636_s24 }
  0x4a   :  { %s5646_s12 = sld [smem:[%s6368_s0 + %s5400_s28]]  }
  0x4b   :  { %s5656_s24 = sld [smem:[%s6368_s0 + %s5402_s15]]  }
  0x4d   :  { %6444 = sst [smem:[#allocation78_spill]] %s5631_s3 }
  0x4e   :  { %s5651_s3 = sld [smem:[%s6368_s0 + %s5401_s7]]  }
  0x4f   :  { %96 = vsyncpa [#allocation3], 0 }
  0x50   :  { %97 = vsyncpa [#allocation5], 0 }
  0x51   :  { %98 = vsyncpa [#allocation8], 0 }
  0x52   :  { %99 = vsyncpa [#allocation11], 0 }
  0x53   :  { %100 = vsyncpa [#allocation14], 0 }
  0x54   :  { %101 = vsyncpa [#allocation17], 0 }
  0x55   :  { %102 = vsyncpa [#allocation20], 0 }
  0x56   :  { %103 = vsyncpa [#allocation23], 0 }
  0x57   :  { %104 = vsyncpa [#allocation26], 0 }
  0x58   :  { %105 = vsyncpa [#allocation29], 0 }
  0x59   :  { %106 = vsyncpa [#allocation32], 0 }
  0x5a   :  { %107 = vsyncpa [#allocation35], 0  ;;  %s5658_s22 = smov 0  }
  0x5b LB: > { %s6446_s9 = sld [smem:[#allocation72_spill]]  ;;  %s5664_s0 = sadd.s32 4294967295, %s5358_s22   ;;  %s5358_s22 = sphi %s5658_s22, %s113_s22  }
  0x5c   : > { %s6447_s8 = sld [smem:[#allocation54_spill]]  ;;  %p4171_p0 = scmp.ge.s32.totalorder %s5358_s22, 1 }
  0x5d   : > { %s6448_s4 = sld [smem:[#allocation62_spill]]  ;;  %p1099_p1 = scmp.lt.s32.totalorder %s5358_s22, 3 }
  0x5e   : > { %s6449_s6 = sld [smem:[#allocation59_spill]] }
  0x5f   : > { %s6450_s5 = sld [smem:[#allocation77_spill]]  ;;  %p5668_p2 = pnand %p4171_p0, %p1099_p1 }
  0x60   : > { %s6451_s25 = sld [smem:[#allocation52_spill]]  ;;  %p4398_p3 = scmp.eq.s32.totalorder (!%p5668_p2), %s5664_s0, 0 }
  0x61   : > { %6452 = sst [smem:[#allocation80_spill]] %s5358_s22  ;;  %1103 = sbr.rel (%p5668_p2) target bundleno = 391 (0x187), region = 12 }
  0x62   : > { %s5403_s28 = smov (!%p5668_p2), [#allocation4]   ;;  %s1165_s2 = sshll.u32 (!%p5668_p2), %s6447_s8, 4  ;;  %s5677_s2 = int_to_ptr.hbm [resolvable:$true] %s1165_s2 }
  0x63   : > { %s1138_s1 = sshll.u32 (!%p5668_p2), %s5403_s28, 4  ;;  %s1139_s1 = int_to_ptr.vmem [resolvable:$true] %s1138_s1 }
  0x66   : > { %s1136_s26 = sshll.u32 %s6451_s25, 4  ;;  %s4694_s11 = scalar_lea.hbm %s6451_s25, 16  ;;  %s1137_s26 = int_to_ptr.hbm [resolvable:$true] %s1136_s26 }
  0x67   : > { %s4688_s7 = sshra.s32 %s1137_s26, 4  ;;  %s4689_s7 = int_to_ptr.hbm [resolvable:$true] %s4688_s7 }
  0x68   : > { %s4690_s10 = scalar_lea.hbm %s4689_s7, 16  ;;  %p4695_p7 = scmp.lt.s32.totalorder %s4689_s7, %s6451_s25 }
  0x69   : > { %p4691_p4 = scmp.ne.s32.totalorder %s4689_s7, %s4690_s10  ;;  %p4696_p8 = scmp.lt.s32.totalorder %s4694_s11, %s4690_s10 }
  0x6b   : > { %p4692_p5 = pnand %p4691_p4, %p4398_p3  ;;  %p4697_p9 = por %p4696_p8, %p4695_p7 }
  0x6d   : > { %p4693_p6 = pneg %p4692_p5 }
  0x6f   : > { %p4698_p10 = pnand %p4697_p9, %p4693_p6 }
  0x71   : > { %4701 = shalt.err (!%p4698_p10)
}
  0x72   : > { %s6390_s15 = smov 128   ;;  %s6394_s16 = smov 8  }
  0x73   : > { %4313 = dma.hbm_to_vmem [thread:$0]  (%p4398_p3), %s1137_s26, 256, %s1139_s1, [#allocation5], %s6390_s15, %s6390_s15, %s6394_s16  }
  0x74   : > { %s5406_s18 = smov [#allocation7]   ;;  %s1207_s7 = sshll.u32 %s5516_s20, 4  ;;  %s1208_s7 = int_to_ptr.hbm [resolvable:$true] %s1207_s7 }
  0x75   : > { %s1167_s28 = sshll.u32 %s5406_s18, 4  ;;  %s4716_s10 = sshra.s32 %s5677_s2, 4  ;;  %s1168_s28 = int_to_ptr.vmem [resolvable:$true] %s1167_s28  ;;  %s4717_s10 = int_to_ptr.hbm [resolvable:$true] %s4716_s10 }
  0x76   : > { %s4718_s11 = scalar_lea.hbm %s4717_s10, 256  ;;  %s4722_s25 = scalar_lea.hbm %s6447_s8, 256 }
  0x77   : > { %p4719_p11 = scmp.ne.s32.totalorder %s4717_s10, %s4718_s11  ;;  %p4723_p0 = scmp.lt.s32.totalorder %s4717_s10, %s6447_s8 }
  0x78   : > { %p4724_p1 = scmp.lt.s32.totalorder %s4722_s25, %s4718_s11 }
  0x79   : > { %p4720_p12 = pnand %p4719_p11, %p4398_p3 }
  0x7a   : > { %p4725_p4 = por %p4724_p1, %p4723_p0 }
  0x7b   : > { %p4721_p13 = pneg %p4720_p12 }
  0x7d   : > { %p4726_p5 = pnand %p4725_p4, %p4721_p13 }
  0x7f   : > { %4729 = shalt.err (!%p4726_p5)
}
  0x80   : > { %s6392_s22 = smov 256   ;;  %s6396_s26 = smov 16  }
  0x81   : > { %4317 = dma.hbm_to_vmem [thread:$0]  (%p4398_p3), %s5677_s2, 4096, %s1168_s28, [#allocation8], %s6392_s22, %s6392_s22, %s6396_s26  }
  0x82   : > { %s5409_s1 = smov [#allocation10]   ;;  %s1234_s25 = sshll.u32 %s5531_s13, 4  ;;  %s5701_s25 = int_to_ptr.hbm [resolvable:$true] %s1234_s25 }
  0x83   : > { %s1209_s18 = sshll.u32 %s5409_s1, 4  ;;  %s4744_s10 = sshra.s32 %s1208_s7, 4  ;;  %s1210_s18 = int_to_ptr.vmem [resolvable:$true] %s1209_s18  ;;  %s4745_s10 = int_to_ptr.hbm [resolvable:$true] %s4744_s10 }
  0x84   : > { %s4746_s11 = scalar_lea.hbm %s4745_s10, 1  ;;  %s4750_s15 = scalar_lea.hbm %s5516_s20, 1 }
  0x85   : > { %p4747_p6 = scmp.ne.s32.totalorder %s4745_s10, %s4746_s11  ;;  %p4751_p9 = scmp.lt.s32.totalorder %s4745_s10, %s5516_s20 }
  0x86   : > { %p4752_p10 = scmp.lt.s32.totalorder %s4750_s15, %s4746_s11 }
  0x87   : > { %p4748_p7 = pnand %p4747_p6, %p4398_p3 }
  0x88   : > { %p4753_p11 = por %p4752_p10, %p4751_p9 }
  0x89   : > { %p4749_p8 = pneg %p4748_p7 }
  0x8b   : > { %p4754_p12 = pnand %p4753_p11, %p4749_p8 }
  0x8d   : > { %4757 = shalt.err (!%p4754_p12)
}
  0x8e   : > { %4321 = dma.hbm_to_vmem [thread:$0]  (%p4398_p3), %s1208_s7, 16, %s1210_s18, [#allocation11]  }
  0x8f   : > { %s1269_s2 = sshll.u32 %s5561_s27, 4  ;;  %s5410_s28 = smov [#allocation13]   ;;  %s5710_s2 = int_to_ptr.hbm [resolvable:$true] %s1269_s2 }
  0x90   : > { %s1236_s1 = sshll.u32 %s5410_s28, 4  ;;  %s4772_s22 = sshra.s32 %s5701_s25, 4  ;;  %s1237_s1 = int_to_ptr.vmem [resolvable:$true] %s1236_s1  ;;  %s4773_s22 = int_to_ptr.hbm [resolvable:$true] %s4772_s22 }
  0x91   : > { %s4774_s15 = scalar_lea.hbm %s4773_s22, 1  ;;  %s4778_s10 = scalar_lea.hbm %s5531_s13, 1 }
  0x92   : > { %p4775_p13 = scmp.ne.s32.totalorder %s4773_s22, %s4774_s15  ;;  %p4779_p4 = scmp.lt.s32.totalorder %s4773_s22, %s5531_s13 }
  0x93   : > { %p4780_p5 = scmp.lt.s32.totalorder %s4778_s10, %s4774_s15 }
  0x94   : > { %p4776_p0 = pnand %p4775_p13, %p4398_p3 }
  0x95   : > { %p4781_p6 = por %p4780_p5, %p4779_p4 }
  0x96   : > { %p4777_p1 = pneg %p4776_p0 }
  0x98   : > { %p4782_p7 = pnand %p4781_p6, %p4777_p1 }
  0x9a   : > { %4785 = shalt.err (!%p4782_p7)
}
  0x9b   : > { %4325 = dma.hbm_to_vmem [thread:$0]  (%p4398_p3), %s5701_s25, 16, %s1237_s1, [#allocation14]  }
  0x9c   : > { %s5411_s7 = smov [#allocation16]   ;;  %s1297_s11 = sshll.u32 %s5571_s30, 4  ;;  %s5721_s11 = int_to_ptr.hbm [resolvable:$true] %s1297_s11 }
  0x9d   : > { %s1271_s18 = sshll.u32 %s5411_s7, 4  ;;  %s4800_s22 = sshra.s32 %s5710_s2, 4  ;;  %s1272_s18 = int_to_ptr.vmem [resolvable:$true] %s1271_s18  ;;  %s4801_s22 = int_to_ptr.hbm [resolvable:$true] %s4800_s22 }
  0x9e   : > { %s4802_s28 = scalar_lea.hbm %s4801_s22, 16  ;;  %s4806_s15 = scalar_lea.hbm %s5561_s27, 16 }
  0x9f   : > { %p4803_p8 = scmp.ne.s32.totalorder %s4801_s22, %s4802_s28  ;;  %p4807_p11 = scmp.lt.s32.totalorder %s4801_s22, %s5561_s27 }
  0xa0   : > { %p4808_p12 = scmp.lt.s32.totalorder %s4806_s15, %s4802_s28 }
  0xa1   : > { %p4804_p9 = pnand %p4803_p8, %p4398_p3 }
  0xa2   : > { %p4809_p13 = por %p4808_p12, %p4807_p11 }
  0xa3   : > { %p4805_p10 = pneg %p4804_p9 }
  0xa5   : > { %p4810_p0 = pnand %p4809_p13, %p4805_p10 }
  0xa7   : > { %4813 = shalt.err (!%p4810_p0)
}
  0xa8   : > { %s6454_s25 = smov 128   ;;  %s1330_s1 = sshll.u32 %s6446_s9, 4  ;;  %s5735_s1 = int_to_ptr.hbm [resolvable:$true] %s1330_s1 }
  0xa9   : > { %4329 = dma.hbm_to_vmem [thread:$0]  (%p4398_p3), %s5710_s2, 256, %s1272_s18, [#allocation17], %s6454_s25, %s6454_s25, %s6394_s16  }
  0xaa   : > { %s5412_s10 = smov [#allocation19]   ;;  %s4828_s22 = sshra.s32 %s5721_s11, 4  ;;  %s4829_s22 = int_to_ptr.hbm [resolvable:$true] %s4828_s22 }
  0xab   : > { %s1299_s7 = sshll.u32 %s5412_s10, 4  ;;  %s4830_s28 = scalar_lea.hbm %s4829_s22, 256  ;;  %s1300_s7 = int_to_ptr.vmem [resolvable:$true] %s1299_s7 }
  0xac   : > { %p4831_p1 = scmp.ne.s32.totalorder %s4829_s22, %s4830_s28  ;;  %s4834_s15 = scalar_lea.hbm %s5571_s30, 256 }
  0xad   : > { %p4835_p6 = scmp.lt.s32.totalorder %s4829_s22, %s5571_s30  ;;  %p4836_p7 = scmp.lt.s32.totalorder %s4834_s15, %s4830_s28 }
  0xae   : > { %p4832_p4 = pnand %p4831_p1, %p4398_p3 }
  0xaf   : > { %p4837_p8 = por %p4836_p7, %p4835_p6 }
  0xb0   : > { %p4833_p5 = pneg %p4832_p4 }
  0xb2   : > { %p4838_p9 = pnand %p4837_p8, %p4833_p5 }
  0xb4   : > { %4841 = shalt.err (!%p4838_p9)
}
  0xb5   : > { %s6455_s2 = smov 256   ;;  %s5413_s18 = smov [#allocation22]  }
  0xb6   : > { %4333 = dma.hbm_to_vmem [thread:$0]  (%p4398_p3), %s5721_s11, 4096, %s1300_s7, [#allocation20], %s6455_s2, %s6455_s2, %s6396_s26  }
  0xb7   : > { %s1332_s10 = sshll.u32 %s5413_s18, 4  ;;  %s1354_s16 = sshll.u32 %s5601_s17, 4  ;;  %s1333_s10 = int_to_ptr.vmem [resolvable:$true] %s1332_s10  ;;  %s5749_s16 = int_to_ptr.hbm [resolvable:$true] %s1354_s16 }
  0xb8   : > { %s4856_s22 = sshra.s32 %s5735_s1, 4  ;;  %s4862_s15 = scalar_lea.hbm %s6446_s9, 8  ;;  %s4857_s22 = int_to_ptr.hbm [resolvable:$true] %s4856_s22 }
  0xb9   : > { %s4858_s28 = scalar_lea.hbm %s4857_s22, 8  ;;  %p4863_p13 = scmp.lt.s32.totalorder %s4857_s22, %s6446_s9 }
  0xba   : > { %p4859_p10 = scmp.ne.s32.totalorder %s4857_s22, %s4858_s28  ;;  %p4864_p0 = scmp.lt.s32.totalorder %s4862_s15, %s4858_s28 }
  0xbc   : > { %p4860_p11 = pnand %p4859_p10, %p4398_p3  ;;  %p4865_p1 = por %p4864_p0, %p4863_p13 }
  0xbe   : > { %p4861_p12 = pneg %p4860_p11 }
  0xc0   : > { %p4866_p4 = pnand %p4865_p1, %p4861_p12 }
  0xc2   : > { %4869 = shalt.err (!%p4866_p4)
}
  0xc3   : > { %4337 = dma.hbm_to_vmem [thread:$0]  (%p4398_p3), %s5735_s1, 128, %s1333_s10, [#allocation23]  }
  0xc4   : > { %s1381_s11 = sshll.u32 %s5616_s19, 4  ;;  %s5414_s7 = smov [#allocation25]   ;;  %s5760_s11 = int_to_ptr.hbm [resolvable:$true] %s1381_s11 }
  0xc5   : > { %s1356_s18 = sshll.u32 %s5414_s7, 4  ;;  %s4884_s22 = sshra.s32 %s5749_s16, 4  ;;  %s1357_s18 = int_to_ptr.vmem [resolvable:$true] %s1356_s18  ;;  %s4885_s22 = int_to_ptr.hbm [resolvable:$true] %s4884_s22 }
  0xc6   : > { %s4886_s28 = scalar_lea.hbm %s4885_s22, 8  ;;  %s4890_s15 = scalar_lea.hbm %s5601_s17, 8 }
  0xc7   : > { %p4887_p5 = scmp.ne.s32.totalorder %s4885_s22, %s4886_s28  ;;  %p4891_p8 = scmp.lt.s32.totalorder %s4885_s22, %s5601_s17 }
  0xc8   : > { %p4892_p9 = scmp.lt.s32.totalorder %s4890_s15, %s4886_s28 }
  0xc9   : > { %p4888_p6 = pnand %p4887_p5, %p4398_p3 }
  0xca   : > { %p4893_p10 = por %p4892_p9, %p4891_p8 }
  0xcb   : > { %p4889_p7 = pneg %p4888_p6 }
  0xcd   : > { %p4894_p11 = pnand %p4893_p10, %p4889_p7 }
  0xcf   : > { %4897 = shalt.err (!%p4894_p11)
}
  0xd0   : > { %4341 = dma.hbm_to_vmem [thread:$0]  (%p4398_p3), %s5749_s16, 128, %s1357_s18, [#allocation26]  }
  0xd1   : > { %s5415_s1 = smov [#allocation28]   ;;  %s1405_s7 = sshll.u32 %s6450_s5, 4  ;;  %s5771_s7 = int_to_ptr.hbm [resolvable:$true] %s1405_s7 }
  0xd2   : > { %s1383_s10 = sshll.u32 %s5415_s1, 4  ;;  %s4912_s22 = sshra.s32 %s5760_s11, 4  ;;  %s1384_s10 = int_to_ptr.vmem [resolvable:$true] %s1383_s10  ;;  %s4913_s22 = int_to_ptr.hbm [resolvable:$true] %s4912_s22 }
  0xd3   : > { %s4914_s28 = scalar_lea.hbm %s4913_s22, 8  ;;  %s4918_s15 = scalar_lea.hbm %s5616_s19, 8 }
  0xd4   : > { %p4915_p12 = scmp.ne.s32.totalorder %s4913_s22, %s4914_s28  ;;  %p4919_p1 = scmp.lt.s32.totalorder %s4913_s22, %s5616_s19 }
  0xd5   : > { %p4920_p4 = scmp.lt.s32.totalorder %s4918_s15, %s4914_s28 }
  0xd6   : > { %p4916_p13 = pnand %p4915_p12, %p4398_p3 }
  0xd7   : > { %p4921_p5 = por %p4920_p4, %p4919_p1 }
  0xd8   : > { %p4917_p0 = pneg %p4916_p13 }
  0xda   : > { %p4922_p6 = pnand %p4921_p5, %p4917_p0 }
  0xdc   : > { %4925 = shalt.err (!%p4922_p6)
}
  0xdd   : > { %4345 = dma.hbm_to_vmem [thread:$0]  (%p4398_p3), %s5760_s11, 128, %s1384_s10, [#allocation29]  }
  0xde   : > { %s5416_s16 = smov [#allocation31]   ;;  %s1122_s1 = sshll.u32 %s5461_s21, 4  ;;  %s5782_s1 = int_to_ptr.hbm [resolvable:$true] %s1122_s1 }
  0xdf   : > { %s1407_s18 = sshll.u32 %s5416_s16, 4  ;;  %s4940_s22 = sshra.s32 %s5771_s7, 4  ;;  %s1408_s18 = int_to_ptr.vmem [resolvable:$true] %s1407_s18  ;;  %s4941_s22 = int_to_ptr.hbm [resolvable:$true] %s4940_s22 }
  0xe0   : > { %s4942_s28 = scalar_lea.hbm %s4941_s22, 1  ;;  %s4946_s15 = scalar_lea.hbm %s6450_s5, 1 }
  0xe1   : > { %p4943_p7 = scmp.ne.s32.totalorder %s4941_s22, %s4942_s28  ;;  %p4947_p10 = scmp.lt.s32.totalorder %s4941_s22, %s6450_s5 }
  0xe2   : > { %p4948_p11 = scmp.lt.s32.totalorder %s4946_s15, %s4942_s28 }
  0xe3   : > { %p4944_p8 = pnand %p4943_p7, %p4398_p3 }
  0xe4   : > { %p4949_p12 = por %p4948_p11, %p4947_p10 }
  0xe5   : > { %p4945_p9 = pneg %p4944_p8 }
  0xe7   : > { %p4950_p13 = pnand %p4949_p12, %p4945_p9 }
  0xe9   : > { %4953 = shalt.err (!%p4950_p13)
}
  0xea   : > { %4349 = dma.hbm_to_vmem [thread:$0]  (%p4398_p3), %s5771_s7, 16, %s1408_s18, [#allocation32]  }
  0xeb   : > { %s1151_s11 = sshll.u32 %s5471_s29, 4  ;;  %s5417_s10 = smov [#allocation2]   ;;  %s5793_s11 = int_to_ptr.hbm [resolvable:$true] %s1151_s11 }
  0xec   : > { %s1124_s16 = sshll.u32 %s5417_s10, 4  ;;  %s4968_s22 = sshra.s32 %s5782_s1, 4  ;;  %s1125_s16 = int_to_ptr.vmem [resolvable:$true] %s1124_s16  ;;  %s4969_s22 = int_to_ptr.hbm [resolvable:$true] %s4968_s22 }
  0xed   : > { %s4970_s28 = scalar_lea.hbm %s4969_s22, 256  ;;  %s4974_s15 = scalar_lea.hbm %s5461_s21, 256 }
  0xee   : > { %p4971_p0 = scmp.ne.s32.totalorder %s4969_s22, %s4970_s28  ;;  %p4975_p5 = scmp.lt.s32.totalorder %s4969_s22, %s5461_s21 }
  0xef   : > { %p4976_p6 = scmp.lt.s32.totalorder %s4974_s15, %s4970_s28 }
  0xf0   : > { %p4972_p1 = pnand %p4971_p0, %p4398_p3 }
  0xf1   : > { %p4977_p7 = por %p4976_p6, %p4975_p5 }
  0xf2   : > { %p4973_p4 = pneg %p4972_p1 }
  0xf4   : > { %p4978_p8 = pnand %p4977_p7, %p4973_p4 }
  0xf6   : > { %4981 = shalt.err (!%p4978_p8)
}
  0xf7   : > { %s6456_s7 = smov 8   ;;  %s5418_s18 = smov [#allocation6]  }
  0xf8   : > { %4311 = dma.hbm_to_vmem [thread:$0]  (%p4398_p3), %s5782_s1, 4096, %s1125_s16, [#allocation3], %s6454_s25, %s6454_s25, %s6456_s7  }
  0xf9   : > { %s1153_s10 = sshll.u32 %s5418_s18, 4  ;;  %s1192_s26 = sshll.u32 %s6449_s6, 4  ;;  %s1154_s10 = int_to_ptr.vmem [resolvable:$true] %s1153_s10  ;;  %s5807_s26 = int_to_ptr.hbm [resolvable:$true] %s1192_s26 }
  0xfa   : > { %s4996_s22 = sshra.s32 %s5793_s11, 4  ;;  %s5002_s15 = scalar_lea.hbm %s5471_s29, 8  ;;  %s4997_s22 = int_to_ptr.hbm [resolvable:$true] %s4996_s22 }
  0xfb   : > { %s4998_s28 = scalar_lea.hbm %s4997_s22, 8  ;;  %p5003_p12 = scmp.lt.s32.totalorder %s4997_s22, %s5471_s29 }
  0xfc   : > { %p4999_p9 = scmp.ne.s32.totalorder %s4997_s22, %s4998_s28  ;;  %p5004_p13 = scmp.lt.s32.totalorder %s5002_s15, %s4998_s28 }
  0xfe   : > { %p5000_p10 = pnand %p4999_p9, %p4398_p3  ;;  %p5005_p0 = por %p5004_p13, %p5003_p12 }
 0x100   : > { %p5001_p11 = pneg %p5000_p10 }
 0x102   : > { %p5006_p1 = pnand %p5005_p0, %p5001_p11 }
 0x104   : > { %5009 = shalt.err (!%p5006_p1)
}
 0x105   : > { %4315 = dma.hbm_to_vmem [thread:$0]  (%p4398_p3), %s5793_s11, 128, %s1154_s10, [#allocation5]  }
 0x106   : > { %s1222_s1 = sshll.u32 %s6448_s4, 4  ;;  %s5419_s16 = smov [#allocation9]   ;;  %s5818_s1 = int_to_ptr.hbm [resolvable:$true] %s1222_s1 }
 0x107   : > { %s1194_s18 = sshll.u32 %s5419_s16, 4  ;;  %s5024_s22 = sshra.s32 %s5807_s26, 4  ;;  %s1195_s18 = int_to_ptr.vmem [resolvable:$true] %s1194_s18  ;;  %s5025_s22 = int_to_ptr.hbm [resolvable:$true] %s5024_s22 }
 0x108   : > { %s5026_s28 = scalar_lea.hbm %s5025_s22, 1  ;;  %s5030_s15 = scalar_lea.hbm %s6449_s6, 1 }
 0x109   : > { %p5027_p4 = scmp.ne.s32.totalorder %s5025_s22, %s5026_s28  ;;  %p5031_p7 = scmp.lt.s32.totalorder %s5025_s22, %s6449_s6 }
 0x10a   : > { %p5032_p8 = scmp.lt.s32.totalorder %s5030_s15, %s5026_s28 }
 0x10b   : > { %p5028_p5 = pnand %p5027_p4, %p4398_p3 }
 0x10c   : > { %p5033_p9 = por %p5032_p8, %p5031_p7 }
 0x10d   : > { %p5029_p6 = pneg %p5028_p5 }
 0x10f   : > { %p5034_p10 = pnand %p5033_p9, %p5029_p6 }
 0x111   : > { %5037 = shalt.err (!%p5034_p10)
}
 0x112   : > { %s6457_s11 = sld [smem:[#allocation63_spill]]  ;;  %s5420_s10 = smov [#allocation12]  }
 0x113   : > { %4319 = dma.hbm_to_vmem [thread:$0]  (%p4398_p3), %s5807_s26, 16, %s1195_s18, [#allocation8]  }
 0x114   : > { %s1224_s16 = sshll.u32 %s5420_s10, 4  ;;  %s5052_s22 = sshra.s32 %s5818_s1, 4  ;;  %s1225_s16 = int_to_ptr.vmem [resolvable:$true] %s1224_s16  ;;  %s5053_s22 = int_to_ptr.hbm [resolvable:$true] %s5052_s22 }
 0x115   : > { %s5054_s28 = scalar_lea.hbm %s5053_s22, 8  ;;  %s5058_s15 = scalar_lea.hbm %s6448_s4, 8 }
 0x116   : > { %p5055_p11 = scmp.ne.s32.totalorder %s5053_s22, %s5054_s28  ;;  %p5059_p0 = scmp.lt.s32.totalorder %s5053_s22, %s6448_s4 }
 0x117   : > { %p5060_p1 = scmp.lt.s32.totalorder %s5058_s15, %s5054_s28 }
 0x118   : > { %s1246_s5 = sshll.u32 %s6457_s11, 4  ;;  %p5056_p12 = pnand %p5055_p11, %p4398_p3  ;;  %s5829_s5 = int_to_ptr.hbm [resolvable:$true] %s1246_s5 }
 0x119   : > { %p5061_p4 = por %p5060_p1, %p5059_p0 }
 0x11a   : > { %p5057_p13 = pneg %p5056_p12 }
 0x11c   : > { %p5062_p5 = pnand %p5061_p4, %p5057_p13 }
 0x11e   : > { %5065 = shalt.err (!%p5062_p5)
}
 0x11f   : > { %s6458_s26 = sld [smem:[#allocation68_spill]]  ;;  %s5421_s10 = smov [#allocation15]  }
 0x120   : > { %4323 = dma.hbm_to_vmem [thread:$0]  (%p4398_p3), %s5818_s1, 128, %s1225_s16, [#allocation11]  }
 0x121   : > { %s1248_s6 = sshll.u32 %s5421_s10, 4  ;;  %s5080_s22 = sshra.s32 %s5829_s5, 4  ;;  %s1249_s6 = int_to_ptr.vmem [resolvable:$true] %s1248_s6  ;;  %s5081_s22 = int_to_ptr.hbm [resolvable:$true] %s5080_s22 }
 0x122   : > { %s5082_s28 = scalar_lea.hbm %s5081_s22, 1  ;;  %s5086_s15 = scalar_lea.hbm %s6457_s11, 1 }
 0x123   : > { %p5083_p6 = scmp.ne.s32.totalorder %s5081_s22, %s5082_s28  ;;  %p5087_p9 = scmp.lt.s32.totalorder %s5081_s22, %s6457_s11 }
 0x124   : > { %p5088_p10 = scmp.lt.s32.totalorder %s5086_s15, %s5082_s28 }
 0x125   : > { %s1283_s18 = sshll.u32 %s6458_s26, 4  ;;  %p5084_p7 = pnand %p5083_p6, %p4398_p3  ;;  %s5840_s18 = int_to_ptr.hbm [resolvable:$true] %s1283_s18 }
 0x126   : > { %p5089_p11 = por %p5088_p10, %p5087_p9 }
 0x127   : > { %p5085_p8 = pneg %p5084_p7 }
 0x129   : > { %p5090_p12 = pnand %p5089_p11, %p5085_p8 }
 0x12b   : > { %5093 = shalt.err (!%p5090_p12)
}
 0x12c   : > { %s6459_s1 = sld [smem:[#allocation71_spill]]  ;;  %s5422_s16 = smov [#allocation18]  }
 0x12d   : > { %4327 = dma.hbm_to_vmem [thread:$0]  (%p4398_p3), %s5829_s5, 16, %s1249_s6, [#allocation14]  }
 0x12e   : > { %s1285_s10 = sshll.u32 %s5422_s16, 4  ;;  %s5108_s22 = sshra.s32 %s5840_s18, 4  ;;  %s1286_s10 = int_to_ptr.vmem [resolvable:$true] %s1285_s10  ;;  %s5109_s22 = int_to_ptr.hbm [resolvable:$true] %s5108_s22 }
 0x12f   : > { %s5110_s28 = scalar_lea.hbm %s5109_s22, 256  ;;  %s5114_s15 = scalar_lea.hbm %s6458_s26, 256 }
 0x130   : > { %p5111_p13 = scmp.ne.s32.totalorder %s5109_s22, %s5110_s28  ;;  %p5115_p4 = scmp.lt.s32.totalorder %s5109_s22, %s6458_s26 }
 0x131   : > { %p5116_p5 = scmp.lt.s32.totalorder %s5114_s15, %s5110_s28 }
 0x132   : > { %s1318_s4 = sshll.u32 %s6459_s1, 4  ;;  %p5112_p0 = pnand %p5111_p13, %p4398_p3  ;;  %s5851_s4 = int_to_ptr.hbm [resolvable:$true] %s1318_s4 }
 0x133   : > { %p5117_p6 = por %p5116_p5, %p5115_p4 }
 0x134   : > { %p5113_p1 = pneg %p5112_p0 }
 0x136   : > { %p5118_p7 = pnand %p5117_p6, %p5113_p1 }
 0x138   : > { %5121 = shalt.err (!%p5118_p7)
}
 0x139   : > { %s6460_s5 = smov 16   ;;  %s6461_s6 = sld [smem:[#allocation73_spill]] }
 0x13a   : > { %4331 = dma.hbm_to_vmem [thread:$0]  (%p4398_p3), %s5840_s18, 4096, %s1286_s10, [#allocation17], %s6455_s2, %s6455_s2, %s6460_s5  }
 0x13b   : > { %s5423_s8 = smov [#allocation21]   ;;  %s5136_s22 = sshra.s32 %s5851_s4, 4  ;;  %s5137_s22 = int_to_ptr.hbm [resolvable:$true] %s5136_s22 }
 0x13c   : > { %s1320_s9 = sshll.u32 %s5423_s8, 4  ;;  %s5138_s28 = scalar_lea.hbm %s5137_s22, 1  ;;  %s1321_s9 = int_to_ptr.vmem [resolvable:$true] %s1320_s9 }
 0x13d   : > { %p5139_p8 = scmp.ne.s32.totalorder %s5137_s22, %s5138_s28  ;;  %s5142_s15 = scalar_lea.hbm %s6459_s1, 1 }
 0x13e   : > { %p5143_p11 = scmp.lt.s32.totalorder %s5137_s22, %s6459_s1  ;;  %p5144_p12 = scmp.lt.s32.totalorder %s5142_s15, %s5138_s28 }
 0x13f   : > { %s1342_s16 = sshll.u32 %s6461_s6, 4  ;;  %p5140_p9 = pnand %p5139_p8, %p4398_p3  ;;  %s5865_s16 = int_to_ptr.hbm [resolvable:$true] %s1342_s16 }
 0x140   : > { %p5145_p13 = por %p5144_p12, %p5143_p11 }
 0x141   : > { %p5141_p10 = pneg %p5140_p9 }
 0x143   : > { %p5146_p0 = pnand %p5145_p13, %p5141_p10 }
 0x145   : > { %5149 = shalt.err (!%p5146_p0)
}
 0x146   : > { %s6462_s8 = sld [smem:[#allocation74_spill]]  ;;  %s5424_s2 = smov [#allocation24]  }
 0x147   : > { %4335 = dma.hbm_to_vmem [thread:$0]  (%p4398_p3), %s5851_s4, 16, %s1321_s9, [#allocation20]  }
 0x148   : > { %s1344_s18 = sshll.u32 %s5424_s2, 4  ;;  %s5164_s5 = sshra.s32 %s5865_s16, 4  ;;  %s1345_s18 = int_to_ptr.vmem [resolvable:$true] %s1344_s18  ;;  %s5165_s5 = int_to_ptr.hbm [resolvable:$true] %s5164_s5 }
 0x149   : > { %s5166_s22 = scalar_lea.hbm %s5165_s5, 1  ;;  %s5170_s28 = scalar_lea.hbm %s6461_s6, 1 }
 0x14a   : > { %p5167_p1 = scmp.ne.s32.totalorder %s5165_s5, %s5166_s22  ;;  %p5171_p6 = scmp.lt.s32.totalorder %s5165_s5, %s6461_s6 }
 0x14b   : > { %p5172_p7 = scmp.lt.s32.totalorder %s5170_s28, %s5166_s22 }
 0x14c   : > { %s1366_s10 = sshll.u32 %s6462_s8, 4  ;;  %p5168_p4 = pnand %p5167_p1, %p4398_p3  ;;  %s5876_s10 = int_to_ptr.hbm [resolvable:$true] %s1366_s10 }
 0x14d   : > { %p5173_p8 = por %p5172_p7, %p5171_p6 }
 0x14e   : > { %p5169_p5 = pneg %p5168_p4 }
 0x150   : > { %p5174_p9 = pnand %p5173_p8, %p5169_p5 }
 0x152   : > { %5177 = shalt.err (!%p5174_p9)
}
 0x153   : > { %s6463_s9 = sld [smem:[#allocation76_spill]]  ;;  %s5425_s15 = smov [#allocation27]  }
 0x154   : > { %4339 = dma.hbm_to_vmem [thread:$0]  (%p4398_p3), %s5865_s16, 16, %s1345_s18, [#allocation23]  }
 0x155   : > { %s1368_s2 = sshll.u32 %s5425_s15, 4  ;;  %s5192_s5 = sshra.s32 %s5876_s10, 4  ;;  %s1369_s2 = int_to_ptr.vmem [resolvable:$true] %s1368_s2  ;;  %s5193_s5 = int_to_ptr.hbm [resolvable:$true] %s5192_s5 }
 0x156   : > { %s5194_s22 = scalar_lea.hbm %s5193_s5, 1  ;;  %s5198_s28 = scalar_lea.hbm %s6462_s8, 1 }
 0x157   : > { %p5195_p10 = scmp.ne.s32.totalorder %s5193_s5, %s5194_s22  ;;  %p5199_p13 = scmp.lt.s32.totalorder %s5193_s5, %s6462_s8 }
 0x158   : > { %p5200_p0 = scmp.lt.s32.totalorder %s5198_s28, %s5194_s22 }
 0x159   : > { %s1393_s4 = sshll.u32 %s6463_s9, 4  ;;  %p5196_p11 = pnand %p5195_p10, %p4398_p3  ;;  %s5887_s4 = int_to_ptr.hbm [resolvable:$true] %s1393_s4 }
 0x15a   : > { %p5201_p1 = por %p5200_p0, %p5199_p13 }
 0x15b   : > { %p5197_p12 = pneg %p5196_p11 }
 0x15d   : > { %p5202_p4 = pnand %p5201_p1, %p5197_p12 }
 0x15f   : > { %5205 = shalt.err (!%p5202_p4)
}
 0x160   : > { %s6464_s16 = sld [smem:[#allocation78_spill]]  ;;  %s5426_s18 = smov [#allocation30]  }
 0x161   : > { %4343 = dma.hbm_to_vmem [thread:$0]  (%p4398_p3), %s5876_s10, 16, %s1369_s2, [#allocation26]  }
 0x162   : > { %s1395_s15 = sshll.u32 %s5426_s18, 4  ;;  %s5220_s5 = sshra.s32 %s5887_s4, 4  ;;  %s1396_s15 = int_to_ptr.vmem [resolvable:$true] %s1395_s15  ;;  %s5221_s5 = int_to_ptr.hbm [resolvable:$true] %s5220_s5 }
 0x163   : > { %s5222_s22 = scalar_lea.hbm %s5221_s5, 1  ;;  %s5226_s28 = scalar_lea.hbm %s6463_s9, 1 }
 0x164   : > { %p5223_p5 = scmp.ne.s32.totalorder %s5221_s5, %s5222_s22  ;;  %p5227_p8 = scmp.lt.s32.totalorder %s5221_s5, %s6463_s9 }
 0x165   : > { %p5228_p9 = scmp.lt.s32.totalorder %s5226_s28, %s5222_s22 }
 0x166   : > { %s1416_s1 = sshll.u32 %s6464_s16, 4  ;;  %p5224_p6 = pnand %p5223_p5, %p4398_p3  ;;  %s5898_s1 = int_to_ptr.hbm [resolvable:$true] %s1416_s1 }
 0x167   : > { %p5229_p10 = por %p5228_p9, %p5227_p8 }
 0x168   : > { %p5225_p7 = pneg %p5224_p6 }
 0x16a   : > { %p5230_p11 = pnand %p5229_p10, %p5225_p7 }
 0x16c   : > { %5233 = shalt.err (!%p5230_p11)
}
 0x16d   : > { %4347 = dma.hbm_to_vmem [thread:$0]  (%p4398_p3), %s5887_s4, 16, %s1396_s15, [#allocation29]  }
 0x16e   : > { %s1433_s10 = sshll.u32 %s5641_s14, 4  ;;  %s5427_s2 = smov [#allocation33]   ;;  %s5909_s10 = int_to_ptr.hbm [resolvable:$true] %s1433_s10 }
 0x16f   : > { %s1418_s18 = sshll.u32 %s5427_s2, 4  ;;  %s5248_s5 = sshra.s32 %s5898_s1, 4  ;;  %s1419_s18 = int_to_ptr.vmem [resolvable:$true] %s1418_s18  ;;  %s5249_s5 = int_to_ptr.hbm [resolvable:$true] %s5248_s5 }
 0x170   : > { %s5250_s22 = scalar_lea.hbm %s5249_s5, 16  ;;  %s5254_s28 = scalar_lea.hbm %s6464_s16, 16 }
 0x171   : > { %p5251_p12 = scmp.ne.s32.totalorder %s5249_s5, %s5250_s22  ;;  %p5255_p1 = scmp.lt.s32.totalorder %s5249_s5, %s6464_s16 }
 0x172   : > { %p5256_p4 = scmp.lt.s32.totalorder %s5254_s28, %s5250_s22 }
 0x173   : > { %p5252_p13 = pnand %p5251_p12, %p4398_p3 }
 0x174   : > { %p5257_p5 = por %p5256_p4, %p5255_p1 }
 0x175   : > { %p5253_p0 = pneg %p5252_p13 }
 0x177   : > { %p5258_p6 = pnand %p5257_p5, %p5253_p0 }
 0x179   : > { %5261 = shalt.err (!%p5258_p6)
}
 0x17a   : > { %4351 = dma.hbm_to_vmem [thread:$0]  (%p4398_p3), %s5898_s1, 256, %s1419_s18, [#allocation32], %s6454_s25, %s6454_s25, %s6456_s7  }
 0x17b   : > { %s5428_s4 = smov [#allocation34]   ;;  %s5276_s2 = sshra.s32 %s5909_s10, 4  ;;  %s5277_s2 = int_to_ptr.hbm [resolvable:$true] %s5276_s2 }
 0x17c   : > { %s1435_s15 = sshll.u32 %s5428_s4, 4  ;;  %s5278_s5 = scalar_lea.hbm %s5277_s2, 16  ;;  %s1436_s15 = int_to_ptr.vmem [resolvable:$true] %s1435_s15 }
 0x17d   : > { %p5279_p7 = scmp.ne.s32.totalorder %s5277_s2, %s5278_s5  ;;  %s5282_s22 = scalar_lea.hbm %s5641_s14, 16 }
 0x17e   : > { %p5283_p10 = scmp.lt.s32.totalorder %s5277_s2, %s5641_s14  ;;  %p5284_p11 = scmp.lt.s32.totalorder %s5282_s22, %s5278_s5 }
 0x17f   : > { %p5280_p8 = pnand %p5279_p7, %p4398_p3 }
 0x180   : > { %p5285_p12 = por %p5284_p11, %p5283_p10 }
 0x181   : > { %p5281_p9 = pneg %p5280_p8 }
 0x183   : > { %p5286_p13 = pnand %p5285_p12, %p5281_p9 }
 0x185   : > { %5289 = shalt.err (!%p5286_p13)
}
 0x186   : > { %4353 = dma.hbm_to_vmem [thread:$0]  (%p4398_p3), %s5909_s10, 256, %s1436_s15, [#allocation35], %s6454_s25, %s6454_s25, %s6456_s7  }
 0x187 PF: > { %1469 = sbr.rel (%p5668_p2) target bundleno = 6185 (0x1829), region = 200  ;;  %p4420_p0 = scmp.eq.s32.totalorder (!%p5668_p2), %s5664_s0, 0 }
 0x18c   : > { %5309 = dma.done.wait (%p4420_p0), [#allocation3], 4096  }
 0x18d   : > { %5311 = vsyncadd (%p4420_p0), [#allocation3], 4294963200 }
 0x18e   : > { %5313 = dma.done.wait (%p4420_p0), [#allocation5], 384  }
 0x18f   : > { %5315 = vsyncadd (%p4420_p0), [#allocation5], 4294966912 }
 0x190   : > { %5317 = dma.done.wait (%p4420_p0), [#allocation8], 4112  }
 0x191   : > { %5319 = vsyncadd (%p4420_p0), [#allocation8], 4294963184 }
 0x192   : > { %5321 = dma.done.wait (%p4420_p0), [#allocation11], 144  }
 0x193   : > { %5323 = vsyncadd (%p4420_p0), [#allocation11], 4294967152 }
 0x194   : > { %5325 = dma.done.wait (%p4420_p0), [#allocation14], 32  }
 0x195   : > { %5327 = vsyncadd (%p4420_p0), [#allocation14], 4294967264 }
 0x196   : > { %5329 = dma.done.wait (%p4420_p0), [#allocation17], 4352  }
 0x197   : > { %5331 = vsyncadd (%p4420_p0), [#allocation17], 4294962944 }
 0x198   : > { %5333 = dma.done.wait (%p4420_p0), [#allocation20], 4112  }
 0x199   : > { %5335 = vsyncadd (%p4420_p0), [#allocation20], 4294963184 }
 0x19a   : > { %5337 = dma.done.wait (%p4420_p0), [#allocation23], 144  }
 0x19b   : > { %5339 = vsyncadd (%p4420_p0), [#allocation23], 4294967152 }
 0x19c   : > { %5341 = dma.done.wait (%p4420_p0), [#allocation26], 144  }
 0x19d   : > { %5343 = vsyncadd (%p4420_p0), [#allocation26], 4294967152 }
 0x19e   : > { %5345 = dma.done.wait (%p4420_p0), [#allocation29], 144  }
 0x19f   : > { %5347 = vsyncadd (%p4420_p0), [#allocation29], 4294967152 }
 0x1a0   : > { %5349 = dma.done.wait (%p4420_p0), [#allocation32], 272  }
 0x1a1   : > { %5351 = vsyncadd (%p4420_p0), [#allocation32], 4294967024 }
 0x1a2   : > { %5353 = dma.done.wait (%p4420_p0), [#allocation35], 256  }
 0x1a3   : > { %5355 = vsyncadd (%p4420_p0), [#allocation35], 4294967040  ;;  %s6465_s23 = sld [smem:[#allocation53_spill]]  ;;  %v1792_v6 = vld [vmem:[#allocation7 + $0xf0] sm:$0xff]  ;;  %v1793_v7 = vld [vmem:[#allocation7 + $0xf8] sm:$0xff]  ;;  %p1682_p2 = scmp.lt.s32.totalorder %s5664_s0, 1 }
 0x1a4   : > { %v1790_v8 = vld [vmem:[#allocation7 + $0xe0] sm:$0xff]  ;;  %v1791_v9 = vld [vmem:[#allocation7 + $0xe8] sm:$0xff]  ;;  %1935 = vmatpush.msra.mxu0 %v1792_v6  ;;  %1955 = vmatpush.msra.mxu1 %v1793_v7  ;;  %v1788_v12 = vld [vmem:[#allocation7 + $0xd0] sm:$0xff]  ;;  %s6466_s25 = sld [smem:[#allocation48_spill]]  ;;  %vm2077_vm0 = vcmask 130048   ;;  %vm2148_vm4 = vcmask 64512  }
 0x1a5   : > { %v1789_v13 = vld [vmem:[#allocation7 + $0xd8] sm:$0xff]  ;;  %v1786_v16 = vld [vmem:[#allocation7 + $0xc0] sm:$0xff]  ;;  %v1787_v17 = vld [vmem:[#allocation7 + $0xc8] sm:$0xff]  ;;  %s6492_s0 = smov (!%p1682_p2, %s5664_s0), 1  ;;  %s6467_s1 = sld [smem:[#allocation49_spill]] }
 0x1a6   : > { %1936 = vmatpush.msra.mxu0 %v1790_v8  ;;  %1956 = vmatpush.msra.mxu1 %v1791_v9  ;;  %v1784_v20 = vld [vmem:[#allocation7 + $0xb0] sm:$0xff]  ;;  %v1785_v21 = vld [vmem:[#allocation7 + $0xb8] sm:$0xff]  ;;  %v1782_v24 = vld [vmem:[#allocation7 + $0xa0] sm:$0xff]  ;;  %s6468_s18 = sld [smem:[#allocation55_spill]] }
 0x1a7   : > { %v1783_v25 = vld [vmem:[#allocation7 + $0xa8] sm:$0xff]  ;;  %v1780_v28 = vld [vmem:[#allocation7 + $0x90] sm:$0xff]  ;;  %v1781_v29 = vld [vmem:[#allocation7 + $0x98] sm:$0xff]  ;;  %s6469_s28 = sld [smem:[#allocation51_spill]] }
 0x1a8   : > { %1937 = vmatpush.msra.mxu0 %v1788_v12  ;;  %1957 = vmatpush.msra.mxu1 %v1789_v13  ;;  %v1778_v32 = vld [vmem:[#allocation7 + $0x80] sm:$0xff]  ;;  %v1779_v33 = vld [vmem:[#allocation7 + $0x88] sm:$0xff]  ;;  %v1776_v36 = vld [vmem:[#allocation7 + $0x70] sm:$0xff]  ;;  %s6470_s4 = sld [smem:[#allocation56_spill]] }
 0x1a9   : > { %v1760_v0 = vld [vmem:[%s6465_s23 + $0xf0] sm:$0xff]  ;;  %v1761_v1 = vld [vmem:[%s6465_s23 + $0xf8] sm:$0xff]  ;;  %v1758_v2 = vld [vmem:[%s6465_s23 + $0xe0] sm:$0xff]  ;;  %s6471_s15 = sld [smem:[#allocation58_spill]] }
 0x1aa   : > { %1975 = vmatpush.msra.mxu2 %v1760_v0  ;;  %1995 = vmatpush.msra.mxu3 %v1761_v1  ;;  %v1759_v3 = vld [vmem:[%s6465_s23 + $0xe8] sm:$0xff]  ;;  %v1756_v4 = vld [vmem:[%s6465_s23 + $0xd0] sm:$0xff]  ;;  %v1757_v5 = vld [vmem:[%s6465_s23 + $0xd8] sm:$0xff]  ;;  %s6020_s7 = scalar_lea.vmem %s6466_s25, %s6492_s0  ;;  %s6472_s2 = sld [smem:[#allocation57_spill]] }
 0x1ab   : > { %v1754_v10 = vld [vmem:[%s6465_s23 + $0xc0] sm:$0xff]  ;;  %v1755_v11 = vld [vmem:[%s6465_s23 + $0xc8] sm:$0xff]  ;;  %v1752_v14 = vld [vmem:[%s6465_s23 + $0xb0] sm:$0xff]  ;;  %1938 = vmatpush.msra.mxu0 %v1786_v16  ;;  %1958 = vmatpush.msra.mxu1 %v1787_v17  ;;  %s6029_s10 = scalar_lea.vmem %s6467_s1, %s6492_s0  ;;  %s6473_s5 = sld [smem:[#allocation60_spill]] }
 0x1ac   : > { %1976 = vmatpush.msra.mxu2 %v1758_v2  ;;  %1996 = vmatpush.msra.mxu3 %v1759_v3  ;;  %v1753_v15 = vld [vmem:[%s6465_s23 + $0xb8] sm:$0xff]  ;;  %v1750_v18 = vld [vmem:[%s6465_s23 + $0xa0] sm:$0xff]  ;;  %v1751_v19 = vld [vmem:[%s6465_s23 + $0xa8] sm:$0xff]  ;;  %s6474_s22 = sld [smem:[#allocation61_spill]] }
 0x1ad   : > { %v1748_v22 = vld [vmem:[%s6465_s23 + $0x90] sm:$0xff]  ;;  %v1749_v23 = vld [vmem:[%s6465_s23 + $0x98] sm:$0xff]  ;;  %1939 = vmatpush.msra.mxu0 %v1784_v20  ;;  %1959 = vmatpush.msra.mxu1 %v1785_v21  ;;  %v1746_v26 = vld [vmem:[%s6465_s23 + $0x80] sm:$0xff]  ;;  %s6476_s1 = sld [smem:[#allocation50_spill]] }
 0x1ae   : > { %1977 = vmatpush.msra.mxu2 %v1756_v4  ;;  %1997 = vmatpush.msra.mxu3 %v1757_v5  ;;  %v1747_v27 = vld [vmem:[%s6465_s23 + $0x88] sm:$0xff]  ;;  %v1744_v30 = vld [vmem:[%s6465_s23 + $0x70] sm:$0xff]  ;;  %v1745_v31 = vld [vmem:[%s6465_s23 + $0x78] sm:$0xff] }
 0x1af   : > { %1940 = vmatpush.msra.mxu0 %v1782_v24  ;;  %1960 = vmatpush.msra.mxu1 %v1783_v25  ;;  %v1742_v34 = vld [vmem:[%s6465_s23 + $0x60] sm:$0xff]  ;;  %v1743_v35 = vld [vmem:[%s6465_s23 + $0x68] sm:$0xff]  ;;  %v1777_v37 = vld [vmem:[#allocation7 + $0x78] sm:$0xff] }
 0x1b0   : > { %1978 = vmatpush.msra.mxu2 %v1754_v10  ;;  %1998 = vmatpush.msra.mxu3 %v1755_v11  ;;  %v1740_v38 = vld [vmem:[%s6465_s23 + $0x50] sm:$0xff]  ;;  %v1741_v39 = vld [vmem:[%s6465_s23 + $0x58] sm:$0xff]  ;;  %v1775_v41 = vld [vmem:[#allocation7 + $0x68] sm:$0xff] }
 0x1b1   : > { %1941 = vmatpush.msra.mxu0 %v1780_v28  ;;  %1961 = vmatpush.msra.mxu1 %v1781_v29  ;;  %v1774_v40 = vld [vmem:[#allocation7 + $0x60] sm:$0xff]  ;;  %v1738_v42 = vld [vmem:[%s6465_s23 + $0x40] sm:$0xff]  ;;  %v1739_v43 = vld [vmem:[%s6465_s23 + $0x48] sm:$0xff] }
 0x1b2   : > { %1979 = vmatpush.msra.mxu2 %v1752_v14  ;;  %1999 = vmatpush.msra.mxu3 %v1753_v15  ;;  %v1772_v44 = vld [vmem:[#allocation7 + $0x50] sm:$0xff]  ;;  %v1773_v45 = vld [vmem:[#allocation7 + $0x58] sm:$0xff]  ;;  %v1737_v47 = vld [vmem:[%s6465_s23 + $0x38] sm:$0xff]  ;;  %s6475_s25 = smov %s6474_s22 }
 0x1b3   : > { %1942 = vmatpush.msra.mxu0 %v1778_v32  ;;  %1962 = vmatpush.msra.mxu1 %v1779_v33  ;;  %v1736_v46 = vld [vmem:[%s6465_s23 + $0x30] sm:$0xff]  ;;  %v1770_v48 = vld [vmem:[#allocation7 + $0x40] sm:$0xff]  ;;  %v1771_v49 = vld [vmem:[#allocation7 + $0x48] sm:$0xff] }
 0x1b4   : > { %1980 = vmatpush.msra.mxu2 %v1750_v18  ;;  %2000 = vmatpush.msra.mxu3 %v1751_v19  ;;  %v1734_v50 = vld [vmem:[%s6465_s23 + $0x20] sm:$0xff]  ;;  %v1735_v51 = vld [vmem:[%s6465_s23 + $0x28] sm:$0xff]  ;;  %v1769_v53 = vld [vmem:[#allocation7 + $0x38] sm:$0xff] }
 0x1b5   : > { %1943 = vmatpush.msra.mxu0 %v1776_v36  ;;  %1963 = vmatpush.msra.mxu1 %v1777_v37  ;;  %v1768_v52 = vld [vmem:[#allocation7 + $0x30] sm:$0xff]  ;;  %v1732_v54 = vld [vmem:[%s6465_s23 + $0x10] sm:$0xff]  ;;  %v1733_v55 = vld [vmem:[%s6465_s23 + $0x18] sm:$0xff] }
 0x1b6   : > { %1981 = vmatpush.msra.mxu2 %v1748_v22  ;;  %2001 = vmatpush.msra.mxu3 %v1749_v23  ;;  %v1730_v56 = vld [vmem:[%s6465_s23] sm:$0xff]  ;;  %v1766_v57 = vld [vmem:[#allocation7 + $0x20] sm:$0xff]  ;;  %v1731_v59 = vld [vmem:[%s6465_s23 + $0x8] sm:$0xff] }
 0x1b7   : > { %1944 = vmatpush.msra.mxu0 %v1774_v40  ;;  %1964 = vmatpush.msra.mxu1 %v1775_v41  ;;  %v1767_v58 = vld [vmem:[#allocation7 + $0x28] sm:$0xff]  ;;  %v1764_v61 = vld [vmem:[#allocation7 + $0x10] sm:$0xff]  ;;  %v1765_v62 = vld [vmem:[#allocation7 + $0x18] sm:$0xff] }
 0x1b8   : > { %1982 = vmatpush.msra.mxu2 %v1746_v26  ;;  %2002 = vmatpush.msra.mxu3 %v1747_v27  ;;  %v1932_v60 = vld [vmem:[%s6020_s7] sm:$0x1]  ;;  %v1762_v63 = vld [vmem:[#allocation7] sm:$0xff]  ;;  %v1709_v4 = vld [vmem:[#allocation2 + $0x70] sm:$0xff] }
 0x1b9   : > { %1945 = vmatpush.msra.mxu0 %v1772_v44  ;;  %1965 = vmatpush.msra.mxu1 %v1773_v45  ;;  %v1763_v0 = vld [vmem:[#allocation7 + $0x8] sm:$0xff]  ;;  %v1710_v2 = vld [vmem:[#allocation2 + $0x78] sm:$0xff]  ;;  %v1725_v5 = vld [vmem:[#allocation2 + $0xf0] sm:$0xff] }
 0x1ba   : > { %1983 = vmatpush.msra.mxu2 %v1744_v30  ;;  %2003 = vmatpush.msra.mxu3 %v1745_v31  ;;  %v1933_v1 = vld [vmem:[%s6029_s10] sm:$0x1]  ;;  %v1726_v3 = vld [vmem:[#allocation2 + $0xf8] sm:$0xff]  ;;  %v1708_v6 = vld [vmem:[#allocation2 + $0x68] sm:$0xff] }
 0x1bb   : > { %1946 = vmatpush.msra.mxu0 %v1770_v48  ;;  %1966 = vmatpush.msra.mxu1 %v1771_v49  ;;  %v1724_v7 = vld [vmem:[#allocation2 + $0xe8] sm:$0xff]  ;;  %v1707_v8 = vld [vmem:[#allocation2 + $0x60] sm:$0xff]  ;;  %v1706_v10 = vld [vmem:[#allocation2 + $0x58] sm:$0xff] }
 0x1bc   : > { %1984 = vmatpush.msra.mxu2 %v1742_v34  ;;  %2004 = vmatpush.msra.mxu3 %v1743_v35  ;;  %v1723_v9 = vld [vmem:[#allocation2 + $0xe0] sm:$0xff]  ;;  %v1722_v11 = vld [vmem:[#allocation2 + $0xd8] sm:$0xff]  ;;  %v1705_v12 = vld [vmem:[#allocation2 + $0x50] sm:$0xff] }
 0x1bd   : > { %1947 = vmatpush.msra.mxu0 %v1768_v52  ;;  %1967 = vmatpush.msra.mxu1 %v1769_v53  ;;  %v1721_v13 = vld [vmem:[#allocation2 + $0xd0] sm:$0xff]  ;;  %v1704_v14 = vld [vmem:[#allocation2 + $0x48] sm:$0xff]  ;;  %v1703_v16 = vld [vmem:[#allocation2 + $0x40] sm:$0xff] }
 0x1be   : > { %1985 = vmatpush.msra.mxu2 %v1740_v38  ;;  %2005 = vmatpush.msra.mxu3 %v1741_v39  ;;  %v1720_v15 = vld [vmem:[#allocation2 + $0xc8] sm:$0xff]  ;;  %v1719_v17 = vld [vmem:[#allocation2 + $0xc0] sm:$0xff]  ;;  %v1702_v18 = vld [vmem:[#allocation2 + $0x38] sm:$0xff] }
 0x1bf   : > { %1948 = vmatpush.msra.mxu0 %v1766_v57  ;;  %1968 = vmatpush.msra.mxu1 %v1767_v58  ;;  %v1718_v19 = vld [vmem:[#allocation2 + $0xb8] sm:$0xff]  ;;  %v1701_v20 = vld [vmem:[#allocation2 + $0x30] sm:$0xff]  ;;  %v1700_v22 = vld [vmem:[#allocation2 + $0x28] sm:$0xff] }
 0x1c0   : > { %1986 = vmatpush.msra.mxu2 %v1738_v42  ;;  %2006 = vmatpush.msra.mxu3 %v1739_v43  ;;  %v1717_v21 = vld [vmem:[#allocation2 + $0xb0] sm:$0xff]  ;;  %v1716_v23 = vld [vmem:[#allocation2 + $0xa8] sm:$0xff]  ;;  %v1699_v24 = vld [vmem:[#allocation2 + $0x20] sm:$0xff] }
 0x1c1   : > { %1949 = vmatpush.msra.mxu0 %v1764_v61  ;;  %1969 = vmatpush.msra.mxu1 %v1765_v62  ;;  %v1715_v25 = vld [vmem:[#allocation2 + $0xa0] sm:$0xff]  ;;  %v1698_v26 = vld [vmem:[#allocation2 + $0x18] sm:$0xff]  ;;  %v1697_v28 = vld [vmem:[#allocation2 + $0x10] sm:$0xff] }
 0x1c2   : > { %1987 = vmatpush.msra.mxu2 %v1736_v46  ;;  %2007 = vmatpush.msra.mxu3 %v1737_v47  ;;  %v1714_v27 = vld [vmem:[#allocation2 + $0x98] sm:$0xff]  ;;  %v1713_v29 = vld [vmem:[#allocation2 + $0x90] sm:$0xff]  ;;  %v1696_v30 = vld [vmem:[#allocation2 + $0x8] sm:$0xff] }
 0x1c3   : > { %1950 = vmatpush.msra.mxu0 %v1762_v63  ;;  %1970 = vmatpush.msra.mxu1 %v1763_v0  ;;  %v1712_v31 = vld [vmem:[#allocation2 + $0x88] sm:$0xff]  ;;  %v1695_v32 = vld [vmem:[#allocation2] sm:$0xff]  ;;  %v1694_v52 = vld [vmem:[%s6469_s28 + $0x18] sm:$0xff] }
 0x1c4   : > { %1988 = vmatpush.msra.mxu2 %v1734_v50  ;;  %2008 = vmatpush.msra.mxu3 %v1735_v51  ;;  %v1711_v33 = vld [vmem:[#allocation2 + $0x80] sm:$0xff]  ;;  %v1692_v46 = vld [vmem:[%s6469_s28 + $0x8] sm:$0xff]  ;;  %v1693_v51 = vld [vmem:[%s6469_s28 + $0x10] sm:$0xff] }
 0x1c5   : > { %1951 = vmatmul.f32.vlgmr.msra.gmra.mxu0 %v1933_v1  ;;  %1971 = vmatmul.f32.vlgmr.msra.gmra.mxu1 %v1933_v1  ;;  %v1794_v34 = vld [vmem:[%s6468_s18] sm:$0x3]  ;;  %s6477_s18 = sld [smem:[#allocation64_spill]] }
 0x1c6   : > { %1989 = vmatpush.msra.mxu2 %v1732_v54  ;;  %2009 = vmatpush.msra.mxu3 %v1733_v55  ;;  %v2016_v37 = vperm.slane %v1794_v34, 0  ;;  %v2017_v38 = vperm.slane %v1794_v34, 1  ;;  %v1691_v45 = vld [vmem:[%s6469_s28] sm:$0xff]  ;;  %v1796_v55 = vld [vmem:[%s6470_s4 + $0x8] sm:$0xff] }
 0x1c7   : > { %2028 = vmatpush.msrb.mxu0 %v1710_v2  ;;  %2051 = vmatpush.msrb.mxu1 %v1726_v3  ;;  %v1804_v57 = vld [vmem:[#allocation12] sm:$0xff] }
 0x1c8   : > { %1990 = vmatpush.msra.mxu2 %v1730_v56  ;;  %2010 = vmatpush.msra.mxu3 %v1731_v59  ;;  %v1795_v56 = vld [vmem:[%s6470_s4] sm:$0xff]  ;;  %s6488_s4 = smov 8  }
 0x1c9   : > { %1991 = vmatmul.f32.vlgmr.msra.gmra.mxu2 %v1932_v60  ;;  %2011 = vmatmul.f32.vlgmr.msra.gmra.mxu3 %v1932_v60  ;;  %v1798_v0 = vld [vmem:[%s6471_s15] sm:$0xff]  ;;  %s6407_s15 = smov 112  }
 0x1ca   : > { %2029 = vmatpush.msrb.mxu0 %v1709_v4  ;;  %2052 = vmatpush.msrb.mxu1 %v1725_v5  ;;  %v4523_v1 = vld [vmem:[%s6472_s2] ss:$0 sm:$0xff]  ;;  %s6405_s2 = smov 104  }
 0x1cb   : > { %2098 = vmatpush.msrb.mxu2 %v1796_v55  ;;  %2170 = vmatpush.msrb.mxu3 %v1798_v0 }
 0x1cc   : > { %2030 = vmatpush.msrb.mxu0 %v1708_v6  ;;  %2053 = vmatpush.msrb.mxu1 %v1724_v7 }
 0x1cd   : > { %2099 = vmatpush.msrb.mxu2 %v1795_v56 }
 0x1ce   : > { %2031 = vmatpush.msrb.mxu0 %v1707_v8  ;;  %2054 = vmatpush.msrb.mxu1 %v1723_v9 }
 0x1d0   : > { %2032 = vmatpush.msrb.mxu0 %v1706_v10  ;;  %2055 = vmatpush.msrb.mxu1 %v1722_v11 }
 0x1d2   : > { %2033 = vmatpush.msrb.mxu0 %v1705_v12  ;;  %2056 = vmatpush.msrb.mxu1 %v1721_v13 }
 0x1d4   : > { %2034 = vmatpush.msrb.mxu0 %v1704_v14  ;;  %2057 = vmatpush.msrb.mxu1 %v1720_v15 }
 0x1d6   : > { %2035 = vmatpush.msrb.mxu0 %v1703_v16  ;;  %2058 = vmatpush.msrb.mxu1 %v1719_v17 }
 0x1d8   : > { %2036 = vmatpush.msrb.mxu0 %v1702_v18  ;;  %2059 = vmatpush.msrb.mxu1 %v1718_v19 }
 0x1da   : > { %2037 = vmatpush.msrb.mxu0 %v1701_v20  ;;  %2060 = vmatpush.msrb.mxu1 %v1717_v21 }
 0x1dc   : > { %2038 = vmatpush.msrb.mxu0 %v1700_v22  ;;  %2061 = vmatpush.msrb.mxu1 %v1716_v23 }
 0x1de   : > { %2039 = vmatpush.msrb.mxu0 %v1699_v24  ;;  %2062 = vmatpush.msrb.mxu1 %v1715_v25 }
 0x1e0   : > { %2040 = vmatpush.msrb.mxu0 %v1698_v26  ;;  %2063 = vmatpush.msrb.mxu1 %v1714_v27 }
 0x1e2   : > { %2041 = vmatpush.msrb.mxu0 %v1697_v28  ;;  %2064 = vmatpush.msrb.mxu1 %v1713_v29 }
 0x1e4   : > { %2042 = vmatpush.msrb.mxu0 %v1696_v30  ;;  %2065 = vmatpush.msrb.mxu1 %v1712_v31 }
 0x1e6   : > { %2043 = vmatpush.msrb.mxu0 %v1695_v32  ;;  %2066 = vmatpush.msrb.mxu1 %v1711_v33  ;;  %v1800_v32 = vld [vmem:[%s6473_s5] sm:$0xff]  ;;  %v4524_v33 = vld [vmem:[#allocation9] ss:$0 sm:$0xff]  ;;  %s6403_s5 = smov 8  }
 0x1e7   : > { %2240 = vmatpush.msra.mxu2 %v1800_v32 }
 0x1e8   : > { %2384 = vmatpush.msra.mxu0 %v1804_v57 }
 0x242   : > { %v1952_v35 = vpop.f32.mrf.mxu0  ;;  %v1972_v36 = vpop.f32.mrf.mxu1 }
 0x24c   : > { %v1992_v39 = vpop.f32.mrf.mxu2  ;;  %v2012_v40 = vpop.f32.mrf.mxu3 }
 0x24d   : > { %v1993_v41 = vadd.f32 %v1992_v39, %v1952_v35  ;;  %v2013_v42 = vadd.f32 %v2012_v40, %v1972_v36 }
 0x24f   : > { %v2020_v43 = vadd.f32 %v2016_v37, %v1993_v41  ;;  %v2021_v44 = vadd.f32 %v2017_v38, %v2013_v42 }
 0x251   : > { %v2022_v47 = vperm.slane %v2020_v43, 0  ;;  %v2023_v48 = vperm.slane %v2021_v44, 0 }
 0x253   : > { %v2024_v49 = vmul.f32 %v2022_v47, %v1691_v45  ;;  %v2025_v50 = vmul.f32 %v2023_v48, %v1692_v46  ;;  %v2026_v53 = vmul.f32 %v2022_v47, %v1693_v51  ;;  %v2027_v54 = vmul.f32 %v2023_v48, %v1694_v52 }
 0x255   : > { %2044 = vmatmul.f32.vlgmr.msrb.gmra.mxu0 %v2024_v49  ;;  %2067 = vmatmul.f32.vlgmr.msrb.gmra.mxu1 %v2025_v50 }
 0x25d   : > { %2047 = vmatmul.f32.gmra.mxu0 %v2026_v53  ;;  %2070 = vmatmul.f32.gmra.mxu1 %v2027_v54 }
 0x2d2   : > { %v2045_v58 = vpop.f32.mrf.mxu0  ;;  %v2068_v59 = vpop.f32.mrf.mxu1 }
 0x2d3   : > { %v6039_v60 = vadd.f32 %v2068_v59, %v2045_v58 }
 0x2d5   : > { %4218 = vmatmul.msk.f32.vlgmr.msrb.gmra.mxu2 %vm2077_vm0, %v6039_v60 }
 0x2da   : > { %v2048_v61 = vpop.f32.mrf.mxu0  ;;  %v2071_v62 = vpop.f32.mrf.mxu1 }
 0x2db   : > { %v6043_v63 = vadd.f32 %v2071_v62, %v2048_v61 }
 0x2dd   : > { %4219 = vmatmul.msk.f32.gmra.mxu2 %vm2077_vm0, %v6043_v63  ;;  %2662 = vmatpush.msrb.mxu0 %v6043_v63 }
 0x2df   : > { %2663 = vmatpush.msrb.mxu0 %v6039_v60 }
 0x358   : > { %v2101_v2 = vpop.f32.mrf.mxu2 }
 0x359   : > { %v2102_v3 = vadd.f32 %v4523_v1, %v2101_v2  ;;  %v1803_v2 = vld [vmem:[%s6474_s22 + $0x8] sm:$0xff]  ;;  %s6409_s22 = smov 120  }
 0x35a   : > { %2268 = vmatpush.msra.mxu3 %v1803_v2 }
 0x35b   : > { %v4220_v4 = vmul.f32 -1.442695, %v2102_v3  ;;  %v1802_v3 = vld [vmem:[%s6475_s25] sm:$0xff] }
 0x35c   : > { %2269 = vmatpush.msra.mxu3 %v1802_v3 }
 0x35d   : > { %4533 = vpow2.f32 %v4220_v4  ;;  %v1934_v4 = vld [vmem:[%s6476_s1] sm:$0xff] }
 0x35e   : > { %4230 = vmatpush.xpose.msk.msrb.mxu2 %vm2148_vm4, %v1934_v4 }
 0x360   : > { %v2104_v5 = vpop.f32.mrf.mxu2 }
 0x361   : > { %v2105_v6 = vadd.f32 %v4523_v1, %v2104_v5  ;;  %v4525_v5 = vld [vmem:[#allocation10] ss:$0 sm:$0xff] }
 0x363   : > { %v4534_v7 = vpop.eup %4533  ;;  %v4221_v8 = vmul.f32 -1.442695, %v2105_v6 }
 0x364   : > { %v2113_v9 = vadd.f32 1.0, %v4534_v7 }
 0x365   : > { %4535 = vpow2.f32 %v4221_v8 }
 0x366   : > { %4537 = vrcp.f32 %v2113_v9  ;;  %v2126_v15 = vand.u32 2147483648, %v2113_v9  ;;  %v2124_v17 = vand.u32 2147483647, %v2113_v9  ;;  %vm2120_vm2 = vweird.f32 %v2113_v9 }
 0x368   : > { %v2127_v20 = vor.u32 1.1754944e-38, %v2126_v15  ;;  %vm2125_vm5 = vcmp.eq.f32.partialorder %v2124_v17, 8.507059e+37 }
 0x36b   : > { %v4536_v10 = vpop.eup %4535 }
 0x36c   : > { %v4538_v11 = vpop.eup %4537  ;;  %v2114_v12 = vadd.f32 1.0, %v4536_v10 }
 0x36d   : > { %v2116_v13 = vmul.f32 %v4538_v11, %v2113_v9  ;;  %vm2121_vm1 = vweird.f32 %v4538_v11 }
 0x36e   : > { %4539 = vrcp.f32 %v2114_v12  ;;  %vm2122_vm3 = vmor %vm2120_vm2, %vm2121_vm1  ;;  %v2141_v25 = vand.u32 2147483648, %v2114_v12  ;;  %v2139_v27 = vand.u32 2147483647, %v2114_v12  ;;  %vm2135_vm7 = vweird.f32 %v2114_v12 }
 0x36f   : > { %v2117_v14 = vsub.f32 1.0, %v2116_v13 }
 0x370   : > { %v2142_v29 = vor.u32 1.1754944e-38, %v2141_v25  ;;  %vm2140_vm9 = vcmp.eq.f32.partialorder %v2139_v27, 8.507059e+37 }
 0x371   : > { %v2118_v16 = vmul.f32 %v4538_v11, %v2117_v14 }
 0x373   : > { %v2119_v18 = vadd.f32 %v4538_v11, %v2118_v16 }
 0x374   : > { %v4540_v19 = vpop.eup %4539 }
 0x375   : > { %v2123_v21 = vsel %vm2122_vm3, %v4538_v11, %v2119_v18  ;;  %v2131_v22 = vmul.f32 %v4540_v19, %v2114_v12  ;;  %vm2136_vm6 = vweird.f32 %v4540_v19 }
 0x376   : > { %v2128_v23 = vsel %vm2125_vm5, %v2127_v20, %v2123_v21  ;;  %vm2137_vm8 = vmor %vm2135_vm7, %vm2136_vm6 }
 0x377   : > { %4222 = vmatmul.msk.f32.vlgmr.msrb.gmra.mxu3 %vm2148_vm4, %v2128_v23  ;;  %v2132_v24 = vsub.f32 1.0, %v2131_v22 }
 0x378   : > { %2352 = vmatpush.msrb.mxu3 %v1934_v4 }
 0x379   : > { %v2133_v26 = vmul.f32 %v4540_v19, %v2132_v24 }
 0x37b   : > { %v2134_v28 = vadd.f32 %v4540_v19, %v2133_v26  ;;  %v6069_v26 = vld [vmem:[%s6477_s18 + $0x8] sm:$0xff] }
 0x37c   : > { %2457 = vrot.lane.b32.xlu2 %v6069_v26, %s6407_s15 }
 0x37d   : > { %v2138_v30 = vsel %vm2137_vm8, %v4540_v19, %v2134_v28 }
 0x37e   : > { %v2143_v31 = vsel %vm2140_vm9, %v2142_v29, %v2138_v30 }
 0x37f   : > { %4223 = vmatmul.msk.f32.gmra.mxu3 %vm2148_vm4, %v2143_v31 }
 0x3fa   : > { %v2172_v34 = vpop.f32.mrf.mxu3 }
 0x3fb   : > { %v2173_v35 = vadd.f32 %v4524_v33, %v2172_v34  ;;  %v4526_v34 = vld [vmem:[#allocation15] ss:$0 sm:$0xff] }
 0x3fd   : > { %v4224_v36 = vmul.f32 -1.442695, %v2173_v35 }
 0x3ff   : > { %4541 = vpow2.f32 %v4224_v36 }
 0x402   : > { %v2175_v37 = vpop.f32.mrf.mxu3 }
 0x403   : > { %v2176_v38 = vadd.f32 %v4524_v33, %v2175_v37  ;;  %v6078_v33 = vld [vmem:[%s6477_s18] sm:$0xff] }
 0x404   : > { %2455 = vrot.lane.b32.xlu2 %v6078_v33, %s6407_s15  ;;  %s6480_s15 = sld [smem:[#allocation66_spill]] }
 0x405   : > { %v4542_v39 = vpop.eup %4541  ;;  %v4225_v40 = vmul.f32 -1.442695, %v2176_v38 }
 0x406   : > { %v2184_v41 = vadd.f32 1.0, %v4542_v39  ;;  %v2458_v39 = vpop.permute.xlu2 %2457 }
 0x407   : > { %4543 = vpow2.f32 %v4225_v40  ;;  %v4527_v40 = vld [vmem:[#allocation13] ss:$0 sm:$0xff] }
 0x408   : > { %4545 = vrcp.f32 %v2184_v41  ;;  %v2197_v47 = vand.u32 2147483648, %v2184_v41  ;;  %v2195_v49 = vand.u32 2147483647, %v2184_v41  ;;  %vm2191_vm11 = vweird.f32 %v2184_v41 }
 0x40a   : > { %v2198_v52 = vor.u32 1.1754944e-38, %v2197_v47  ;;  %vm2196_vm13 = vcmp.eq.f32.partialorder %v2195_v49, 8.507059e+37 }
 0x40d   : > { %v4544_v42 = vpop.eup %4543 }
 0x40e   : > { %v4546_v43 = vpop.eup %4545  ;;  %v2185_v44 = vadd.f32 1.0, %v4544_v42 }
 0x40f   : > { %v2187_v45 = vmul.f32 %v4546_v43, %v2184_v41  ;;  %vm2192_vm10 = vweird.f32 %v4546_v43 }
 0x410   : > { %4547 = vrcp.f32 %v2185_v44  ;;  %vm2193_vm12 = vmor %vm2191_vm11, %vm2192_vm10  ;;  %v2212_v57 = vand.u32 2147483648, %v2185_v44  ;;  %v2210_v59 = vand.u32 2147483647, %v2185_v44  ;;  %vm2206_vm15 = vweird.f32 %v2185_v44 }
 0x411   : > { %v2188_v46 = vsub.f32 1.0, %v2187_v45 }
 0x412   : > { %v2213_v62 = vor.u32 1.1754944e-38, %v2212_v57  ;;  %vm2211_vm2 = vcmp.eq.f32.partialorder %v2210_v59, 8.507059e+37 }
 0x413   : > { %v2189_v48 = vmul.f32 %v4546_v43, %v2188_v46 }
 0x415   : > { %v2190_v50 = vadd.f32 %v4546_v43, %v2189_v48 }
 0x416   : > { %v4548_v51 = vpop.eup %4547 }
 0x417   : > { %v2194_v53 = vsel %vm2193_vm12, %v4546_v43, %v2190_v50  ;;  %v2202_v54 = vmul.f32 %v4548_v51, %v2185_v44  ;;  %vm2207_vm14 = vweird.f32 %v4548_v51 }
 0x418   : > { %v2199_v55 = vsel %vm2196_vm13, %v2198_v52, %v2194_v53  ;;  %vm2208_vm1 = vmor %vm2206_vm15, %vm2207_vm14 }
 0x419   : > { %4226 = vmatmul.msk.f32.vlgmr.msra.gmra.mxu2 %vm2148_vm4, %v2199_v55  ;;  %v2203_v56 = vsub.f32 1.0, %v2202_v54 }
 0x41b   : > { %v2204_v58 = vmul.f32 %v4548_v51, %v2203_v56 }
 0x41d   : > { %v2205_v61 = vadd.f32 %v4548_v51, %v2204_v58 }
 0x41f   : > { %v2209_v0 = vsel %vm2208_vm1, %v4548_v51, %v2205_v61 }
 0x420   : > { %v2214_v1 = vsel %vm2211_vm2, %v2213_v62, %v2209_v0 }
 0x421   : > { %4227 = vmatmul.msk.f32.gmra.mxu2 %vm2148_vm4, %v2214_v1 }
 0x45e   : > { %v2456_v43 = vpop.permute.xlu2 %2455 }
 0x49c   : > { %v2242_v6 = vpop.f32.mrf.mxu2 }
 0x49d   : > { %v2243_v7 = vadd.f32 %v4525_v5, %v2242_v6 }
 0x49f   : > { %4228 = vmatmul.msk.f32.vlgmr.msra.gmra.mxu3 %vm2077_vm0, %v2243_v7 }
 0x4a4   : > { %v2245_v8 = vpop.f32.mrf.mxu2 }
 0x4a5   : > { %v2246_v9 = vadd.f32 %v4525_v5, %v2245_v8 }
 0x4a7   : > { %4229 = vmatmul.msk.f32.gmra.mxu3 %vm2077_vm0, %v2246_v9 }
 0x522   : > { %v2271_v10 = vpop.f32.mrf.mxu3 }
 0x523   : > { %4231 = vmatmul.msk.f32.vlgmr.msrb.gmra.mxu2 %vm2148_vm4, %v2271_v10 }
 0x52a   : > { %v2274_v11 = vpop.f32.mrf.mxu3 }
 0x52b   : > { %4232 = vmatmul.msk.f32.gmra.mxu2 %vm2148_vm4, %v2274_v11 }
 0x5a6   : > { %v2303_v12 = vpop.f32.mrf.mxu2 }
 0x5a7   : > { %v2309_v13 = vsel %vm2148_vm4, %v2303_v12, -inf }
 0x5a8   : > { %2310 = vmax.xlane.f32.xlu0 %v2309_v13 }
 0x5ae   : > { %v2306_v14 = vpop.f32.mrf.mxu2 }
 0x5af   : > { %v2312_v15 = vsel %vm2148_vm4, %v2306_v14, -inf }
 0x5b0   : > { %2313 = vmax.xlane.f32.xlu0 %v2312_v15 }
 0x5c4   : > { %2503 = vrot.lane.b32.xlu0 %v6069_v26, %s6405_s2 }
 0x61b   : > { %v2311_v16 = vpop.xlane.xlu0 %2310 }
 0x61c   : > { %v2315_v17 = vsub.f32 %v2303_v12, %v2311_v16 }
 0x61e   : > { %v2317_v18 = vmul.f32 1.442695, %v2315_v17 }
 0x620   : > { %4549 = vpow2.f32 %v2317_v18 }
 0x623   : > { %v2314_v19 = vpop.xlane.xlu0 %2313 }
 0x624   : > { %v2316_v20 = vsub.f32 %v2306_v14, %v2314_v19 }
 0x626   : > { %v4550_v21 = vpop.eup %4549  ;;  %v2319_v22 = vmul.f32 1.442695, %v2316_v20 }
 0x627   : > { %v2321_v23 = vsel %vm2148_vm4, %v4550_v21, 0.0 }
 0x628   : > { %4551 = vpow2.f32 %v2319_v22  ;;  %2322 = vadd.xlane.f32.xlu1 %v2321_v23 }
 0x62e   : > { %v4552_v24 = vpop.eup %4551 }
 0x62f   : > { %v2324_v25 = vsel %vm2148_vm4, %v4552_v24, 0.0 }
 0x630   : > { %2325 = vadd.xlane.f32.xlu1 %v2324_v25 }
 0x636   : > { %v2504_v13 = vpop.permute.xlu0 %2503 }
 0x649   : > { %2501 = vrot.lane.b32.xlu1 %v6078_v33, %s6405_s2  ;;  %s6479_s2 = sld [smem:[#allocation65_spill]] }
 0x69b   : > { %v2323_v27 = vpop.xlane.xlu1 %2322 }
 0x69c   : > { %4553 = vrcp.f32 %v2323_v27 }
 0x6a2   : > { %v4554_v28 = vpop.eup %4553 }
 0x6a3   : > { %v2329_v29 = vmul.f32 %v4554_v28, %v4550_v21  ;;  %v2326_v30 = vpop.xlane.xlu1 %2325 }
 0x6a4   : > { %4555 = vrcp.f32 %v2326_v30 }
 0x6a5   : > { %4233 = vmatmul.msk.f32.vlgmr.msrb.gmra.mxu3 %vm2148_vm4, %v2329_v29 }
 0x6aa   : > { %v4556_v31 = vpop.eup %4555 }
 0x6ab   : > { %v2330_v32 = vmul.f32 %v4556_v31, %v4552_v24 }
 0x6ad   : > { %4234 = vmatmul.msk.f32.gmra.mxu3 %vm2148_vm4, %v2330_v32 }
 0x6bb   : > { %v2502_v1 = vpop.permute.xlu1 %2501 }
 0x728   : > { %v2354_v35 = vpop.f32.mrf.mxu3 }
 0x729   : > { %v2403_v36 = vmul.f32 %v4526_v34, %v2354_v35  ;;  %4235 = vmatmul.msk.f32.vlgmr.msra.gmra.mxu0 %vm2148_vm4, %v2354_v35 }
 0x72b   : > { %2407 = vrot.lane.b32.xlu0 %v2403_v36, %s6403_s5 }
 0x730   : > { %v2357_v37 = vpop.f32.mrf.mxu3 }
 0x731   : > { %2394 = vrot.lane.b32.xlu2 %v2357_v37, %s6403_s5  ;;  %4236 = vmatmul.msk.f32.gmra.mxu0 %vm2148_vm4, %v2357_v37  ;;  %v2404_v38 = vmul.f32 %v4526_v34, %v2357_v37 }
 0x733   : > { %2523 = vrot.lane.b32.xlu0 %v6069_v26, %s6403_s5 }
 0x739   : > { %2409 = vrot.lane.b32.xlu2 %v2404_v38, %s6403_s5 }
 0x741   : > { %2392 = vrot.lane.b32.xlu2 %v2354_v35, %s6403_s5 }
 0x78b   : > { %v2395_v16 = vpop.permute.xlu2 %2394 }
 0x78c   : > { %v2399_v18 = vadd.f32 %v2395_v16, %v6069_v26 }
 0x793   : > { %v2410_v17 = vpop.permute.xlu2 %2409 }
 0x794   : > { %v2414_v19 = vadd.f32 %v2410_v17, %v2399_v18 }
 0x796   : > { %v4238_v20 = vmul.f32 -1.442695, %v2414_v19 }
 0x79b   : > { %v2393_v21 = vpop.permute.xlu2 %2392 }
 0x79c   : > { %v2398_v22 = vadd.f32 %v2393_v21, %v6078_v33 }
 0x79d   : > { %v2408_v23 = vpop.permute.xlu0 %2407 }
 0x79e   : > { %v2413_v25 = vadd.f32 %v2408_v23, %v2398_v22 }
 0x7a0   : > { %v4237_v28 = vmul.f32 -1.442695, %v2413_v25 }
 0x7a6   : > { %v2386_v41 = vpop.f32.mrf.mxu0 }
 0x7a7   : > { %v6092_v42 = vadd.f32 %v4527_v40, %v2386_v41 }
 0x7a9   : > { %v2461_v44 = vadd.f32 %v2456_v43, %v6092_v42 }
 0x7ab   : > { %v4239_v45 = vmul.f32 -1.442695, %v2461_v44 }
 0x7ad   : > { %4557 = vpow2.f32 %v4239_v45 }
 0x7ae   : > { %v2389_v46 = vpop.f32.mrf.mxu0 }
 0x7af   : > { %v6095_v47 = vadd.f32 %v4527_v40, %v2389_v46  ;;  %v2524_v46 = vpop.permute.xlu0 %2523 }
 0x7b1   : > { %v2462_v48 = vadd.f32 %v2458_v39, %v6095_v47 }
 0x7b3   : > { %v4558_v49 = vpop.eup %4557  ;;  %v4240_v50 = vmul.f32 -1.442695, %v2462_v48 }
 0x7b4   : > { %v2469_v51 = vadd.f32 1.0, %v4558_v49 }
 0x7b5   : > { %4559 = vpow2.f32 %v4240_v50 }
 0x7b6   : > { %4561 = vrcp.f32 %v2469_v51  ;;  %v2482_v57 = vand.u32 2147483648, %v2469_v51  ;;  %v2480_v59 = vand.u32 2147483647, %v2469_v51  ;;  %vm2476_vm5 = vweird.f32 %v2469_v51 }
 0x7b8   : > { %v2483_v0 = vor.u32 1.1754944e-38, %v2482_v57  ;;  %vm2481_vm7 = vcmp.eq.f32.partialorder %v2480_v59, 8.507059e+37 }
 0x7bb   : > { %v4560_v52 = vpop.eup %4559 }
 0x7bc   : > { %v4562_v53 = vpop.eup %4561  ;;  %v2470_v54 = vadd.f32 1.0, %v4560_v52 }
 0x7bd   : > { %v2472_v55 = vmul.f32 %v4562_v53, %v2469_v51  ;;  %vm2477_vm3 = vweird.f32 %v4562_v53 }
 0x7be   : > { %4563 = vrcp.f32 %v2470_v54  ;;  %vm2478_vm6 = vmor %vm2476_vm5, %vm2477_vm3  ;;  %v2497_v7 = vand.u32 2147483648, %v2470_v54  ;;  %v2495_v9 = vand.u32 2147483647, %v2470_v54  ;;  %vm2491_vm9 = vweird.f32 %v2470_v54 }
 0x7bf   : > { %v2473_v56 = vsub.f32 1.0, %v2472_v55  ;;  %4565 = vpow2.f32 %v4238_v20 }
 0x7c0   : > { %v2498_v11 = vor.u32 1.1754944e-38, %v2497_v7  ;;  %vm2496_vm11 = vcmp.eq.f32.partialorder %v2495_v9, 8.507059e+37 }
 0x7c1   : > { %v2474_v58 = vmul.f32 %v4562_v53, %v2473_v56 }
 0x7c3   : > { %v2475_v61 = vadd.f32 %v4562_v53, %v2474_v58 }
 0x7c4   : > { %v4564_v62 = vpop.eup %4563 }
 0x7c5   : > { %v2479_v2 = vsel %vm2478_vm6, %v4562_v53, %v2475_v61  ;;  %v2487_v3 = vmul.f32 %v4564_v62, %v2470_v54  ;;  %vm2492_vm8 = vweird.f32 %v4564_v62  ;;  %v4566_v24 = vpop.eup %4565 }
 0x7c6   : > { %v2484_v4 = vsel %vm2481_vm7, %v2483_v0, %v2479_v2  ;;  %vm2493_vm10 = vmor %vm2491_vm9, %vm2492_vm8  ;;  %v2422_v27 = vadd.f32 1.0, %v4566_v24 }
 0x7c7   : > { %v2507_v5 = vmul.f32 %v2502_v1, %v2484_v4  ;;  %v2488_v6 = vsub.f32 1.0, %v2487_v3 }
 0x7c8   : > { %4567 = vrcp.f32 %v2422_v27  ;;  %v2449_v37 = vand.u32 2147483648, %v2422_v27  ;;  %vm2443_vm13 = vweird.f32 %v2422_v27 }
 0x7c9   : > { %2511 = vrot.lane.b32.xlu1 %v2507_v5, %s6403_s5  ;;  %v2489_v8 = vmul.f32 %v4564_v62, %v2488_v6  ;;  %4569 = vpow2.f32 %v4237_v28 }
 0x7ca   : > { %v2450_v43 = vor.u32 1.1754944e-38, %v2449_v37 }
 0x7cb   : > { %v2490_v10 = vadd.f32 %v4564_v62, %v2489_v8 }
 0x7cd   : > { %v2494_v12 = vsel %vm2493_vm10, %v4564_v62, %v2490_v10 }
 0x7ce   : > { %v2499_v14 = vsel %vm2496_vm11, %v2498_v11, %v2494_v12  ;;  %v4568_v29 = vpop.eup %4567  ;;  %v1810_v11 = vld [vmem:[%s6479_s2 + $0x8] sm:$0xff] }
 0x7cf   : > { %v2508_v15 = vmul.f32 %v2504_v13, %v2499_v14  ;;  %v4570_v30 = vpop.eup %4569  ;;  %v2439_v31 = vmul.f32 %v4568_v29, %v2422_v27  ;;  %vm2444_vm12 = vweird.f32 %v4568_v29  ;;  %v1809_v14 = vld [vmem:[%s6479_s2] sm:$0xff] }
 0x7d0   : > { %v2421_v32 = vadd.f32 1.0, %v4570_v30  ;;  %vm2445_vm14 = vmor %vm2443_vm13, %vm2444_vm12 }
 0x7d1   : > { %2513 = vrot.lane.b32.xlu2 %v2508_v15, %s6403_s5  ;;  %v2440_v34 = vsub.f32 1.0, %v2439_v31  ;;  %v6139_v31 = vld [vmem:[%s6480_s15] sm:$0xff] }
 0x7d2   : > { %4571 = vrcp.f32 %v2421_v32  ;;  %vm2428_vm2 = vweird.f32 %v2421_v32  ;;  %v2432_v55 = vand.u32 2147483647, %v2421_v32 }
 0x7d3   : > { %v2441_v26 = vmul.f32 %v4568_v29, %v2440_v34 }
 0x7d4   : > { %vm2433_vm5 = vcmp.eq.f32.partialorder %v2432_v55, 8.507059e+37 }
 0x7d5   : > { %v2442_v35 = vadd.f32 %v4568_v29, %v2441_v26  ;;  %v1816_v26 = vld [vmem:[%s6480_s15 + $0x8] sm:$0xff] }
 0x7d7   : > { %v2446_v40 = vsel %vm2445_vm14, %v4568_v29, %v2442_v35 }
 0x7d8   : > { %v4572_v36 = vpop.eup %4571 }
 0x7d9   : > { %2521 = vrot.lane.b32.xlu2 %v6078_v33, %s6403_s5  ;;  %v2447_v33 = vand.u32 2147483647, %v2422_v27  ;;  %v2424_v41 = vmul.f32 %v4572_v36, %v2421_v32  ;;  %vm2429_vm1 = vweird.f32 %v4572_v36  ;;  %s6478_s5 = sld [smem:[#allocation67_spill]] }
 0x7da   : > { %vm2430_vm3 = vmor %vm2428_vm2, %vm2429_vm1 }
 0x7db   : > { %vm2448_vm15 = vcmp.eq.f32.partialorder %v2447_v33, 8.507059e+37  ;;  %v2425_v45 = vsub.f32 1.0, %v2424_v41 }
 0x7dc   : > { %v2451_v44 = vsel %vm2448_vm15, %v2450_v43, %v2446_v40 }
 0x7dd   : > { %v2530_v48 = vsub.f32 1.0, %v2451_v44  ;;  %v2528_v50 = vmul.f32 %v2524_v46, %v2451_v44  ;;  %v2426_v51 = vmul.f32 %v4572_v36, %v2425_v45 }
 0x7df   : > { %v2427_v54 = vadd.f32 %v4572_v36, %v2426_v51  ;;  %v1832_v5 = vld [vmem:[%s6478_s5 + $0x78] sm:$0xff]  ;;  %v1831_v6 = vld [vmem:[%s6478_s5 + $0x70] sm:$0xff]  ;;  %v1830_v7 = vld [vmem:[%s6478_s5 + $0x68] sm:$0xff] }
 0x7e0   : > { %2617 = vmatpush.msra.mxu3 %v1832_v5  ;;  %v1829_v8 = vld [vmem:[%s6478_s5 + $0x60] sm:$0xff]  ;;  %v1828_v9 = vld [vmem:[%s6478_s5 + $0x58] sm:$0xff]  ;;  %v1827_v10 = vld [vmem:[%s6478_s5 + $0x50] sm:$0xff] }
 0x7e1   : > { %v2431_v58 = vsel %vm2430_vm3, %v4572_v36, %v2427_v54  ;;  %v1826_v12 = vld [vmem:[%s6478_s5 + $0x48] sm:$0xff]  ;;  %v1825_v15 = vld [vmem:[%s6478_s5 + $0x40] sm:$0xff]  ;;  %v1824_v16 = vld [vmem:[%s6478_s5 + $0x38] sm:$0xff] }
 0x7e2   : > { %2618 = vmatpush.msra.mxu3 %v1831_v6  ;;  %v1823_v17 = vld [vmem:[%s6478_s5 + $0x30] sm:$0xff]  ;;  %v1822_v18 = vld [vmem:[%s6478_s5 + $0x28] sm:$0xff]  ;;  %v1821_v19 = vld [vmem:[%s6478_s5 + $0x20] sm:$0xff] }
 0x7e3   : > { %v1820_v20 = vld [vmem:[%s6478_s5 + $0x18] sm:$0xff]  ;;  %v1819_v21 = vld [vmem:[%s6478_s5 + $0x10] sm:$0xff]  ;;  %v1818_v22 = vld [vmem:[%s6478_s5 + $0x8] sm:$0xff] }
 0x7e4   : > { %2619 = vmatpush.msra.mxu3 %v1830_v7  ;;  %v1817_v23 = vld [vmem:[%s6478_s5] sm:$0xff] }
 0x7e6   : > { %2620 = vmatpush.msra.mxu3 %v1829_v8 }
 0x7e8   : > { %2621 = vmatpush.msra.mxu3 %v1828_v9 }
 0x7ea   : > { %2622 = vmatpush.msra.mxu3 %v1827_v10 }
 0x7ec   : > { %2623 = vmatpush.msra.mxu3 %v1826_v12 }
 0x7ee   : > { %2624 = vmatpush.msra.mxu3 %v1825_v15 }
 0x7f0   : > { %2625 = vmatpush.msra.mxu3 %v1824_v16 }
 0x7f2   : > { %2626 = vmatpush.msra.mxu3 %v1823_v17 }
 0x7f4   : > { %2627 = vmatpush.msra.mxu3 %v1822_v18 }
 0x7f6   : > { %2628 = vmatpush.msra.mxu3 %v1821_v19 }
 0x7f8   : > { %2629 = vmatpush.msra.mxu3 %v1820_v20 }
 0x7fa   : > { %2630 = vmatpush.msra.mxu3 %v1819_v21 }
 0x7fc   : > { %2631 = vmatpush.msra.mxu3 %v1818_v22 }
 0x7fe   : > { %2632 = vmatpush.msra.mxu3 %v1817_v23 }
 0x800   : > { %2785 = vmatpush.msrb.mxu3 %v1832_v5 }
 0x802   : > { %2786 = vmatpush.msrb.mxu3 %v1831_v6 }
 0x804   : > { %2787 = vmatpush.msrb.mxu3 %v1830_v7 }
 0x806   : > { %2788 = vmatpush.msrb.mxu3 %v1829_v8 }
 0x808   : > { %2789 = vmatpush.msrb.mxu3 %v1828_v9 }
 0x80a   : > { %2790 = vmatpush.msrb.mxu3 %v1827_v10 }
 0x80c   : > { %2791 = vmatpush.msrb.mxu3 %v1826_v12 }
 0x80e   : > { %2792 = vmatpush.msrb.mxu3 %v1825_v15 }
 0x810   : > { %2793 = vmatpush.msrb.mxu3 %v1824_v16 }
 0x812   : > { %2794 = vmatpush.msrb.mxu3 %v1823_v17 }
 0x814   : > { %2795 = vmatpush.msrb.mxu3 %v1822_v18 }
 0x816   : > { %2796 = vmatpush.msrb.mxu3 %v1821_v19 }
 0x818   : > { %2797 = vmatpush.msrb.mxu3 %v1820_v20 }
 0x81a   : > { %2798 = vmatpush.msrb.mxu3 %v1819_v21 }
 0x81c   : > { %2799 = vmatpush.msrb.mxu3 %v1818_v22 }
 0x81e   : > { %2800 = vmatpush.msrb.mxu3 %v1817_v23 }
 0x82b   : > { %v2514_v38 = vpop.permute.xlu2 %2513 }
 0x82c   : > { %v2518_v39 = vadd.f32 %v2514_v38, %v6095_v47  ;;  %v2434_v47 = vand.u32 2147483648, %v2421_v32 }
 0x82e   : > { %4573 = vtanh.f32 %v2518_v39  ;;  %v2435_v59 = vor.u32 1.1754944e-38, %v2434_v47  ;;  %v1811_v47 = vld [vmem:[%s6479_s2 + $0x10] sm:$0xff] }
 0x830   : > { %v2436_v61 = vsel %vm2433_vm5, %v2435_v59, %v2431_v58  ;;  %v1813_v58 = vld [vmem:[%s6479_s2 + $0x20] sm:$0xff] }
 0x831   : > { %v2529_v0 = vsub.f32 1.0, %v2436_v61 }
 0x833   : > { %v2522_v62 = vpop.permute.xlu2 %2521 }
 0x834   : > { %v4574_v49 = vpop.eup %4573  ;;  %v2527_v2 = vmul.f32 %v2522_v62, %v2436_v61 }
 0x835   : > { %v2532_v52 = vmul.f32 %v4574_v49, %v2530_v48  ;;  %v1812_v48 = vld [vmem:[%s6479_s2 + $0x18] sm:$0xff] }
 0x837   : > { %v2534_v53 = vadd.f32 %v2532_v52, %v2528_v50 }
 0x839   : > { %2539 = vrot.lane.b32.xlu1 %v2534_v53, %s6409_s22 }
 0x83b   : > { %v2512_v56 = vpop.permute.xlu1 %2511 }
 0x83c   : > { %v2517_v57 = vadd.f32 %v2512_v56, %v6092_v42 }
 0x83e   : > { %4575 = vtanh.f32 %v2517_v57  ;;  %v1814_v57 = vld [vmem:[%s6479_s2 + $0x28] sm:$0xff]  ;;  %s6487_s2 = smov 104  }
 0x844   : > { %v4576_v1 = vpop.eup %4575 }
 0x845   : > { %v2531_v3 = vmul.f32 %v4576_v1, %v2529_v0 }
 0x847   : > { %v2533_v4 = vadd.f32 %v2531_v3, %v2527_v2 }
 0x849   : > { %2537 = vrot.lane.b32.xlu0 %v2533_v4, %s6409_s22 }
 0x8ab   : > { %v2540_v42 = vpop.permute.xlu1 %2539 }
 0x8ac   : > { %4241 = vmatpush.xpose.msk.msra.mxu1 %vm2148_vm4, %v2540_v42  ;;  %4308 = vmatpush.xpose.msk.msra.mxu2 %vm2148_vm4, %v2540_v42 }
 0x8bb   : > { %v2538_v13 = vpop.permute.xlu0 %2537 }
 0x8bc   : > { %4242 = vmatpush.xpose.msk.msra.mxu1 %vm2148_vm4, %v2538_v13  ;;  %4309 = vmatpush.xpose.msk.msra.mxu2 %vm2148_vm4, %v2538_v13 }
 0x8bf   : > { %4243 = vmatmul.msk.f32.vlgmr.msra.gmra.mxu1 %vm2148_vm4, %v2538_v13  ;;  %4244 = vmatmul.msk.f32.vlgmr.msra.gmra.mxu2 %vm2148_vm4, %v2540_v42 }
 0x8c0   : > { %2606 = vmatpush.msrb.mxu2 %v1810_v11  ;;  %2691 = vmatpush.msrb.mxu1 %v1812_v48  ;;  %v6161_v11 = vld [vmem:[#allocation6] sm:$0xff] }
 0x8c2   : > { %2607 = vmatpush.msrb.mxu2 %v1809_v14  ;;  %2692 = vmatpush.msrb.mxu1 %v1811_v47  ;;  %v1862_v47 = vld [vmem:[#allocation18 + $0xd8] sm:$0xff] }
 0x8c4   : > { %2702 = vmatpush.msra.mxu2 %v1832_v5  ;;  %2774 = vmatpush.msra.mxu1 %v1814_v57  ;;  %v1896_v57 = vld [vmem:[#allocation19 + $0xe8] sm:$0xff] }
 0x8c6   : > { %2703 = vmatpush.msra.mxu2 %v1831_v6  ;;  %2775 = vmatpush.msra.mxu1 %v1813_v58  ;;  %v1858_v58 = vld [vmem:[#allocation18 + $0xb8] sm:$0xff] }
 0x8c7   : > { %4245 = vmatmul.msk.f32.vlgmr.msrb.gmra.mxu2 %vm2077_vm0, %v6039_v60 }
 0x8c8   : > { %2704 = vmatpush.msra.mxu2 %v1830_v7 }
 0x8ca   : > { %2705 = vmatpush.msra.mxu2 %v1829_v8 }
 0x8cc   : > { %2706 = vmatpush.msra.mxu2 %v1828_v9 }
 0x8ce   : > { %2707 = vmatpush.msra.mxu2 %v1827_v10 }
 0x8cf   : > { %4246 = vmatmul.msk.f32.gmra.mxu2 %vm2077_vm0, %v6043_v63 }
 0x8d0   : > { %2708 = vmatpush.msra.mxu2 %v1826_v12  ;;  %v1833_v12 = vld [vmem:[#allocation16] sm:$0xff] }
 0x8d2   : > { %2709 = vmatpush.msra.mxu2 %v1825_v15 }
 0x8d4   : > { %2710 = vmatpush.msra.mxu2 %v1824_v16 }
 0x8d6   : > { %2711 = vmatpush.msra.mxu2 %v1823_v17  ;;  %v1834_v17 = vld [vmem:[#allocation16 + $0x8] sm:$0xff] }
 0x8d8   : > { %2712 = vmatpush.msra.mxu2 %v1822_v18 }
 0x8da   : > { %2713 = vmatpush.msra.mxu2 %v1821_v19 }
 0x8dc   : > { %2714 = vmatpush.msra.mxu2 %v1820_v20 }
 0x8de   : > { %2715 = vmatpush.msra.mxu2 %v1819_v21 }
 0x8e0   : > { %2716 = vmatpush.msra.mxu2 %v1818_v22 }
 0x8e2   : > { %2717 = vmatpush.msra.mxu2 %v1817_v23 }
 0x93c   : > { %v2562_v24 = vpop.f32.mrf.mxu1 }
 0x93d   : > { %v2568_v25 = vmax.f32 %v2562_v24, 0.0 }
 0x93f   : > { %v2570_v27 = vsel %vm2077_vm0, %v2568_v25, -inf }
 0x940   : > { %2571 = vmax.xlane.f32.xlu2 %v2570_v27 }
 0x942   : > { %v2565_v28 = vpop.f32.mrf.mxu2 }
 0x943   : > { %v2569_v29 = vmax.f32 %v2565_v28, 0.0 }
 0x945   : > { %v2573_v30 = vsel %vm2077_vm0, %v2569_v29, -inf }
 0x946   : > { %2574 = vmax.xlane.f32.xlu1 %v2573_v30 }
 0x94a   : > { %v2609_v32 = vpop.f32.mrf.mxu2 }
 0x94b   : > { %v2615_v34 = vmul.f32 %v2609_v32, %v6139_v31 }
 0x94d   : > { %2633 = vmatmul.f32.vlgmr.msra.gmra.mxu3 %v2615_v34 }
 0x952   : > { %v2612_v35 = vpop.f32.mrf.mxu2 }
 0x953   : > { %v2616_v36 = vmul.f32 %v2612_v35, %v1816_v26 }
 0x955   : > { %2636 = vmatmul.f32.gmra.mxu3 %v2616_v36 }
 0x9b3   : > { %v2572_v37 = vpop.xlane.xlu2 %2571 }
 0x9b4   : > { %v2576_v33 = vsub.f32 %v2568_v25, %v2572_v37 }
 0x9b6   : > { %v2578_v38 = vmul.f32 1.442695, %v2576_v33 }
 0x9b8   : > { %4577 = vpow2.f32 %v2578_v38 }
 0x9b9   : > { %v2575_v39 = vpop.xlane.xlu1 %2574 }
 0x9ba   : > { %v2577_v40 = vsub.f32 %v2569_v29, %v2575_v39 }
 0x9bc   : > { %v2580_v41 = vmul.f32 1.442695, %v2577_v40 }
 0x9be   : > { %v4578_v43 = vpop.eup %4577  ;;  %4579 = vpow2.f32 %v2580_v41 }
 0x9bf   : > { %v2582_v44 = vsel %vm2077_vm0, %v4578_v43, 0.0 }
 0x9c0   : > { %2583 = vadd.xlane.f32.xlu0 %v2582_v44 }
 0x9c4   : > { %v4580_v45 = vpop.eup %4579 }
 0x9c5   : > { %v2585_v46 = vsel %vm2077_vm0, %v4580_v45, 0.0 }
 0x9c6   : > { %2586 = vadd.xlane.f32.xlu2 %v2585_v46 }
 0x9d0   : > { %v2634_v10 = vpop.f32.mrf.mxu3 }
 0xa33   : > { %v2584_v49 = vpop.xlane.xlu0 %2583 }
 0xa34   : > { %4581 = vrcp.f32 %v2584_v49 }
 0xa39   : > { %v2587_v50 = vpop.xlane.xlu2 %2586 }
 0xa3a   : > { %v4582_v51 = vpop.eup %4581  ;;  %4583 = vrcp.f32 %v2587_v50 }
 0xa3b   : > { %v2590_v52 = vmul.f32 %v4582_v51, %v4578_v43  ;;  %v1866_v51 = vld [vmem:[#allocation18 + $0xf8] sm:$0xff] }
 0xa3c   : > { %2987 = vmatpush.msra.mxu3 %v1866_v51  ;;  %v1839_v51 = vld [vmem:[#allocation18 + $0x20] sm:$0xff] }
 0xa3d   : > { %4247 = vmatmul.msk.f32.vlgmr.msrb.gmra.mxu0 %vm2077_vm0, %v2590_v52 }
 0xa40   : > { %v4584_v53 = vpop.eup %4583 }
 0xa41   : > { %v2591_v54 = vmul.f32 %v4584_v53, %v4580_v45  ;;  %v1897_v53 = vld [vmem:[#allocation19 + $0xf0] sm:$0xff] }
 0xa42   : > { %2927 = vmatpush.msrb.mxu2 %v1897_v53  ;;  %v4650_v53 = vld [vmem:[#allocation2 + $0xf8] sm:$0xff] }
 0xa45   : > { %4248 = vmatmul.msk.f32.gmra.mxu0 %vm2077_vm0, %v2591_v54 }
 0xaba   : > { %v2665_v55 = vpop.f32.mrf.mxu0 }
 0xabb   : > { %4249 = vmatmul.msk.f32.vlgmr.msrb.gmra.mxu1 %vm2077_vm0, %v2665_v55 }
 0xabc   : > { %2909 = vmatpush.msrb.mxu1 %v6161_v11 }
 0xac2   : > { %v2668_v56 = vpop.f32.mrf.mxu0 }
 0xac3   : > { %4250 = vmatmul.msk.f32.gmra.mxu1 %vm2077_vm0, %v2668_v56  ;;  %2741 = vmatpush.msra.mxu0 %v2668_v56  ;;  %v1895_v56 = vld [vmem:[#allocation19 + $0xe0] sm:$0xff] }
 0xac4   : > { %2928 = vmatpush.msrb.mxu2 %v1895_v56 }
 0xac5   : > { %2742 = vmatpush.msra.mxu0 %v2665_v55  ;;  %v1860_v55 = vld [vmem:[#allocation18 + $0xc8] sm:$0xff] }
 0xac6   : > { %4251 = vmatmul.msk.f32.vlgmr.msra.gmra.mxu0 %vm2077_vm0, %v2590_v52  ;;  %v1864_v52 = vld [vmem:[#allocation18 + $0xe8] sm:$0xff] }
 0xac7   : > { %2869 = vmatpush.msrb.mxu0 %v6161_v11  ;;  %2988 = vmatpush.msra.mxu3 %v1864_v52 }
 0xac9   : > { %2989 = vmatpush.msra.mxu3 %v1862_v47  ;;  %v4651_v47 = vld [vmem:[#allocation2 + $0x78] sm:$0xff] }
 0xacb   : > { %2990 = vmatpush.msra.mxu3 %v1860_v55  ;;  %v4652_v55 = vld [vmem:[#allocation2 + $0xf0] sm:$0xff] }
 0xacd   : > { %2991 = vmatpush.msra.mxu3 %v1858_v58  ;;  %v4653_v58 = vld [vmem:[#allocation2 + $0x70] sm:$0xff] }
 0xace   : > { %4252 = vmatmul.msk.f32.gmra.mxu0 %vm2077_vm0, %v2591_v54  ;;  %v1898_v54 = vld [vmem:[#allocation19 + $0xf8] sm:$0xff] }
 0xacf   : > { %2947 = vmatpush.msra.mxu0 %v1898_v54  ;;  %v1837_v54 = vld [vmem:[#allocation18 + $0x10] sm:$0xff] }
 0xad1   : > { %2948 = vmatpush.msra.mxu0 %v1896_v57  ;;  %v1835_v57 = vld [vmem:[#allocation18] sm:$0xff] }
 0xb38   : > { %v2694_v59 = vpop.f32.mrf.mxu1 }
 0xb39   : > { %v2700_v61 = vmul.f32 %v2694_v59, %v6139_v31  ;;  %v1893_v59 = vld [vmem:[#allocation19 + $0xd0] sm:$0xff] }
 0xb3a   : > { %2929 = vmatpush.msrb.mxu2 %v1893_v59  ;;  %v4654_v59 = vld [vmem:[#allocation2 + $0xe8] sm:$0xff] }
 0xb3b   : > { %2718 = vmatmul.f32.vlgmr.msra.gmra.mxu2 %v2700_v61  ;;  %v1894_v61 = vld [vmem:[#allocation19 + $0xd8] sm:$0xff] }
 0xb3c   : > { %2949 = vmatpush.msra.mxu0 %v1894_v61  ;;  %v4655_v61 = vld [vmem:[#allocation2 + $0x68] sm:$0xff] }
 0xb40   : > { %v2697_v62 = vpop.f32.mrf.mxu1 }
 0xb41   : > { %v2701_v0 = vmul.f32 %v2697_v62, %v1816_v26  ;;  %v1856_v62 = vld [vmem:[#allocation18 + $0xa8] sm:$0xff] }
 0xb42   : > { %2992 = vmatpush.msra.mxu3 %v1856_v62  ;;  %v4656_v62 = vld [vmem:[#allocation2 + $0xe0] sm:$0xff] }
 0xb43   : > { %2721 = vmatmul.f32.gmra.mxu2 %v2701_v0  ;;  %v2744_v1 = vpop.f32.mrf.mxu0  ;;  %v1891_v0 = vld [vmem:[#allocation19 + $0xc0] sm:$0xff] }
 0xb44   : > { %v2750_v2 = vmul.f32 2.0, %v2744_v1  ;;  %v1892_v1 = vld [vmem:[#allocation19 + $0xc8] sm:$0xff]  ;;  %2930 = vmatpush.msrb.mxu2 %v1891_v0 }
 0xb45   : > { %2950 = vmatpush.msra.mxu0 %v1892_v1  ;;  %v4657_v0 = vld [vmem:[#allocation2 + $0x60] sm:$0xff]  ;;  %v4658_v1 = vld [vmem:[#allocation2 + $0xd8] sm:$0xff] }
 0xb46   : > { %v2752_v3 = vsub.f32 %v2750_v2, %v6039_v60  ;;  %v2637_v60 = vpop.f32.mrf.mxu3  ;;  %v1865_v2 = vld [vmem:[#allocation18 + $0xf0] sm:$0xff] }
 0xb47   : > { %v2641_v20 = vadd.f32 %v2637_v60, %v1834_v17  ;;  %v1885_v60 = vld [vmem:[#allocation19 + $0x90] sm:$0xff]  ;;  %v1846_v17 = vld [vmem:[#allocation18 + $0x58] sm:$0xff] }
 0xb48   : > { %4253 = vmatmul.msk.f32.vlgmr.msra.gmra.mxu1 %vm2077_vm0, %v2752_v3  ;;  %v1854_v3 = vld [vmem:[#allocation18 + $0x98] sm:$0xff] }
 0xb49   : > { %2967 = vmatpush.msra.mxu1 %v1865_v2  ;;  %2993 = vmatpush.msra.mxu3 %v1854_v3  ;;  %v6172_v2 = vld [vmem:[#allocation4] sm:$0xff]  ;;  %v6174_v3 = vld [vmem:[#allocation4 + $0x8] sm:$0xff] }
 0xb4b   : > { %v2747_v4 = vpop.f32.mrf.mxu0 }
 0xb4c   : > { %v2751_v42 = vmul.f32 2.0, %v2747_v4  ;;  %v1889_v4 = vld [vmem:[#allocation19 + $0xb0] sm:$0xff] }
 0xb4d   : > { %2931 = vmatpush.msrb.mxu2 %v1889_v4  ;;  %v4659_v4 = vld [vmem:[#allocation2 + $0x58] sm:$0xff] }
 0xb4e   : > { %v2753_v5 = vsub.f32 %v2751_v42, %v6043_v63  ;;  %v2640_v63 = vadd.f32 %v2634_v10, %v1833_v12  ;;  %v1890_v42 = vld [vmem:[#allocation19 + $0xb8] sm:$0xff] }
 0xb4f   : > { %2951 = vmatpush.msra.mxu0 %v1890_v42  ;;  %v1850_v10 = vld [vmem:[#allocation18 + $0x78] sm:$0xff] }
 0xb50   : > { %4254 = vmatmul.msk.f32.gmra.mxu1 %vm2077_vm0, %v2753_v5  ;;  %v1863_v5 = vld [vmem:[#allocation18 + $0xe0] sm:$0xff]  ;;  %v1886_v12 = vld [vmem:[#allocation19 + $0x98] sm:$0xff] }
 0xb51   : > { %2968 = vmatpush.msra.mxu1 %v1863_v5  ;;  %v4660_v42 = vld [vmem:[#allocation2 + $0xd0] sm:$0xff] }
 0xbbe   : > { %v2719_v13 = vpop.f32.mrf.mxu2 }
 0xbbf   : > { %v2725_v14 = vadd.f32 %v2719_v13, %v2640_v63  ;;  %v1859_v13 = vld [vmem:[#allocation18 + $0xc0] sm:$0xff]  ;;  %v1848_v63 = vld [vmem:[#allocation18 + $0x68] sm:$0xff] }
 0xbc5   : > { %v2777_v6 = vpop.f32.mrf.mxu1 }
 0xbc6   : > { %v2783_v7 = vmul.f32 %v2777_v6, %v6139_v31  ;;  %v2722_v19 = vpop.f32.mrf.mxu2  ;;  %v1852_v6 = vld [vmem:[#allocation18 + $0x88] sm:$0xff] }
 0xbc7   : > { %v2726_v21 = vadd.f32 %v2722_v19, %v2641_v20  ;;  %2994 = vmatpush.msra.mxu3 %v1852_v6  ;;  %v1882_v19 = vld [vmem:[#allocation19 + $0x78] sm:$0xff]  ;;  %v1855_v20 = vld [vmem:[#allocation18 + $0xa0] sm:$0xff] }
 0xbc8   : > { %2801 = vmatmul.f32.vlgmr.msrb.gmra.mxu3 %v2783_v7  ;;  %v1887_v7 = vld [vmem:[#allocation19 + $0xa0] sm:$0xff]  ;;  %v4661_v6 = vld [vmem:[#allocation2 + $0x50] sm:$0xff] }
 0xbc9   : > { %2932 = vmatpush.msrb.mxu2 %v1887_v7  ;;  %2995 = vmatpush.msra.mxu3 %v1850_v10  ;;  %v4663_v10 = vld [vmem:[#allocation2 + $0x48] sm:$0xff] }
 0xbcb   : > { %2933 = vmatpush.msrb.mxu2 %v1885_v60  ;;  %2996 = vmatpush.msra.mxu3 %v1848_v63 }
 0xbcd   : > { %v2780_v8 = vpop.f32.mrf.mxu1  ;;  %2997 = vmatpush.msra.mxu3 %v1846_v17  ;;  %v4668_v17 = vld [vmem:[#allocation2 + $0xb0] sm:$0xff] }
 0xbce   : > { %v2784_v9 = vmul.f32 %v2780_v8, %v1816_v26  ;;  %v1888_v8 = vld [vmem:[#allocation19 + $0xa8] sm:$0xff] }
 0xbcf   : > { %2952 = vmatpush.msra.mxu0 %v1888_v8 }
 0xbd0   : > { %2804 = vmatmul.f32.gmra.mxu3 %v2784_v9  ;;  %v1861_v9 = vld [vmem:[#allocation18 + $0xd0] sm:$0xff] }
 0xbd1   : > { %2969 = vmatpush.msra.mxu1 %v1861_v9  ;;  %2953 = vmatpush.msra.mxu0 %v1886_v12  ;;  %v4662_v9 = vld [vmem:[#allocation2 + $0xc8] sm:$0xff]  ;;  %v4664_v12 = vld [vmem:[#allocation2 + $0xc0] sm:$0xff] }
 0xbd3   : > { %2970 = vmatpush.msra.mxu1 %v1859_v13  ;;  %v4665_v13 = vld [vmem:[#allocation2 + $0x40] sm:$0xff] }
 0xc4b   : > { %v2802_v15 = vpop.f32.mrf.mxu3 }
 0xc4c   : > { %v2808_v16 = vadd.f32 %v2802_v15, %v2725_v14  ;;  %v1883_v14 = vld [vmem:[#allocation19 + $0x80] sm:$0xff]  ;;  %v1884_v15 = vld [vmem:[#allocation19 + $0x88] sm:$0xff] }
 0xc4d   : > { %2934 = vmatpush.msrb.mxu2 %v1883_v14  ;;  %2954 = vmatpush.msra.mxu0 %v1884_v15  ;;  %v4666_v14 = vld [vmem:[#allocation2 + $0xb8] sm:$0xff] }
 0xc4e   : > { %v4255_v18 = vmul.f32 -1.442695, %v2808_v16  ;;  %v1857_v16 = vld [vmem:[#allocation18 + $0xb0] sm:$0xff]  ;;  %v4667_v15 = vld [vmem:[#allocation2 + $0x38] sm:$0xff] }
 0xc4f   : > { %2971 = vmatpush.msra.mxu1 %v1857_v16  ;;  %2955 = vmatpush.msra.mxu0 %v1882_v19 }
 0xc50   : > { %4585 = vpow2.f32 %v4255_v18  ;;  %v1881_v18 = vld [vmem:[#allocation19 + $0x70] sm:$0xff] }
 0xc51   : > { %2935 = vmatpush.msrb.mxu2 %v1881_v18  ;;  %2972 = vmatpush.msra.mxu1 %v1855_v20  ;;  %v4669_v18 = vld [vmem:[#allocation2 + $0x30] sm:$0xff]  ;;  %v4670_v20 = vld [vmem:[#allocation2 + $0xa8] sm:$0xff] }
 0xc53   : > { %v2805_v22 = vpop.f32.mrf.mxu3 }
 0xc54   : > { %v2809_v23 = vadd.f32 %v2805_v22, %v2726_v21  ;;  %v1844_v21 = vld [vmem:[#allocation18 + $0x48] sm:$0xff]  ;;  %v1879_v22 = vld [vmem:[#allocation19 + $0x60] sm:$0xff] }
 0xc55   : > { %2998 = vmatpush.msra.mxu3 %v1844_v21  ;;  %2936 = vmatpush.msrb.mxu2 %v1879_v22  ;;  %v4671_v21 = vld [vmem:[#allocation2 + $0x28] sm:$0xff] }
 0xc56   : > { %v4586_v24 = vpop.eup %4585  ;;  %v4256_v25 = vmul.f32 -1.442695, %v2809_v23  ;;  %v1880_v23 = vld [vmem:[#allocation19 + $0x68] sm:$0xff] }
 0xc57   : > { %v2816_v27 = vadd.f32 1.0, %v4586_v24  ;;  %v1853_v24 = vld [vmem:[#allocation18 + $0x90] sm:$0xff]  ;;  %2956 = vmatpush.msra.mxu0 %v1880_v23  ;;  %v4672_v23 = vld [vmem:[#allocation2 + $0xa0] sm:$0xff] }
 0xc58   : > { %4587 = vpow2.f32 %v4256_v25  ;;  %v1842_v25 = vld [vmem:[#allocation18 + $0x38] sm:$0xff]  ;;  %2973 = vmatpush.msra.mxu1 %v1853_v24  ;;  %v4673_v24 = vld [vmem:[#allocation2 + $0x20] sm:$0xff] }
 0xc59   : > { %4589 = vrcp.f32 %v2816_v27  ;;  %v2829_v34 = vand.u32 2147483648, %v2816_v27  ;;  %v2827_v35 = vand.u32 2147483647, %v2816_v27  ;;  %vm2823_vm7 = vweird.f32 %v2816_v27  ;;  %2999 = vmatpush.msra.mxu3 %v1842_v25 }
 0xc5b   : > { %v2830_v33 = vor.u32 1.1754944e-38, %v2829_v34  ;;  %vm2828_vm9 = vcmp.eq.f32.partialorder %v2827_v35, 8.507059e+37  ;;  %v1849_v34 = vld [vmem:[#allocation18 + $0x70] sm:$0xff] }
 0xc5c   : > { %v1873_v35 = vld [vmem:[#allocation19 + $0x30] sm:$0xff] }
 0xc5e   : > { %v4588_v28 = vpop.eup %4587 }
 0xc5f   : > { %v4590_v29 = vpop.eup %4589  ;;  %v2817_v30 = vadd.f32 1.0, %v4588_v28  ;;  %v1878_v28 = vld [vmem:[#allocation19 + $0x58] sm:$0xff] }
 0xc60   : > { %v2819_v31 = vmul.f32 %v4590_v29, %v2816_v27  ;;  %vm2824_vm6 = vweird.f32 %v4590_v29  ;;  %v1877_v27 = vld [vmem:[#allocation19 + $0x50] sm:$0xff]  ;;  %2957 = vmatpush.msra.mxu0 %v1878_v28  ;;  %v4675_v28 = vld [vmem:[#allocation2 + $0x18] sm:$0xff] }
 0xc61   : > { %4591 = vrcp.f32 %v2817_v30  ;;  %vm2825_vm8 = vmor %vm2823_vm7, %vm2824_vm6  ;;  %v2844_v43 = vand.u32 2147483648, %v2817_v30  ;;  %v2842_v45 = vand.u32 2147483647, %v2817_v30  ;;  %vm2838_vm11 = vweird.f32 %v2817_v30  ;;  %2937 = vmatpush.msrb.mxu2 %v1877_v27  ;;  %v4674_v27 = vld [vmem:[#allocation2 + $0x98] sm:$0xff] }
 0xc62   : > { %v2820_v32 = vsub.f32 1.0, %v2819_v31  ;;  %v1875_v31 = vld [vmem:[#allocation19 + $0x40] sm:$0xff] }
 0xc63   : > { %v2845_v48 = vor.u32 1.1754944e-38, %v2844_v43  ;;  %vm2843_vm13 = vcmp.eq.f32.partialorder %v2842_v45, 8.507059e+37  ;;  %2938 = vmatpush.msrb.mxu2 %v1875_v31  ;;  %v4649_v43 = vld [vmem:[%s6020_s7] sm:$0x1]  ;;  %v1870_v45 = vld [vmem:[#allocation19 + $0x18] sm:$0xff]  ;;  %s6481_s7 = sld [smem:[#allocation69_spill]] }
 0xc64   : > { %v2821_v26 = vmul.f32 %v4590_v29, %v2820_v32  ;;  %v1876_v32 = vld [vmem:[#allocation19 + $0x48] sm:$0xff]  ;;  %v4677_v31 = vld [vmem:[#allocation2 + $0x10] sm:$0xff] }
 0xc65   : > { %2958 = vmatpush.msra.mxu0 %v1876_v32  ;;  %2939 = vmatpush.msrb.mxu2 %v1873_v35  ;;  %v6179_v32 = vld [vmem:[%s6029_s10] sm:$0x1]  ;;  %v4680_v35 = vld [vmem:[#allocation2 + $0x8] sm:$0xff]  ;;  %s6482_s10 = sld [smem:[#allocation70_spill]] }
 0xc66   : > { %v2822_v36 = vadd.f32 %v4590_v29, %v2821_v26  ;;  %v1838_v26 = vld [vmem:[#allocation18 + $0x18] sm:$0xff] }
 0xc67   : > { %v4592_v37 = vpop.eup %4591 }
 0xc68   : > { %v2826_v38 = vsel %vm2825_vm8, %v4590_v29, %v2822_v36  ;;  %v2834_v39 = vmul.f32 %v4592_v37, %v2817_v30  ;;  %vm2839_vm10 = vweird.f32 %v4592_v37  ;;  %v1851_v29 = vld [vmem:[#allocation18 + $0x80] sm:$0xff]  ;;  %v1840_v30 = vld [vmem:[#allocation18 + $0x28] sm:$0xff]  ;;  %v1874_v36 = vld [vmem:[#allocation19 + $0x38] sm:$0xff] }
 0xc69   : > { %v2831_v40 = vsel %vm2828_vm9, %v2830_v33, %v2826_v38  ;;  %vm2840_vm12 = vmor %vm2838_vm11, %vm2839_vm10  ;;  %2974 = vmatpush.msra.mxu1 %v1851_v29  ;;  %3000 = vmatpush.msra.mxu3 %v1840_v30  ;;  %v1836_v38 = vld [vmem:[#allocation18 + $0x8] sm:$0xff]  ;;  %v4676_v30 = vld [vmem:[#allocation2 + $0x90] sm:$0xff] }
 0xc6a   : > { %2886 = vrot.lane.b32.xlu1 %v2831_v40, %s6409_s22  ;;  %4257 = vmatmul.msk.f32.vlgmr.msrb.gmra.mxu0 %vm2148_vm4, %v2831_v40  ;;  %v2835_v41 = vsub.f32 1.0, %v2834_v39  ;;  %v1871_v39 = vld [vmem:[#allocation19 + $0x20] sm:$0xff]  ;;  %v1872_v40 = vld [vmem:[#allocation19 + $0x28] sm:$0xff] }
 0xc6b   : > { %2975 = vmatpush.msra.mxu1 %v1849_v34  ;;  %3001 = vmatpush.msra.mxu3 %v1838_v26  ;;  %v4679_v26 = vld [vmem:[#allocation2 + $0x88] sm:$0xff] }
 0xc6c   : > { %v2836_v44 = vmul.f32 %v4592_v37, %v2835_v41  ;;  %2959 = vmatpush.msra.mxu0 %v1874_v36  ;;  %v1845_v41 = vld [vmem:[#allocation18 + $0x50] sm:$0xff]  ;;  %2940 = vmatpush.msrb.mxu2 %v1871_v39  ;;  %v4681_v36 = vld [vmem:[#allocation2 + $0x80] sm:$0xff] }
 0xc6d   : > { %3002 = vmatpush.msra.mxu3 %v1836_v38 }
 0xc6e   : > { %v2837_v46 = vadd.f32 %v4592_v37, %v2836_v44  ;;  %3003 = vmatmul.f32.vlgmr.msra.gmra.mxu3 %v4649_v43  ;;  %v1869_v44 = vld [vmem:[#allocation19 + $0x10] sm:$0xff]  ;;  %2960 = vmatpush.msra.mxu0 %v1872_v40 }
 0xc6f   : > { %2941 = vmatpush.msrb.mxu2 %v1869_v44  ;;  %v1899_v44 = vld [vmem:[%s6481_s7] sm:$0x3]  ;;  %s6483_s7 = sld [smem:[#allocation75_spill]] }
 0xc70   : > { %v2841_v49 = vsel %vm2840_vm12, %v4592_v37, %v2837_v46  ;;  %v1847_v37 = vld [vmem:[#allocation18 + $0x60] sm:$0xff]  ;;  %2961 = vmatpush.msra.mxu0 %v1870_v45 }
 0xc71   : > { %v2846_v50 = vsel %vm2843_vm13, %v2845_v48, %v2841_v49  ;;  %2976 = vmatpush.msra.mxu1 %v1847_v37  ;;  %v1843_v46 = vld [vmem:[#allocation18 + $0x40] sm:$0xff]  ;;  %v1868_v49 = vld [vmem:[#allocation19 + $0x8] sm:$0xff] }
 0xc72   : > { %2888 = vrot.lane.b32.xlu0 %v2846_v50, %s6409_s22  ;;  %4258 = vmatmul.msk.f32.gmra.mxu0 %vm2148_vm4, %v2846_v50  ;;  %v1867_v48 = vld [vmem:[#allocation19] sm:$0xff]  ;;  %v1841_v50 = vld [vmem:[#allocation18 + $0x30] sm:$0xff]  ;;  %v4682_v37 = vld [vmem:[#allocation2] sm:$0xff]  ;;  %s6484_s22 = sld [smem:[#allocation79_spill]] }
 0xc73   : > { %2977 = vmatpush.msra.mxu1 %v1845_v41  ;;  %2942 = vmatpush.msrb.mxu2 %v1867_v48 }
 0xc74   : > { %2962 = vmatpush.msra.mxu0 %v1868_v49 }
 0xc75   : > { %2978 = vmatpush.msra.mxu1 %v1843_v46  ;;  %3020 = vmatpush.msra.mxu2 %v4651_v47  ;;  %v3009_v46 = vperm.slane %v1899_v44, 1  ;;  %v4684_v47 = vld [vmem:[%s6469_s28 + $0x8] sm:$0xff] }
 0xc76   : > { %3043 = vmatpush.msrb.mxu0 %v4650_v53  ;;  %v3008_v53 = vperm.slane %v1899_v44, 0 }
 0xc77   : > { %2979 = vmatpush.msra.mxu1 %v1841_v50  ;;  %3021 = vmatpush.msra.mxu2 %v4653_v58 }
 0xc78   : > { %3044 = vmatpush.msrb.mxu0 %v4652_v55 }
 0xc79   : > { %2980 = vmatpush.msra.mxu1 %v1839_v51  ;;  %3022 = vmatpush.msra.mxu2 %v4655_v61 }
 0xc7a   : > { %3045 = vmatpush.msrb.mxu0 %v4654_v59  ;;  %v4685_v59 = vld [vmem:[%s6469_s28] sm:$0xff] }
 0xc7b   : > { %2981 = vmatpush.msra.mxu1 %v1837_v54  ;;  %3023 = vmatpush.msra.mxu2 %v4657_v0 }
 0xc7c   : > { %3046 = vmatpush.msrb.mxu0 %v4656_v62  ;;  %v4686_v62 = vld [vmem:[%s6469_s28 + $0x18] sm:$0xff] }
 0xc7d   : > { %2982 = vmatpush.msra.mxu1 %v1835_v57  ;;  %3024 = vmatpush.msra.mxu2 %v4659_v4 }
 0xc7e   : > { %3047 = vmatpush.msrb.mxu0 %v4658_v1  ;;  %v4687_v1 = vld [vmem:[%s6469_s28 + $0x10] sm:$0xff] }
 0xc7f   : > { %3025 = vmatpush.msra.mxu2 %v4661_v6  ;;  %v1909_v6 = vld [vmem:[#allocation28] sm:$0xff] }
 0xc80   : > { %3048 = vmatpush.msrb.mxu0 %v4660_v42  ;;  %v1901_v42 = vld [vmem:[%s6482_s10 + $0x8] sm:$0xff] }
 0xc81   : > { %3026 = vmatpush.msra.mxu2 %v4663_v10 }
 0xc82   : > { %3049 = vmatpush.msrb.mxu0 %v4662_v9 }
 0xc83   : > { %3027 = vmatpush.msra.mxu2 %v4665_v13  ;;  %v1903_v13 = vld [vmem:[#allocation22] sm:$0xff] }
 0xc84   : > { %3050 = vmatpush.msrb.mxu0 %v4664_v12  ;;  %3160 = vmatpush.msrb.mxu3 %v1903_v13 }
 0xc85   : > { %3028 = vmatpush.msra.mxu2 %v4667_v15 }
 0xc86   : > { %3051 = vmatpush.msrb.mxu0 %v4666_v14 }
 0xc87   : > { %3029 = vmatpush.msra.mxu2 %v4669_v18 }
 0xc88   : > { %3052 = vmatpush.msrb.mxu0 %v4668_v17 }
 0xc89   : > { %3030 = vmatpush.msra.mxu2 %v4671_v21 }
 0xc8a   : > { %3053 = vmatpush.msrb.mxu0 %v4670_v20 }
 0xc8b   : > { %3031 = vmatpush.msra.mxu2 %v4673_v24 }
 0xc8c   : > { %3054 = vmatpush.msrb.mxu0 %v4672_v23 }
 0xc8d   : > { %3032 = vmatpush.msra.mxu2 %v4675_v28 }
 0xc8e   : > { %3055 = vmatpush.msrb.mxu0 %v4674_v27 }
 0xc8f   : > { %3033 = vmatpush.msra.mxu2 %v4677_v31 }
 0xc90   : > { %3056 = vmatpush.msrb.mxu0 %v4676_v30 }
 0xc91   : > { %3034 = vmatpush.msra.mxu2 %v4680_v35 }
 0xc92   : > { %3057 = vmatpush.msrb.mxu0 %v4679_v26 }
 0xc93   : > { %3035 = vmatpush.msra.mxu2 %v4682_v37 }
 0xc94   : > { %3058 = vmatpush.msrb.mxu0 %v4681_v36 }
 0xcdc   : > { %v2887_v33 = vpop.permute.xlu1 %2886 }
 0xcdd   : > { %4259 = vmatmul.msk.f32.vlgmr.msrb.gmra.mxu1 %vm2148_vm4, %v2887_v33  ;;  %v6183_v33 = vld [vmem:[%s6476_s1] sm:$0xff]  ;;  %s6485_s1 = smov %s6484_s22 }
 0xcde   : > { %3089 = vmatpush.msrb.mxu1 %v1901_v42 }
 0xce4   : > { %v2889_v52 = vpop.permute.xlu0 %2888 }
 0xce5   : > { %4260 = vmatmul.msk.f32.gmra.mxu1 %vm2148_vm4, %v2889_v52 }
 0xce7   : > { %v2871_v56 = vpop.f32.mrf.mxu0 }
 0xce8   : > { %v2877_v7 = vmul.f32 %v2871_v56, %v6172_v2 }
 0xced   : > { %2983 = vmatmul.f32.vlgmr.msra.gmra.mxu1 %v4649_v43 }
 0xcef   : > { %v2874_v5 = vpop.f32.mrf.mxu0 }
 0xcf0   : > { %v2878_v8 = vmul.f32 %v2874_v5, %v6174_v3  ;;  %v1900_v5 = vld [vmem:[%s6482_s10] sm:$0xff] }
 0xcf1   : > { %v3004_v45 = vpop.f32.mrf.mxu3  ;;  %3090 = vmatpush.msrb.mxu1 %v1900_v5 }
 0xcf2   : > { %v2879_v60 = vadd.f32 %v2878_v8, %v2877_v7 }
 0xcf4   : > { %v2880_v63 = vrot.slane %v2879_v60, 4 }
 0xcf6   : > { %v2881_v16 = vadd.f32 %v2880_v63, %v2879_v60  ;;  %v4528_v63 = vld [vmem:[#allocation21] ss:$0 sm:$0xff] }
 0xcf8   : > { %v2882_v19 = vrot.slane %v2881_v16, 2 }
 0xcfa   : > { %v2883_v22 = vadd.f32 %v2882_v19, %v2881_v16 }
 0xcfc   : > { %v2884_v25 = vrot.slane %v2883_v22, 1 }
 0xcfe   : > { %v2885_v29 = vadd.f32 %v2884_v25, %v2883_v22 }
 0xd00   : > { %v2926_v34 = vmul.f32 %v6179_v32, %v2885_v29 }
 0xd02   : > { %2943 = vmatmul.f32.vlgmr.msrb.gmra.mxu2 %v2926_v34  ;;  %2963 = vmatmul.f32.vlgmr.msra.gmra.mxu0 %v2926_v34 }
 0xd03   : > { %3339 = vmatpush.msrb.mxu2 %v6183_v33  ;;  %3371 = vmatpush.msra.mxu0 %v1909_v6 }
 0xd5a   : > { %v2911_v38 = vpop.f32.mrf.mxu1 }
 0xd5b   : > { %v2917_v40 = vmul.f32 %v2911_v38, %v6172_v2 }
 0xd62   : > { %v2914_v39 = vpop.f32.mrf.mxu1 }
 0xd63   : > { %v2918_v41 = vmul.f32 %v2914_v39, %v6174_v3 }
 0xd65   : > { %v6188_v43 = vadd.f32 %v2918_v41, %v2917_v40 }
 0xd6a   : > { %v2984_v51 = vpop.f32.mrf.mxu1 }
 0xd7f   : > { %v2964_v48 = vpop.f32.mrf.mxu0 }
 0xd80   : > { %v3005_v49 = vadd.f32 %v3004_v45, %v2964_v48 }
 0xd82   : > { %v3013_v50 = vadd.f32 %v3009_v46, %v3005_v49  ;;  %v1905_v49 = vld [vmem:[#allocation25] sm:$0xff] }
 0xd83   : > { %3230 = vmatpush.msra.mxu1 %v1905_v49  ;;  %v6230_v49 = vld [vmem:[%s5646_s12 + $0x38] sm:$0xff] }
 0xd84   : > { %v3015_v52 = vperm.slane %v3013_v50, 0  ;;  %v4529_v50 = vld [vmem:[#allocation24] ss:$0 sm:$0xff] }
 0xd85   : > { %v2944_v54 = vpop.f32.mrf.mxu2 }
 0xd86   : > { %v3017_v55 = vmul.f32 %v4684_v47, %v3015_v52  ;;  %v2985_v56 = vadd.f32 %v2984_v51, %v2944_v54  ;;  %v3019_v0 = vmul.f32 %v4686_v62, %v3015_v52 }
 0xd88   : > { %v3012_v57 = vadd.f32 %v3008_v53, %v2985_v56  ;;  %3059 = vmatmul.f32.vlgmr.msrb.gmra.mxu0 %v3017_v55 }
 0xd8a   : > { %v3014_v58 = vperm.slane %v3012_v57, 0 }
 0xd8c   : > { %v3016_v61 = vmul.f32 %v4685_v59, %v3014_v58  ;;  %v3018_v4 = vmul.f32 %v4687_v1, %v3014_v58 }
 0xd8e   : > { %3036 = vmatmul.f32.vlgmr.msra.gmra.mxu2 %v3016_v61 }
 0xd8f   : > { %3619 = vmatpush.msra.mxu2 %v6230_v49 }
 0xd90   : > { %3062 = vmatmul.f32.gmra.mxu0 %v3019_v0 }
 0xd96   : > { %3039 = vmatmul.f32.gmra.mxu2 %v3018_v4 }
 0xe05   : > { %v3060_v7 = vpop.f32.mrf.mxu0 }
 0xe0d   : > { %v3063_v10 = vpop.f32.mrf.mxu0 }
 0xe11   : > { %v3037_v8 = vpop.f32.mrf.mxu2 }
 0xe12   : > { %v6197_v9 = vadd.f32 %v3060_v7, %v3037_v8 }
 0xe14   : > { %4261 = vmatmul.msk.f32.vlgmr.msrb.gmra.mxu1 %vm2077_vm0, %v6197_v9 }
 0xe15   : > { %4273 = vmatpush.xpose.msk.msrb.mxu1 %vm2148_vm4, %v6183_v33 }
 0xe19   : > { %v3040_v60 = vpop.f32.mrf.mxu2 }
 0xe1a   : > { %v6201_v12 = vadd.f32 %v3063_v10, %v3040_v60 }
 0xe1c   : > { %4262 = vmatmul.msk.f32.gmra.mxu1 %vm2077_vm0, %v6201_v12  ;;  %3656 = vmatpush.msrb.mxu0 %v6201_v12 }
 0xe1e   : > { %3657 = vmatpush.msrb.mxu0 %v6197_v9 }
 0xe91   : > { %v3092_v14 = vpop.f32.mrf.mxu1 }
 0xe92   : > { %v3093_v15 = vadd.f32 %v4528_v63, %v3092_v14 }
 0xe94   : > { %v4263_v16 = vmul.f32 -1.442695, %v3093_v15 }
 0xe96   : > { %4593 = vpow2.f32 %v4263_v16 }
 0xe99   : > { %v3095_v17 = vpop.f32.mrf.mxu1 }
 0xe9a   : > { %v3096_v18 = vadd.f32 %v4528_v63, %v3095_v17 }
 0xe9c   : > { %v4594_v19 = vpop.eup %4593  ;;  %v4264_v20 = vmul.f32 -1.442695, %v3096_v18 }
 0xe9d   : > { %v3104_v21 = vadd.f32 1.0, %v4594_v19  ;;  %v1908_v19 = vld [vmem:[%s6483_s7 + $0x8] sm:$0xff] }
 0xe9e   : > { %4595 = vpow2.f32 %v4264_v20  ;;  %3258 = vmatpush.msra.mxu3 %v1908_v19  ;;  %v1907_v20 = vld [vmem:[%s6483_s7] sm:$0xff] }
 0xe9f   : > { %4597 = vrcp.f32 %v3104_v21  ;;  %v3117_v28 = vand.u32 2147483648, %v3104_v21  ;;  %v3115_v30 = vand.u32 2147483647, %v3104_v21  ;;  %vm3111_vm15 = vweird.f32 %v3104_v21 }
 0xea0   : > { %3259 = vmatpush.msra.mxu3 %v1907_v20 }
 0xea1   : > { %v3118_v26 = vor.u32 1.1754944e-38, %v3117_v28  ;;  %vm3116_vm2 = vcmp.eq.f32.partialorder %v3115_v30, 8.507059e+37  ;;  %v1914_v28 = vld [vmem:[%s6485_s1] sm:$0xff] }
 0xea4   : > { %v4596_v22 = vpop.eup %4595 }
 0xea5   : > { %v4598_v23 = vpop.eup %4597  ;;  %v3105_v24 = vadd.f32 1.0, %v4596_v22 }
 0xea6   : > { %v3107_v25 = vmul.f32 %v4598_v23, %v3104_v21  ;;  %vm3112_vm14 = vweird.f32 %v4598_v23  ;;  %v4530_v21 = vld [vmem:[#allocation27] ss:$0 sm:$0xff] }
 0xea7   : > { %4599 = vrcp.f32 %v3105_v24  ;;  %vm3113_vm1 = vmor %vm3111_vm15, %vm3112_vm14  ;;  %v3132_v39 = vand.u32 2147483648, %v3105_v24  ;;  %v3130_v41 = vand.u32 2147483647, %v3105_v24  ;;  %vm3126_vm5 = vweird.f32 %v3105_v24 }
 0xea8   : > { %v3108_v27 = vsub.f32 1.0, %v3107_v25 }
 0xea9   : > { %v3133_v45 = vor.u32 1.1754944e-38, %v3132_v39  ;;  %vm3131_vm7 = vcmp.eq.f32.partialorder %v3130_v41, 8.507059e+37 }
 0xeaa   : > { %v3109_v29 = vmul.f32 %v4598_v23, %v3108_v27  ;;  %v1915_v27 = vld [vmem:[%s6484_s22 + $0x8] sm:$0xff]  ;;  %s6486_s22 = smov 112  }
 0xeac   : > { %v3110_v31 = vadd.f32 %v4598_v23, %v3109_v29 }
 0xead   : > { %v4600_v34 = vpop.eup %4599 }
 0xeae   : > { %v3114_v35 = vsel %vm3113_vm1, %v4598_v23, %v3110_v31  ;;  %v3122_v36 = vmul.f32 %v4600_v34, %v3105_v24  ;;  %vm3127_vm3 = vweird.f32 %v4600_v34  ;;  %vm3604_vm1 = vcmask 523264  }
 0xeaf   : > { %v3119_v37 = vsel %vm3116_vm2, %v3118_v26, %v3114_v35  ;;  %vm3128_vm6 = vmor %vm3126_vm5, %vm3127_vm3 }
 0xeb0   : > { %4265 = vmatmul.msk.f32.vlgmr.msrb.gmra.mxu3 %vm2148_vm4, %v3119_v37  ;;  %v3123_v38 = vsub.f32 1.0, %v3122_v36 }
 0xeb2   : > { %v3124_v40 = vmul.f32 %v4600_v34, %v3123_v38 }
 0xeb4   : > { %v3125_v44 = vadd.f32 %v4600_v34, %v3124_v40 }
 0xeb6   : > { %v3129_v46 = vsel %vm3128_vm6, %v4600_v34, %v3125_v44 }
 0xeb7   : > { %v3134_v48 = vsel %vm3131_vm7, %v3133_v45, %v3129_v46 }
 0xeb8   : > { %4266 = vmatmul.msk.f32.gmra.mxu3 %vm2148_vm4, %v3134_v48 }
 0xf33   : > { %v3162_v51 = vpop.f32.mrf.mxu3 }
 0xf34   : > { %v3163_v52 = vadd.f32 %v4529_v50, %v3162_v51  ;;  %v6238_v51 = vld [vmem:[%s5646_s12 + $0x28] sm:$0xff] }
 0xf36   : > { %v4267_v53 = vmul.f32 -1.442695, %v3163_v52  ;;  %v6243_v52 = vld [vmem:[%s5646_s12 + $0x20] sm:$0xff] }
 0xf38   : > { %4601 = vpow2.f32 %v4267_v53  ;;  %v6250_v53 = vld [vmem:[%s5646_s12 + $0x18] sm:$0xff] }
 0xf3b   : > { %v3165_v54 = vpop.f32.mrf.mxu3 }
 0xf3c   : > { %v3166_v47 = vadd.f32 %v4529_v50, %v3165_v54  ;;  %v6233_v50 = vld [vmem:[%s5646_s12 + $0x30] sm:$0xff] }
 0xf3d   : > { %3620 = vmatpush.msra.mxu2 %v6233_v50  ;;  %v6253_v54 = vld [vmem:[%s5646_s12 + $0x10] sm:$0xff] }
 0xf3e   : > { %v4602_v55 = vpop.eup %4601  ;;  %v4268_v56 = vmul.f32 -1.442695, %v3166_v47  ;;  %v6258_v47 = vld [vmem:[%s5646_s12 + $0x8] sm:$0xff] }
 0xf3f   : > { %v3174_v57 = vadd.f32 1.0, %v4602_v55  ;;  %3621 = vmatpush.msra.mxu2 %v6238_v51  ;;  %v6263_v55 = vld [vmem:[%s5646_s12] sm:$0xff] }
 0xf40   : > { %4603 = vpow2.f32 %v4268_v56 }
 0xf41   : > { %4605 = vrcp.f32 %v3174_v57  ;;  %v3187_v1 = vand.u32 2147483648, %v3174_v57  ;;  %v3185_v4 = vand.u32 2147483647, %v3174_v57  ;;  %vm3181_vm9 = vweird.f32 %v3174_v57  ;;  %3622 = vmatpush.msra.mxu2 %v6243_v52 }
 0xf43   : > { %v3188_v6 = vor.u32 1.1754944e-38, %v3187_v1  ;;  %vm3186_vm11 = vcmp.eq.f32.partialorder %v3185_v4, 8.507059e+37  ;;  %3623 = vmatpush.msra.mxu2 %v6250_v53  ;;  %v6278_v1 = vld [vmem:[#allocation34] sm:$0xff]  ;;  %v6282_v4 = vld [vmem:[#allocation34 + $0x8] sm:$0xff] }
 0xf45   : > { %3624 = vmatpush.msra.mxu2 %v6253_v54 }
 0xf46   : > { %v4604_v58 = vpop.eup %4603 }
 0xf47   : > { %v4606_v59 = vpop.eup %4605  ;;  %v3175_v61 = vadd.f32 1.0, %v4604_v58  ;;  %3625 = vmatpush.msra.mxu2 %v6258_v47 }
 0xf48   : > { %v3177_v62 = vmul.f32 %v4606_v59, %v3174_v57  ;;  %vm3182_vm8 = vweird.f32 %v4606_v59  ;;  %v6270_v57 = vld [vmem:[#allocation33 + $0x8] sm:$0xff] }
 0xf49   : > { %4607 = vrcp.f32 %v3175_v61  ;;  %vm3183_vm10 = vmor %vm3181_vm9, %vm3182_vm8  ;;  %v3202_v13 = vand.u32 2147483648, %v3175_v61  ;;  %v3200_v14 = vand.u32 2147483647, %v3175_v61  ;;  %vm3196_vm13 = vweird.f32 %v3175_v61  ;;  %3626 = vmatpush.msra.mxu2 %v6263_v55  ;;  %3444 = vrot.lane.b32.xlu1 %v6270_v57, %s6486_s22 }
 0xf4a   : > { %v3178_v0 = vsub.f32 1.0, %v3177_v62 }
 0xf4b   : > { %v3203_v16 = vor.u32 1.1754944e-38, %v3202_v13  ;;  %vm3201_vm15 = vcmp.eq.f32.partialorder %v3200_v14, 8.507059e+37 }
 0xf4c   : > { %v3179_v33 = vmul.f32 %v4606_v59, %v3178_v0 }
 0xf4e   : > { %v3180_v42 = vadd.f32 %v4606_v59, %v3179_v33 }
 0xf4f   : > { %v4608_v5 = vpop.eup %4607 }
 0xf50   : > { %v3184_v7 = vsel %vm3183_vm10, %v4606_v59, %v3180_v42  ;;  %v3192_v8 = vmul.f32 %v4608_v5, %v3175_v61  ;;  %vm3197_vm12 = vweird.f32 %v4608_v5 }
 0xf51   : > { %v3189_v10 = vsel %vm3186_vm11, %v3188_v6, %v3184_v7  ;;  %vm3198_vm14 = vmor %vm3196_vm13, %vm3197_vm12  ;;  %3490 = vrot.lane.b32.xlu1 %v6270_v57, %s6487_s2  ;;  %v6286_v6 = vld [vmem:[#allocation33] sm:$0xff] }
 0xf52   : > { %4269 = vmatmul.msk.f32.vlgmr.msra.gmra.mxu1 %vm2148_vm4, %v3189_v10  ;;  %v3193_v60 = vsub.f32 1.0, %v3192_v8  ;;  %v4531_v8 = vld [vmem:[#allocation31] ss:$0 sm:$0xff] }
 0xf53   : > { %3593 = vmatpush.msra.mxu1 %v1915_v27 }
 0xf54   : > { %v3194_v63 = vmul.f32 %v4608_v5, %v3193_v60 }
 0xf55   : > { %3594 = vmatpush.msra.mxu1 %v1914_v28 }
 0xf56   : > { %v3195_v15 = vadd.f32 %v4608_v5, %v3194_v63  ;;  %v4532_v63 = vld [vmem:[#allocation30] ss:$0 sm:$0xff] }
 0xf58   : > { %v3199_v17 = vsel %vm3198_vm14, %v4608_v5, %v3195_v15 }
 0xf59   : > { %v3204_v18 = vsel %vm3201_vm15, %v3203_v16, %v3199_v17  ;;  %3488 = vrot.lane.b32.xlu1 %v6286_v6, %s6487_s2  ;;  %s1690_s2 = scalar_lea.vmem %s5656_s24, %s6492_s0 }
 0xf5a   : > { %4270 = vmatmul.msk.f32.gmra.mxu1 %vm2148_vm4, %v3204_v18 }
 0xfcf   : > { %v3232_v22 = vpop.f32.mrf.mxu1 }
 0xfd0   : > { %v3233_v23 = vadd.f32 %v4530_v21, %v3232_v22 }
 0xfd2   : > { %4271 = vmatmul.msk.f32.vlgmr.msra.gmra.mxu3 %vm2077_vm0, %v3233_v23 }
 0xfd7   : > { %v3235_v24 = vpop.f32.mrf.mxu1 }
 0xfd8   : > { %v3236_v25 = vadd.f32 %v4530_v21, %v3235_v24  ;;  %v3445_v21 = vpop.permute.xlu1 %3444 }
 0xfda   : > { %4272 = vmatmul.msk.f32.gmra.mxu3 %vm2077_vm0, %v3236_v25 }
0x1055   : > { %v3261_v29 = vpop.f32.mrf.mxu3 }
0x1056   : > { %4274 = vmatmul.msk.f32.vlgmr.msrb.gmra.mxu1 %vm2148_vm4, %v3261_v29  ;;  %v3491_v29 = vpop.permute.xlu1 %3490 }
0x1057   : > { %3710 = vmatpush.msrb.mxu1 %v6230_v49 }
0x1059   : > { %3711 = vmatpush.msrb.mxu1 %v6233_v50 }
0x105b   : > { %3712 = vmatpush.msrb.mxu1 %v6238_v51 }
0x105d   : > { %v3264_v30 = vpop.f32.mrf.mxu3  ;;  %3713 = vmatpush.msrb.mxu1 %v6243_v52 }
0x105e   : > { %4275 = vmatmul.msk.f32.gmra.mxu1 %vm2148_vm4, %v3264_v30 }
0x105f   : > { %3714 = vmatpush.msrb.mxu1 %v6250_v53 }
0x1061   : > { %3715 = vmatpush.msrb.mxu1 %v6253_v54 }
0x1063   : > { %3716 = vmatpush.msrb.mxu1 %v6258_v47 }
0x1065   : > { %3717 = vmatpush.msrb.mxu1 %v6263_v55 }
0x1066   : > { %4288 = vmatmul.msk.f32.vlgmr.msra.gmra.mxu1 %vm2077_vm0, %v6197_v9 }
0x1067   : > { %3839 = vmatpush.msra.mxu1 %v6161_v11 }
0x106e   : > { %4289 = vmatmul.msk.f32.gmra.mxu1 %vm2077_vm0, %v6201_v12 }
0x10d3   : > { %v3290_v31 = vpop.f32.mrf.mxu1 }
0x10d4   : > { %v3296_v34 = vsel %vm2148_vm4, %v3290_v31, -inf }
0x10d5   : > { %3297 = vmax.xlane.f32.xlu2 %v3296_v34 }
0x10db   : > { %v3293_v26 = vpop.f32.mrf.mxu1 }
0x10dc   : > { %v3299_v35 = vsel %vm2148_vm4, %v3293_v26, -inf }
0x10dd   : > { %3300 = vmax.xlane.f32.xlu2 %v3299_v35 }
0x10e3   : > { %v3596_v11 = vpop.f32.mrf.mxu1 }
0x10e4   : > { %v3602_v33 = vmul.f32 %v3596_v11, %v6278_v1 }
0x10eb   : > { %v3599_v42 = vpop.f32.mrf.mxu1 }
0x10ec   : > { %v3603_v5 = vmul.f32 %v3599_v42, %v6282_v4 }
0x1148   : > { %v3298_v36 = vpop.xlane.xlu2 %3297 }
0x1149   : > { %v3302_v37 = vsub.f32 %v3290_v31, %v3298_v36 }
0x114b   : > { %v3304_v38 = vmul.f32 1.442695, %v3302_v37 }
0x114d   : > { %4609 = vpow2.f32 %v3304_v38 }
0x1150   : > { %v3301_v39 = vpop.xlane.xlu2 %3300 }
0x1151   : > { %v3303_v40 = vsub.f32 %v3293_v26, %v3301_v39 }
0x1153   : > { %v4610_v41 = vpop.eup %4609  ;;  %v3306_v44 = vmul.f32 1.442695, %v3303_v40 }
0x1154   : > { %v3308_v45 = vsel %vm2148_vm4, %v4610_v41, 0.0 }
0x1155   : > { %4611 = vpow2.f32 %v3306_v44  ;;  %3309 = vadd.xlane.f32.xlu2 %v3308_v45  ;;  %v3489_v44 = vpop.permute.xlu1 %3488 }
0x115b   : > { %v4612_v46 = vpop.eup %4611 }
0x115c   : > { %v3311_v48 = vsel %vm2148_vm4, %v4612_v46, 0.0 }
0x115d   : > { %3312 = vadd.xlane.f32.xlu0 %v3311_v48 }
0x116d   : > { %3442 = vrot.lane.b32.xlu2 %v6286_v6, %s6486_s22 }
0x11c8   : > { %v3310_v56 = vpop.xlane.xlu2 %3309 }
0x11c9   : > { %4613 = vrcp.f32 %v3310_v56 }
0x11cf   : > { %v4614_v58 = vpop.eup %4613 }
0x11d0   : > { %v3316_v59 = vmul.f32 %v4614_v58, %v4610_v41  ;;  %v3313_v61 = vpop.xlane.xlu0 %3312  ;;  %v3443_v16 = vpop.permute.xlu2 %3442 }
0x11d1   : > { %4615 = vrcp.f32 %v3313_v61 }
0x11d2   : > { %4276 = vmatmul.msk.f32.vlgmr.msrb.gmra.mxu2 %vm2148_vm4, %v3316_v59 }
0x11d7   : > { %v4616_v62 = vpop.eup %4615 }
0x11d8   : > { %v3317_v0 = vmul.f32 %v4616_v62, %v4612_v46 }
0x11da   : > { %4277 = vmatmul.msk.f32.gmra.mxu2 %vm2148_vm4, %v3317_v0 }
0x11e2   : > { %4290 = vmatmul.msk.f32.vlgmr.msra.gmra.mxu2 %vm3604_vm1, %v3602_v33 }
0x11ea   : > { %4291 = vmatmul.msk.f32.gmra.mxu2 %vm3604_vm1, %v3603_v5 }
0x1255   : > { %v3341_v7 = vpop.f32.mrf.mxu2 }
0x1256   : > { %4278 = vmatmul.msk.f32.vlgmr.msra.gmra.mxu0 %vm2148_vm4, %v3341_v7  ;;  %v3390_v13 = vmul.f32 %v4531_v8, %v3341_v7 }
0x125d   : > { %v3344_v10 = vpop.f32.mrf.mxu2 }
0x125e   : > { %v3391_v60 = vmul.f32 %v4531_v8, %v3344_v10  ;;  %3381 = vrot.lane.b32.xlu1 %v3344_v10, %s6488_s4  ;;  %4279 = vmatmul.msk.f32.gmra.mxu0 %vm2148_vm4, %v3344_v10 }
0x1260   : > { %3396 = vrot.lane.b32.xlu2 %v3391_v60, %s6488_s4 }
0x1266   : > { %3379 = vrot.lane.b32.xlu1 %v3341_v7, %s6488_s4 }
0x1268   : > { %3394 = vrot.lane.b32.xlu2 %v3390_v13, %s6488_s4 }
0x1270   : > { %3510 = vrot.lane.b32.xlu2 %v6270_v57, %s6488_s4 }
0x12ba   : > { %v3397_v5 = vpop.permute.xlu2 %3396 }
0x12c2   : > { %v3395_v10 = vpop.permute.xlu2 %3394 }
0x12d0   : > { %v3382_v42 = vpop.permute.xlu1 %3381 }
0x12d1   : > { %v3386_v13 = vadd.f32 %v3382_v42, %v6270_v57 }
0x12d3   : > { %v3373_v14 = vpop.f32.mrf.mxu0 }
0x12d4   : > { %v6300_v15 = vadd.f32 %v4532_v63, %v3373_v14  ;;  %v3401_v14 = vadd.f32 %v3397_v5, %v3386_v13 }
0x12d6   : > { %v3448_v17 = vadd.f32 %v3443_v16, %v6300_v15  ;;  %v4281_v16 = vmul.f32 -1.442695, %v3401_v14 }
0x12d8   : > { %v4282_v18 = vmul.f32 -1.442695, %v3448_v17  ;;  %v3380_v7 = vpop.permute.xlu1 %3379 }
0x12d9   : > { %v3385_v8 = vadd.f32 %v3380_v7, %v6286_v6 }
0x12da   : > { %4617 = vpow2.f32 %v4282_v18 }
0x12db   : > { %v3376_v19 = vpop.f32.mrf.mxu0  ;;  %v3400_v60 = vadd.f32 %v3395_v10, %v3385_v8 }
0x12dc   : > { %v6303_v20 = vadd.f32 %v4532_v63, %v3376_v19 }
0x12dd   : > { %v4280_v63 = vmul.f32 -1.442695, %v3400_v60 }
0x12de   : > { %v3449_v22 = vadd.f32 %v3445_v21, %v6303_v20 }
0x12e0   : > { %v4618_v23 = vpop.eup %4617  ;;  %v4283_v24 = vmul.f32 -1.442695, %v3449_v22 }
0x12e1   : > { %v3456_v25 = vadd.f32 1.0, %v4618_v23 }
0x12e2   : > { %4619 = vpow2.f32 %v4283_v24 }
0x12e3   : > { %4621 = vrcp.f32 %v3456_v25  ;;  %v3469_v26 = vand.u32 2147483648, %v3456_v25  ;;  %v3467_v36 = vand.u32 2147483647, %v3456_v25  ;;  %vm3463_vm3 = vweird.f32 %v3456_v25 }
0x12e5   : > { %v3470_v39 = vor.u32 1.1754944e-38, %v3469_v26  ;;  %vm3468_vm6 = vcmp.eq.f32.partialorder %v3467_v36, 8.507059e+37 }
0x12e8   : > { %v4620_v27 = vpop.eup %4619 }
0x12e9   : > { %v4622_v28 = vpop.eup %4621  ;;  %v3457_v30 = vadd.f32 1.0, %v4620_v27 }
0x12ea   : > { %v3459_v31 = vmul.f32 %v4622_v28, %v3456_v25  ;;  %vm3464_vm2 = vweird.f32 %v4622_v28 }
0x12eb   : > { %4623 = vrcp.f32 %v3457_v30  ;;  %vm3465_vm5 = vmor %vm3463_vm3, %vm3464_vm2  ;;  %v3484_v56 = vand.u32 2147483648, %v3457_v30  ;;  %v3482_v59 = vand.u32 2147483647, %v3457_v30  ;;  %vm3478_vm8 = vweird.f32 %v3457_v30 }
0x12ec   : > { %v3460_v34 = vsub.f32 1.0, %v3459_v31  ;;  %4625 = vpow2.f32 %v4280_v63 }
0x12ed   : > { %v3485_v62 = vor.u32 1.1754944e-38, %v3484_v56  ;;  %vm3483_vm10 = vcmp.eq.f32.partialorder %v3482_v59, 8.507059e+37  ;;  %4627 = vpow2.f32 %v4281_v16 }
0x12ee   : > { %v3461_v35 = vmul.f32 %v4622_v28, %v3460_v34 }
0x12f0   : > { %v3462_v37 = vadd.f32 %v4622_v28, %v3461_v35 }
0x12f1   : > { %v4624_v38 = vpop.eup %4623 }
0x12f2   : > { %v3466_v40 = vsel %vm3465_vm5, %v4622_v28, %v3462_v37  ;;  %v3474_v41 = vmul.f32 %v4624_v38, %v3457_v30  ;;  %vm3479_vm7 = vweird.f32 %v4624_v38  ;;  %v4626_v17 = vpop.eup %4625 }
0x12f3   : > { %v3471_v45 = vsel %vm3468_vm6, %v3470_v39, %v3466_v40  ;;  %vm3480_vm9 = vmor %vm3478_vm8, %vm3479_vm7  ;;  %v3408_v18 = vadd.f32 1.0, %v4626_v17  ;;  %v4628_v19 = vpop.eup %4627 }
0x12f4   : > { %v3494_v46 = vmul.f32 %v3489_v44, %v3471_v45  ;;  %v3475_v48 = vsub.f32 1.0, %v3474_v41  ;;  %v3409_v21 = vadd.f32 1.0, %v4628_v19 }
0x12f5   : > { %4629 = vrcp.f32 %v3408_v18  ;;  %v3421_v57 = vand.u32 2147483648, %v3408_v18  ;;  %vm3415_vm12 = vweird.f32 %v3408_v18  ;;  %v3419_v31 = vand.u32 2147483647, %v3408_v18 }
0x12f6   : > { %3498 = vrot.lane.b32.xlu1 %v3494_v46, %s6488_s4  ;;  %v3476_v58 = vmul.f32 %v4624_v38, %v3475_v48  ;;  %4631 = vrcp.f32 %v3409_v21  ;;  %v3436_v39 = vand.u32 2147483648, %v3409_v21  ;;  %vm3430_vm2 = vweird.f32 %v3409_v21 }
0x12f7   : > { %v3422_v36 = vor.u32 1.1754944e-38, %v3421_v57  ;;  %vm3420_vm14 = vcmp.eq.f32.partialorder %v3419_v31, 8.507059e+37  ;;  %v3434_v40 = vand.u32 2147483647, %v3409_v21 }
0x12f8   : > { %v3477_v61 = vadd.f32 %v4624_v38, %v3476_v58  ;;  %v3437_v59 = vor.u32 1.1754944e-38, %v3436_v39 }
0x12f9   : > { %vm3435_vm5 = vcmp.eq.f32.partialorder %v3434_v40, 8.507059e+37 }
0x12fa   : > { %v3481_v0 = vsel %vm3480_vm9, %v4624_v38, %v3477_v61 }
0x12fb   : > { %v3486_v11 = vsel %vm3483_vm10, %v3485_v62, %v3481_v0  ;;  %v4630_v22 = vpop.eup %4629  ;;  %v3511_v0 = vpop.permute.xlu2 %3510 }
0x12fc   : > { %v3495_v33 = vmul.f32 %v3491_v29, %v3486_v11  ;;  %v3411_v23 = vmul.f32 %v4630_v22, %v3408_v18  ;;  %v4632_v25 = vpop.eup %4631  ;;  %vm3416_vm11 = vweird.f32 %v4630_v22 }
0x12fd   : > { %vm3417_vm13 = vmor %vm3415_vm12, %vm3416_vm11  ;;  %vm3431_vm15 = vweird.f32 %v4632_v25 }
0x12fe   : > { %3500 = vrot.lane.b32.xlu0 %v3495_v33, %s6488_s4  ;;  %3508 = vrot.lane.b32.xlu1 %v6286_v6, %s6488_s4  ;;  %v3412_v24 = vsub.f32 1.0, %v3411_v23  ;;  %v3426_v6 = vmul.f32 %v4632_v25, %v3409_v21  ;;  %vm3432_vm3 = vmor %vm3430_vm2, %vm3431_vm15  ;;  %s6489_s4 = smov 120  }
0x1300   : > { %v3413_v27 = vmul.f32 %v4630_v22, %v3412_v24  ;;  %v3427_v28 = vsub.f32 1.0, %v3426_v6 }
0x1302   : > { %v3414_v29 = vadd.f32 %v4630_v22, %v3413_v27  ;;  %v3428_v26 = vmul.f32 %v4632_v25, %v3427_v28  ;;  %v1917_v28 = vld [vmem:[%s6485_s1 + $0x18] sm:$0xff] }
0x1304   : > { %v3418_v35 = vsel %vm3417_vm13, %v4630_v22, %v3414_v29  ;;  %v3429_v38 = vadd.f32 %v4632_v25, %v3428_v26 }
0x1305   : > { %v3423_v37 = vsel %vm3420_vm14, %v3422_v36, %v3418_v35  ;;  %v1916_v35 = vld [vmem:[%s6485_s1 + $0x10] sm:$0xff] }
0x1306   : > { %v3516_v45 = vsub.f32 1.0, %v3423_v37  ;;  %v3433_v56 = vsel %vm3432_vm3, %v4632_v25, %v3429_v38 }
0x1307   : > { %v3438_v62 = vsel %vm3435_vm5, %v3437_v59, %v3433_v56 }
0x1308   : > { %v3517_v11 = vsub.f32 1.0, %v3438_v62  ;;  %v3515_v42 = vmul.f32 %v3511_v0, %v3438_v62 }
0x1368   : > { %v3499_v30 = vpop.permute.xlu1 %3498 }
0x1369   : > { %v3504_v34 = vadd.f32 %v3499_v30, %v6300_v15 }
0x136b   : > { %4633 = vtanh.f32 %v3504_v34 }
0x1370   : > { %v3501_v41 = vpop.permute.xlu0 %3500  ;;  %v3509_v44 = vpop.permute.xlu1 %3508 }
0x1371   : > { %v4634_v46 = vpop.eup %4633  ;;  %v3505_v48 = vadd.f32 %v3501_v41, %v6303_v20  ;;  %v3514_v15 = vmul.f32 %v3509_v44, %v3423_v37 }
0x1372   : > { %v3518_v58 = vmul.f32 %v4634_v46, %v3516_v45 }
0x1373   : > { %4635 = vtanh.f32 %v3505_v48 }
0x1374   : > { %v3520_v61 = vadd.f32 %v3518_v58, %v3514_v15 }
0x1376   : > { %3524 = vrot.lane.b32.xlu1 %v3520_v61, %s6489_s4 }
0x1379   : > { %v4636_v33 = vpop.eup %4635 }
0x137a   : > { %v3519_v5 = vmul.f32 %v4636_v33, %v3517_v11  ;;  %v1931_v11 = vld [vmem:[%s5651_s3 + $0x8] sm:$0xff] }
0x137c   : > { %v3521_v7 = vadd.f32 %v3519_v5, %v3515_v42 }
0x137e   : > { %3526 = vrot.lane.b32.xlu2 %v3521_v7, %s6489_s4 }
0x13d8   : > { %v3527_v8 = vpop.permute.xlu2 %3526 }
0x13d9   : > { %4284 = vmatpush.xpose.msk.msrb.mxu3 %vm2148_vm4, %v3527_v8 }
0x13e8   : > { %v3525_v20 = vpop.permute.xlu1 %3524 }
0x13e9   : > { %4285 = vmatpush.xpose.msk.msrb.mxu3 %vm2148_vm4, %v3525_v20 }
0x13ec   : > { %4286 = vmatmul.msk.f32.vlgmr.msrb.gmra.mxu3 %vm2148_vm4, %v3525_v20 }
0x13ed   : > { %3685 = vmatpush.msra.mxu3 %v1917_v28 }
0x13ef   : > { %3686 = vmatpush.msra.mxu3 %v1916_v35 }
0x13f1   : > { %3799 = vmatpush.msrb.mxu3 %v6230_v49 }
0x13f3   : > { %3800 = vmatpush.msrb.mxu3 %v6233_v50  ;;  %v1919_v50 = vld [vmem:[%s6485_s1 + $0x28] sm:$0xff] }
0x13f4   : > { %4287 = vmatmul.msk.f32.gmra.mxu3 %vm2148_vm4, %v3527_v8  ;;  %3774 = vmatpush.msra.mxu0 %v1919_v50  ;;  %v2920_v8 = vrot.slane %v6188_v43, 4 }
0x13f5   : > { %3801 = vmatpush.msrb.mxu3 %v6238_v51  ;;  %v1918_v51 = vld [vmem:[%s6485_s1 + $0x20] sm:$0xff] }
0x13f6   : > { %3775 = vmatpush.msra.mxu0 %v1918_v51 }
0x13f7   : > { %3802 = vmatpush.msrb.mxu3 %v6243_v52  ;;  %v3628_v52 = vpop.f32.mrf.mxu2 }
0x13f9   : > { %3803 = vmatpush.msrb.mxu3 %v6250_v53 }
0x13fb   : > { %3804 = vmatpush.msrb.mxu3 %v6253_v54 }
0x13fd   : > { %3805 = vmatpush.msrb.mxu3 %v6258_v47 }
0x13ff   : > { %3806 = vmatpush.msrb.mxu3 %v6263_v55  ;;  %v3631_v47 = vpop.f32.mrf.mxu2 }
0x1400   : > { %v3635_v33 = vadd.f32 %v3631_v47, %v1931_v11 }
0x146f   : > { %v3549_v10 = vpop.f32.mrf.mxu3 }
0x1470   : > { %v3555_v60 = vmax.f32 %v3549_v10, 0.0  ;;  %v2921_v10 = vadd.f32 %v2920_v8, %v6188_v43 }
0x1472   : > { %v3557_v13 = vsel %vm2077_vm0, %v3555_v60, -inf }
0x1473   : > { %3558 = vmax.xlane.f32.xlu0 %v3557_v13 }
0x1477   : > { %v3552_v63 = vpop.f32.mrf.mxu3 }
0x1478   : > { %v3556_v14 = vmax.f32 %v3552_v63, 0.0 }
0x147a   : > { %v3560_v16 = vsel %vm2077_vm0, %v3556_v14, -inf }
0x147b   : > { %3561 = vmax.xlane.f32.xlu2 %v3560_v16 }
0x14e6   : > { %v3559_v17 = vpop.xlane.xlu0 %3558 }
0x14e7   : > { %v3563_v18 = vsub.f32 %v3555_v60, %v3559_v17  ;;  %v2922_v60 = vrot.slane %v2921_v10, 2 }
0x14e9   : > { %v3565_v19 = vmul.f32 1.442695, %v3563_v18  ;;  %v2923_v16 = vadd.f32 %v2922_v60, %v2921_v10 }
0x14eb   : > { %4637 = vpow2.f32 %v3565_v19  ;;  %v2924_v19 = vrot.slane %v2923_v16, 1 }
0x14ee   : > { %v3562_v21 = vpop.xlane.xlu2 %3561 }
0x14ef   : > { %v3564_v22 = vsub.f32 %v3556_v14, %v3562_v21 }
0x14f1   : > { %v4638_v23 = vpop.eup %4637  ;;  %v3567_v24 = vmul.f32 1.442695, %v3564_v22 }
0x14f2   : > { %v3569_v25 = vsel %vm2077_vm0, %v4638_v23, 0.0 }
0x14f3   : > { %4639 = vpow2.f32 %v3567_v24  ;;  %3570 = vadd.xlane.f32.xlu1 %v3569_v25 }
0x14f9   : > { %v4640_v6 = vpop.eup %4639 }
0x14fa   : > { %v3572_v27 = vsel %vm2077_vm0, %v4640_v6, 0.0 }
0x14fb   : > { %3573 = vadd.xlane.f32.xlu0 %v3572_v27 }
0x1566   : > { %v3571_v29 = vpop.xlane.xlu1 %3570 }
0x1567   : > { %4641 = vrcp.f32 %v3571_v29 }
0x156d   : > { %v4642_v57 = vpop.eup %4641 }
0x156e   : > { %v3577_v30 = vmul.f32 %v4642_v57, %v4638_v23  ;;  %v3574_v31 = vpop.xlane.xlu0 %3573  ;;  %v2925_v23 = vadd.f32 %v2924_v19, %v2923_v16 }
0x156f   : > { %4643 = vrcp.f32 %v3574_v31 }
0x1570   : > { %4292 = vmatmul.msk.f32.vlgmr.msrb.gmra.mxu0 %vm2077_vm0, %v3577_v30  ;;  %v3856_v43 = vmul.f32 %v6179_v32, %v2925_v23 }
0x1575   : > { %v4644_v34 = vpop.eup %4643 }
0x1576   : > { %v3578_v26 = vmul.f32 %v4644_v34, %v4640_v6  ;;  %v3857_v6 = vsub.f32 1.0, %v2925_v23 }
0x1578   : > { %4293 = vmatmul.msk.f32.gmra.mxu0 %vm2077_vm0, %v3578_v26 }
0x15ed   : > { %v3659_v36 = vpop.f32.mrf.mxu0 }
0x15ee   : > { %4294 = vmatmul.msk.f32.vlgmr.msra.gmra.mxu3 %vm2077_vm0, %v3659_v36 }
0x15f5   : > { %v3662_v49 = vpop.f32.mrf.mxu0 }
0x15f6   : > { %4295 = vmatmul.msk.f32.gmra.mxu3 %vm2077_vm0, %v3662_v49  ;;  %3741 = vmatpush.msrb.mxu2 %v3662_v49 }
0x15f8   : > { %3742 = vmatpush.msrb.mxu2 %v3659_v36 }
0x15f9   : > { %4298 = vmatmul.msk.f32.vlgmr.msrb.gmra.mxu2 %vm2077_vm0, %v3577_v30 }
0x1601   : > { %4299 = vmatmul.msk.f32.gmra.mxu2 %vm2077_vm0, %v3578_v26 }
0x1671   : > { %v3688_v53 = vpop.f32.mrf.mxu3 }
0x1672   : > { %v3694_v54 = vmul.f32 %v3688_v53, %v6278_v1 }
0x1674   : > { %4296 = vmatmul.msk.f32.vlgmr.msrb.gmra.mxu1 %vm3604_vm1, %v3694_v54 }
0x1679   : > { %v3691_v55 = vpop.f32.mrf.mxu3 }
0x167a   : > { %v3695_v37 = vmul.f32 %v3691_v55, %v6282_v4 }
0x167c   : > { %4297 = vmatmul.msk.f32.gmra.mxu1 %vm3604_vm1, %v3695_v37  ;;  %v3744_v38 = vpop.f32.mrf.mxu2 }
0x167d   : > { %v3750_v39 = vmul.f32 2.0, %v3744_v38 }
0x167f   : > { %v3752_v40 = vsub.f32 %v3750_v39, %v6197_v9  ;;  %v1930_v9 = vld [vmem:[%s5651_s3] sm:$0xff] }
0x1680   : > { %v3634_v59 = vadd.f32 %v3628_v52, %v1930_v9 }
0x1681   : > { %4300 = vmatmul.msk.f32.vlgmr.msra.gmra.mxu0 %vm2077_vm0, %v3752_v40 }
0x1684   : > { %v3747_v41 = vpop.f32.mrf.mxu2 }
0x1685   : > { %v3751_v44 = vmul.f32 2.0, %v3747_v41 }
0x1687   : > { %v3753_v45 = vsub.f32 %v3751_v44, %v6201_v12 }
0x1689   : > { %4301 = vmatmul.msk.f32.gmra.mxu0 %vm2077_vm0, %v3753_v45 }
0x16f1   : > { %v3719_v58 = vpop.f32.mrf.mxu1 }
0x16f2   : > { %v3725_v61 = vadd.f32 %v3719_v58, %v3634_v59 }
0x16f9   : > { %v3722_v12 = vpop.f32.mrf.mxu1 }
0x16fa   : > { %v3726_v42 = vadd.f32 %v3722_v12, %v3635_v33 }
0x16fe   : > { %v3777_v46 = vpop.f32.mrf.mxu0 }
0x16ff   : > { %v3783_v48 = vmul.f32 %v3777_v46, %v6278_v1 }
0x1701   : > { %4302 = vmatmul.msk.f32.vlgmr.msrb.gmra.mxu3 %vm3604_vm1, %v3783_v48 }
0x1706   : > { %v3780_v15 = vpop.f32.mrf.mxu0 }
0x1707   : > { %v3784_v56 = vmul.f32 %v3780_v15, %v6282_v4 }
0x1709   : > { %4303 = vmatmul.msk.f32.gmra.mxu3 %vm3604_vm1, %v3784_v56 }
0x1784   : > { %v3808_v62 = vpop.f32.mrf.mxu3 }
0x1785   : > { %v3814_v0 = vadd.f32 %v3808_v62, %v3725_v61 }
0x1787   : > { %4645 = vtanh.f32 %v3814_v0 }
0x178c   : > { %v3811_v5 = vpop.f32.mrf.mxu3 }
0x178d   : > { %v4646_v1 = vpop.eup %4645  ;;  %v3815_v7 = vadd.f32 %v3811_v5, %v3726_v42 }
0x178e   : > { %4304 = vmatmul.msk.f32.vlgmr.msra.gmra.mxu1 %vm2148_vm4, %v4646_v1 }
0x178f   : > { %4647 = vtanh.f32 %v3815_v7 }
0x1795   : > { %v4648_v4 = vpop.eup %4647 }
0x1796   : > { %4305 = vmatmul.msk.f32.gmra.mxu1 %vm2148_vm4, %v4648_v4 }
0x180b   : > { %v3841_v20 = vpop.f32.mrf.mxu1 }
0x180c   : > { %v3847_v63 = vmul.f32 %v3841_v20, %v6172_v2 }
0x1813   : > { %v3844_v13 = vpop.f32.mrf.mxu1 }
0x1814   : > { %v3848_v14 = vmul.f32 %v3844_v13, %v6174_v3 }
0x1816   : > { %v3849_v17 = vadd.f32 %v3848_v14, %v3847_v63 }
0x1818   : > { %v3850_v18 = vrot.slane %v3849_v17, 4 }
0x181a   : > { %v3851_v21 = vadd.f32 %v3850_v18, %v3849_v17 }
0x181c   : > { %v3852_v22 = vrot.slane %v3851_v21, 2 }
0x181e   : > { %v3853_v24 = vadd.f32 %v3852_v22, %v3851_v21 }
0x1820   : > { %v3854_v25 = vrot.slane %v3853_v24, 1 }
0x1822   : > { %v3855_v27 = vadd.f32 %v3854_v25, %v3853_v24 }
0x1824   : > { %v3858_v28 = vmul.f32 %v3857_v6, %v3855_v27 }
0x1826   : > { %v3859_v29 = vadd.f32 %v3858_v28, %v3856_v43 }
0x1828   : > { %3860 = vst [vmem:[%s1690_s2] sm:$0x1] %v3859_v29 }
0x1829 PF: > { %s6490_s22 = sld [smem:[#allocation80_spill]] }
0x182f   : > { %s113_s22 = sadd.s32 1, %s6490_s22  }
0x1830   : > { %p110_p3 = scmp.ge.s32.totalorder %s113_s22, 4  }
0x1832   :  { %112 = sbr.rel (!%p110_p3) target bundleno = 91 (0x5b), region = 367 }
0x1837   :  { %3878 = vsyncpa [#allocation3], 1 }
0x1838   :  { %3880 = vsyncpa [#allocation3 + $0x1], 1 }
0x1839   :  { %3881 = vsyncpa [#allocation5], 1 }
0x183a   :  { %3882 = vsyncpa [#allocation8], 1 }
0x183b   :  { %3883 = vsyncpa [#allocation11], 1 }
0x183c   :  { %3884 = vsyncpa [#allocation14], 1 }
0x183d   :  { %3885 = vsyncpa [#allocation17], 1 }
0x183e   :  { %3886 = vsyncpa [#allocation20], 1 }
0x183f   :  { %3887 = vsyncpa [#allocation23], 1 }
0x1840   :  { %3888 = vsyncpa [#allocation26], 1 }
0x1841   :  { %3889 = vsyncpa [#allocation29], 1 }
0x1842   :  { %3890 = vsyncpa [#allocation32], 1 }
0x1843   :  { %3891 = vsyncpa [#allocation35], 1 }

</bundles_post_ra>
